<compile_context>
chip_gen: v6e
topology: v6e:2x2x1
jax: 0.10.0
libtpu: 0.0.40
codegen_flags: <defaults>
</compile_context>

<pallas_src>
import math

import jax
import jax.numpy as jnp
from jax.experimental import pallas as pl
from jax.experimental.pallas import tpu as pltpu

# -----------------------------------------------------------------------------
# Model configuration (NeRF / NeRFMLP defaults, with small sample counts)
# -----------------------------------------------------------------------------
MIN_DEG_POINT = 0
MAX_DEG_POINT = 10
DEG_VIEW = 4
NUM_COARSE_SAMPLES = 16      # small shapes for the demo (constructor-configurable)
NUM_FINE_SAMPLES = 32
NETDEPTH = 8
NETWIDTH = 256
NETDEPTH_CONDITION = 1
NETWIDTH_CONDITION = 128
SKIP_LAYER = 4
INPUT_CH = 3
INPUT_CH_VIEW = 3
NUM_RGB_CHANNELS = 3
NUM_DENSITY_CHANNELS = 1
LINDISP = False

POS_SIZE = ((MAX_DEG_POINT - MIN_DEG_POINT) * 2 + 1) * INPUT_CH        # 63
VIEW_POS_SIZE = (DEG_VIEW * 2 + 1) * INPUT_CH_VIEW                     # 27
POS_PAD = 64                 # 63 -> 64  (8-sublane aligned contraction dim)
VIEW_PAD = 32                # 27 -> 32
BD_WIDTH = NETWIDTH + 128    # fused bottleneck(256) + density(1) head, lane padded
OUT_WIDTH = 8                # rgb lanes 0..2, raw density lane 3, lanes 4..7 zero


# -----------------------------------------------------------------------------
# Pallas kernel: full NeRFMLP forward for one tile of points.
# -----------------------------------------------------------------------------
def nerf_mlp_kernel(x_ref, cond_ref,
                    w0, b0, w1, b1, w2, b2, w3, b3, w4, b4,
                    w5a, w5b, b5, w6, b6, w7, b7,
                    wbd, bbd, wva, wvb, bv, wr, br,
                    out_ref):
    relu = lambda v: jnp.maximum(v, 0.0)

    def dot(a, w_ref):
        # bf16 operands on the MXU, f32 accumulation.
        return jnp.dot(a.astype(jnp.bfloat16), w_ref[...],
                       preferred_element_type=jnp.float32)

    inputs = x_ref[...]                                    # (TM, POS_PAD)  bf16
    cond = cond_ref[...]                                   # (TM, VIEW_PAD) bf16

    # pts MLP (netdepth = 8, skip concat after layer idx 4 feeds layer idx 5)
    h = relu(dot(inputs, w0) + b0[...])
    h = relu(dot(h, w1) + b1[...])
    h = relu(dot(h, w2) + b2[...])
    h = relu(dot(h, w3) + b3[...])
    h = relu(dot(h, w4) + b4[...])
    # torch: cat([h, inputs]) @ W5  ==  h @ W5[:256] + inputs @ W5[256:]
    h = relu(dot(h, w5a) + dot(inputs, w5b) + b5[...])
    h = relu(dot(h, w6) + b6[...])
    h = relu(dot(h, w7) + b7[...])

    # fused bottleneck (cols 0..255) + raw density head (col 256); no activation
    bd = dot(h, wbd) + bbd[...]                            # (TM, BD_WIDTH) f32
    bottleneck = bd[:, :NETWIDTH]
    dens = bd[:, NETWIDTH:NETWIDTH + NUM_DENSITY_CHANNELS]

    # view branch: cat([bottleneck, cond]) @ Wv split the same way
    hv = relu(dot(bottleneck, wva) + dot(cond, wvb) + bv[...])
    rgb = dot(hv, wr) + br[...]                            # (TM, 3) raw rgb

    pad = jnp.zeros(
        (rgb.shape[0], OUT_WIDTH - NUM_RGB_CHANNELS - NUM_DENSITY_CHANNELS),
        jnp.float32)
    out_ref[...] = jnp.concatenate([rgb, dens, pad], axis=-1)


def nerf_mlp_apply(params, x_enc, cond_enc, tm=512):
    """Pallas-backed NeRFMLP forward.

    x_enc:    (R, S, pos_size)     positional-encoded sample points
    cond_enc: (R, view_pos_size)   positional-encoded view directions
    returns:  raw_rgb (R, S, 3), raw_density (R, S, 1)
    """
    R, S, P = x_enc.shape
    V = cond_enc.shape[-1]
    N = R * S

    # Inputs only feed bf16 matmuls -> materialize them in bf16 (halves HBM traffic).
    x = x_enc.reshape(N, P)
    x = jnp.pad(x, ((0, 0), (0, POS_PAD - P))).astype(jnp.bfloat16)
    # Per-sample view-condition broadcast kept simple (bf16, secondary traffic).
    cond = jnp.broadcast_to(cond_enc[:, None, :], (R, S, V)).reshape(N, V)
    cond = jnp.pad(cond, ((0, 0), (0, VIEW_PAD - V))).astype(jnp.bfloat16)

    # Clamp the row tile for small problems; n_pad stays a multiple of tm.
    tm = min(tm, pl.cdiv(N, 128) * 128)
    n_pad = pl.cdiv(N, tm) * tm
    if n_pad != N:
        x = jnp.pad(x, ((0, n_pad - N), (0, 0)))
        cond = jnp.pad(cond, ((0, n_pad - N), (0, 0)))

    def row_spec(width):
        return pl.BlockSpec((tm, width), lambda i: (i, 0))

    # Weights/biases use constant index_maps -> fetched once, VMEM-resident.
    param_specs = [pl.BlockSpec(p.shape, lambda i: (0, 0)) for p in params]

    flops_per_row = 2 * (POS_PAD * NETWIDTH                             # layer 0
                         + 4 * NETWIDTH * NETWIDTH                      # layers 1..4
                         + NETWIDTH * NETWIDTH + POS_PAD * NETWIDTH     # skip layer 5
                         + 2 * NETWIDTH * NETWIDTH                      # layers 6,7
                         + NETWIDTH * BD_WIDTH                          # bottleneck+density
                         + (NETWIDTH + VIEW_PAD) * NETWIDTH_CONDITION   # view layer
                         + NETWIDTH_CONDITION * NUM_RGB_CHANNELS)       # rgb head
    weight_bytes = int(sum(int(p.size) * p.dtype.itemsize for p in params))
    cost = pl.CostEstimate(
        flops=int(flops_per_row) * int(n_pad),
        transcendentals=0,
        bytes_accessed=int(n_pad) * (POS_PAD + VIEW_PAD) * 2
                       + int(n_pad) * OUT_WIDTH * 4 + weight_bytes)

    out = pl.pallas_call(
        nerf_mlp_kernel,
        out_shape=jax.ShapeDtypeStruct((n_pad, OUT_WIDTH), jnp.float32),
        grid_spec=pltpu.PrefetchScalarGridSpec(
            num_scalar_prefetch=0,
            grid=(n_pad // tm,),
            in_specs=[row_spec(POS_PAD), row_spec(VIEW_PAD)] + param_specs,
            out_specs=row_spec(OUT_WIDTH),
        ),
        compiler_params=pltpu.CompilerParams(
            dimension_semantics=("parallel",)),   # rows independent -> v7x 2-TC split
        cost_estimate=cost,
    )(x, cond, *params)

    raw_rgb = out[:N, :NUM_RGB_CHANNELS].reshape(R, S, NUM_RGB_CHANNELS)
    raw_density = out[:N, NUM_RGB_CHANNELS:NUM_RGB_CHANNELS + NUM_DENSITY_CHANNELS]
    raw_density = raw_density.reshape(R, S, NUM_DENSITY_CHANNELS)
    return raw_rgb, raw_density


# -----------------------------------------------------------------------------
# Deterministic parameter init (xavier_uniform weights, torch-default biases)
# and conversion into the padded / fused bf16 kernel layout.
# -----------------------------------------------------------------------------
def init_nerf_mlp_params(key):
    """Raw NeRFMLP parameters, (in_features, out_features) layout, f32."""
    keys = iter(jax.random.split(key, 32))

    def xavier(k, fan_in, fan_out):
        limit = math.sqrt(6.0 / (fan_in + fan_out))
        return jax.random.uniform(k, (fan_in, fan_out), jnp.float32, -limit, limit)

    def bias(k, fan_in, fan_out):
        bound = 1.0 / math.sqrt(fan_in)
        return jax.random.uniform(k, (1, fan_out), jnp.float32, -bound, bound)

    p = {}
    pts_w, pts_b = [], []
    pts_w.append(xavier(next(keys), POS_SIZE, NETWIDTH))
    pts_b.append(bias(next(keys), POS_SIZE, NETWIDTH))
    for idx in range(NETDEPTH - 1):
        fan_in = NETWIDTH + POS_SIZE if (idx % SKIP_LAYER == 0 and idx > 0) else NETWIDTH
        pts_w.append(xavier(next(keys), fan_in, NETWIDTH))
        pts_b.append(bias(next(keys), fan_in, NETWIDTH))
    p["pts_w"], p["pts_b"] = pts_w, pts_b
    p["views_w"] = xavier(next(keys), NETWIDTH + VIEW_POS_SIZE, NETWIDTH_CONDITION)
    p["views_b"] = bias(next(keys), NETWIDTH + VIEW_POS_SIZE, NETWIDTH_CONDITION)
    p["bottleneck_w"] = xavier(next(keys), NETWIDTH, NETWIDTH)
    p["bottleneck_b"] = bias(next(keys), NETWIDTH, NETWIDTH)
    p["density_w"] = xavier(next(keys), NETWIDTH, NUM_DENSITY_CHANNELS)
    p["density_b"] = bias(next(keys), NETWIDTH, NUM_DENSITY_CHANNELS)
    p["rgb_w"] = xavier(next(keys), NETWIDTH_CONDITION, NUM_RGB_CHANNELS)
    p["rgb_b"] = bias(next(keys), NETWIDTH_CONDITION, NUM_RGB_CHANNELS)
    return p


def prepare_mlp_params(raw):
    """Pack raw params into the kernel layout: bf16 weights, f32 biases,
    contraction dims padded 63->64 / 27->32 (zero rows, math unchanged),
    density head fused into column NETWIDTH of a (256, BD_WIDTH) weight.
    NOTE: the skip/view splits assume torch's cat([h, inputs]) / cat([bottleneck, cond])
    order — reorder if loading pretrained weights with a different convention."""
    bf = jnp.bfloat16

    def pad_rows(w, rows):
        return jnp.pad(w, ((0, rows - w.shape[0]), (0, 0)))

    pts_w, pts_b = raw["pts_w"], raw["pts_b"]
    params = [pad_rows(pts_w[0], POS_PAD).astype(bf), pts_b[0]]
    for idx in range(1, 5):
        params += [pts_w[idx].astype(bf), pts_b[idx]]
    w5 = pts_w[5]
    params += [w5[:NETWIDTH].astype(bf),
               pad_rows(w5[NETWIDTH:], POS_PAD).astype(bf),
               pts_b[5]]
    for idx in range(6, 8):
        params += [pts_w[idx].astype(bf), pts_b[idx]]
    # fused bottleneck + density head
    wbd = jnp.zeros((NETWIDTH, BD_WIDTH), jnp.float32)
    wbd = wbd.at[:, :NETWIDTH].set(raw["bottleneck_w"])
    wbd = wbd.at[:, NETWIDTH:NETWIDTH + NUM_DENSITY_CHANNELS].set(raw["density_w"])
    bbd = jnp.zeros((1, BD_WIDTH), jnp.float32)
    bbd = bbd.at[:, :NETWIDTH].set(raw["bottleneck_b"])
    bbd = bbd.at[:, NETWIDTH:NETWIDTH + NUM_DENSITY_CHANNELS].set(raw["density_b"])
    params += [wbd.astype(bf), bbd]
    # view branch split
    wv = raw["views_w"]
    params += [wv[:NETWIDTH].astype(bf),
               pad_rows(wv[NETWIDTH:], VIEW_PAD).astype(bf),
               raw["views_b"]]
    params += [raw["rgb_w"].astype(bf), raw["rgb_b"]]
    return params


# -----------------------------------------------------------------------------
# NeRF helpers (plain JAX glue, matching the torch helpers)
# -----------------------------------------------------------------------------
def pos_enc(x, min_deg, max_deg):
    scales = jnp.asarray([2.0 ** i for i in range(min_deg, max_deg)], jnp.float32)
    xb = (x[..., None, :] * scales[:, None]).reshape(x.shape[:-1] + (-1,))
    four_feat = jnp.sin(jnp.concatenate([xb, xb + 0.5 * jnp.pi], axis=-1))
    return jnp.concatenate([x, four_feat], axis=-1)


def sample_along_rays(rays_o, rays_d, num_samples, near, far, randomized, lindisp):
    bsz = rays_o.shape[0]
    t_vals = jnp.linspace(0.0, 1.0, num_samples)
    if lindisp:
        t_vals = 1.0 / (1.0 / near * (1.0 - t_vals) + 1.0 / far * t_vals)
    else:
        t_vals = near * (1.0 - t_vals) + far * t_vals
    # randomized=False path (stratified sampling not used in this demo)
    t_vals = jnp.broadcast_to(t_vals, (bsz, num_samples))
    coords = rays_o[..., None, :] + t_vals[..., None] * rays_d[..., None, :]
    return t_vals, coords


def sorted_piecewise_constant_pdf(bins, weights, num_samples, randomized):
    eps = 1e-5
    weight_sum = weights.sum(axis=-1, keepdims=True)
    padding = jnp.maximum(0.0, eps - weight_sum)
    weights = weights + padding / weights.shape[-1]
    weight_sum = weight_sum + padding

    pdf = weights / weight_sum
    cdf = jnp.minimum(1.0, jnp.cumsum(pdf[..., :-1], axis=-1))
    cdf = jnp.concatenate(
        [jnp.zeros_like(cdf[..., :1]), cdf, jnp.ones_like(cdf[..., :1])], axis=-1)

    # randomized=False path
    u = jnp.linspace(0.0, 1.0 - jnp.finfo(jnp.float32).eps, num_samples)
    u = jnp.broadcast_to(u, cdf.shape[:-1] + (num_samples,))

    mask = u[..., None, :] >= cdf[..., :, None]

    def find_interval(x):
        x0 = jnp.max(jnp.where(mask, x[..., None], x[..., :1, None]), axis=-2)
        x1 = jnp.min(jnp.where(~mask, x[..., None], x[..., -1:, None]), axis=-2)
        return x0, x1

    bins_g0, bins_g1 = find_interval(bins)
    cdf_g0, cdf_g1 = find_interval(cdf)

    t = jnp.clip(jnp.nan_to_num((u - cdf_g0) / (cdf_g1 - cdf_g0), nan=0.0), 0.0, 1.0)
    samples = bins_g0 + t * (bins_g1 - bins_g0)
    return samples


def sample_pdf(bins, weights, origins, directions, t_vals, num_samples, randomized):
    t_samples = sorted_piecewise_constant_pdf(bins, weights, num_samples, randomized)
    t_samples = jax.lax.stop_gradient(t_samples)
    t_vals = jnp.sort(jnp.concatenate([t_vals, t_samples], axis=-1), axis=-1)
    coords = origins[..., None, :] + t_vals[..., None] * directions[..., None, :]
    return t_vals, coords


def volumetric_rendering(rgb, sigma, t_vals, dirs, white_bkgd):
    eps = 1e-10
    dists = t_vals[..., 1:] - t_vals[..., :-1]
    dists = jnp.concatenate([dists, jnp.full_like(dists[..., :1], 1e10)], axis=-1)
    dists = dists * jnp.linalg.norm(dirs[..., None, :], axis=-1)
    alpha = 1.0 - jnp.exp(-sigma[..., 0] * dists)
    accum_prod = jnp.concatenate(
        [jnp.ones_like(alpha[..., :1]),
         jnp.cumprod(1.0 - alpha[..., :-1] + eps, axis=-1)], axis=-1)
    weights = alpha * accum_prod
    comp_rgb = (weights[..., None] * rgb).sum(axis=-2)
    depth = (weights * t_vals).sum(axis=-1)
    acc = weights.sum(axis=-1)
    if white_bkgd:
        comp_rgb = comp_rgb + (1.0 - acc[..., None])
    return comp_rgb, depth, acc, weights


# -----------------------------------------------------------------------------
# NeRF.forward
# -----------------------------------------------------------------------------
def nerf_forward(coarse_params, fine_params, rays, randomized, white_bkgd, near, far):
    ret = []
    weights = None
    t_vals = None
    for i_level in range(2):  # num_levels = 2
        if i_level == 0:
            t_vals, samples = sample_along_rays(
                rays_o=rays["rays_o"], rays_d=rays["rays_d"],
                num_samples=NUM_COARSE_SAMPLES, near=near, far=far,
                randomized=randomized, lindisp=LINDISP)
            mlp_params = coarse_params
        else:
            t_mids = 0.5 * (t_vals[..., 1:] + t_vals[..., :-1])
            t_vals, samples = sample_pdf(
                bins=t_mids, weights=weights[..., 1:-1],
                origins=rays["rays_o"], directions=rays["rays_d"],
                t_vals=t_vals, num_samples=NUM_FINE_SAMPLES, randomized=randomized)
            mlp_params = fine_params

        samples_enc = pos_enc(samples, MIN_DEG_POINT, MAX_DEG_POINT)
        viewdirs_enc = pos_enc(rays["viewdirs"], 0, DEG_VIEW)

        raw_rgb, raw_sigma = nerf_mlp_apply(mlp_params, samples_enc, viewdirs_enc)

        # noise_std = 0.0 -> no noise added
        rgb = jax.nn.sigmoid(raw_rgb)
        sigma = jax.nn.relu(raw_sigma)

        comp_rgb, depth, acc, weights = volumetric_rendering(
            rgb, sigma, t_vals, rays["rays_d"], white_bkgd=white_bkgd)
        ret.append((comp_rgb, depth, acc))
    return ret


# -----------------------------------------------------------------------------
# Demo
# -----------------------------------------------------------------------------
if __name__ == "__main__":
    key = jax.random.PRNGKey(0)
    k_co, k_fi, k_o, k_d = jax.random.split(key, 4)

    coarse_params = prepare_mlp_params(init_nerf_mlp_params(k_co))
    fine_params = prepare_mlp_params(init_nerf_mlp_params(k_fi))

    num_rays = 4
    rays_o = jax.random.normal(k_o, (num_rays, 3), jnp.float32)
    rays_d = jax.random.normal(k_d, (num_rays, 3), jnp.float32)
    viewdirs = rays_d / jnp.linalg.norm(rays_d, axis=-1, keepdims=True)
    rays = {"rays_o": rays_o, "rays_d": rays_d, "viewdirs": viewdirs}

    near = jnp.full((num_rays, 1), 2.0, jnp.float32)
    far = jnp.full((num_rays, 1), 6.0, jnp.float32)

    out = nerf_forward(coarse_params, fine_params, rays,
                       randomized=False, white_bkgd=True, near=near, far=far)
    jax.block_until_ready(out)

    (c_rgb, c_depth, c_acc), (f_rgb, f_depth, f_acc) = out
    assert c_rgb.shape == (num_rays, 3) and c_depth.shape == (num_rays,)
    assert f_rgb.shape == (num_rays, 3) and f_acc.shape == (num_rays,)
    assert bool(jnp.all(jnp.isfinite(c_rgb))) and bool(jnp.all(jnp.isfinite(f_rgb)))
    print("KERNEL_OK")
</pallas_src>

<mosaic_0001>
module attributes {stable_mosaic.version = 11 : i64} {
  func.func @nerf_mlp_kernel(%arg0: i32, %arg1: memref<128x64xbf16, #tpu.memory_space<vmem>>, %arg2: memref<128x32xbf16, #tpu.memory_space<vmem>>, %arg3: memref<64x256xbf16, #tpu.memory_space<vmem>>, %arg4: memref<1x256xf32, #tpu.memory_space<vmem>>, %arg5: memref<256x256xbf16, #tpu.memory_space<vmem>>, %arg6: memref<1x256xf32, #tpu.memory_space<vmem>>, %arg7: memref<256x256xbf16, #tpu.memory_space<vmem>>, %arg8: memref<1x256xf32, #tpu.memory_space<vmem>>, %arg9: memref<256x256xbf16, #tpu.memory_space<vmem>>, %arg10: memref<1x256xf32, #tpu.memory_space<vmem>>, %arg11: memref<256x256xbf16, #tpu.memory_space<vmem>>, %arg12: memref<1x256xf32, #tpu.memory_space<vmem>>, %arg13: memref<256x256xbf16, #tpu.memory_space<vmem>>, %arg14: memref<64x256xbf16, #tpu.memory_space<vmem>>, %arg15: memref<1x256xf32, #tpu.memory_space<vmem>>, %arg16: memref<256x256xbf16, #tpu.memory_space<vmem>>, %arg17: memref<1x256xf32, #tpu.memory_space<vmem>>, %arg18: memref<256x256xbf16, #tpu.memory_space<vmem>>, %arg19: memref<1x256xf32, #tpu.memory_space<vmem>>, %arg20: memref<256x384xbf16, #tpu.memory_space<vmem>>, %arg21: memref<1x384xf32, #tpu.memory_space<vmem>>, %arg22: memref<256x128xbf16, #tpu.memory_space<vmem>>, %arg23: memref<32x128xbf16, #tpu.memory_space<vmem>>, %arg24: memref<1x128xf32, #tpu.memory_space<vmem>>, %arg25: memref<128x3xbf16, #tpu.memory_space<vmem>>, %arg26: memref<1x3xf32, #tpu.memory_space<vmem>>, %arg27: memref<128x8xf32, #tpu.memory_space<vmem>>) attributes {dimension_semantics = [#tpu.dimension_semantics<parallel>], iteration_bounds = array<i64: 1>, scalar_prefetch = 0 : i64, scratch_operands = 0 : i64, tpu.core_type = #tpu.core_type<tc>, window_params = [{transform_indices = @transform_0, window_bounds = array<i64: 128, 64>}, {transform_indices = @transform_1, window_bounds = array<i64: 128, 32>}, {pipeline_mode = #tpu.pipeline_mode<synchronous>, transform_indices = @transform_2, window_bounds = array<i64: 64, 256>}, {pipeline_mode = #tpu.pipeline_mode<synchronous>, transform_indices = @transform_3, window_bounds = array<i64: 1, 256>}, {pipeline_mode = #tpu.pipeline_mode<synchronous>, transform_indices = @transform_4, window_bounds = array<i64: 256, 256>}, {pipeline_mode = #tpu.pipeline_mode<synchronous>, transform_indices = @transform_5, window_bounds = array<i64: 1, 256>}, {pipeline_mode = #tpu.pipeline_mode<synchronous>, transform_indices = @transform_6, window_bounds = array<i64: 256, 256>}, {pipeline_mode = #tpu.pipeline_mode<synchronous>, transform_indices = @transform_7, window_bounds = array<i64: 1, 256>}, {pipeline_mode = #tpu.pipeline_mode<synchronous>, transform_indices = @transform_8, window_bounds = array<i64: 256, 256>}, {pipeline_mode = #tpu.pipeline_mode<synchronous>, transform_indices = @transform_9, window_bounds = array<i64: 1, 256>}, {pipeline_mode = #tpu.pipeline_mode<synchronous>, transform_indices = @transform_10, window_bounds = array<i64: 256, 256>}, {pipeline_mode = #tpu.pipeline_mode<synchronous>, transform_indices = @transform_11, window_bounds = array<i64: 1, 256>}, {pipeline_mode = #tpu.pipeline_mode<synchronous>, transform_indices = @transform_12, window_bounds = array<i64: 256, 256>}, {pipeline_mode = #tpu.pipeline_mode<synchronous>, transform_indices = @transform_13, window_bounds = array<i64: 64, 256>}, {pipeline_mode = #tpu.pipeline_mode<synchronous>, transform_indices = @transform_14, window_bounds = array<i64: 1, 256>}, {pipeline_mode = #tpu.pipeline_mode<synchronous>, transform_indices = @transform_15, window_bounds = array<i64: 256, 256>}, {pipeline_mode = #tpu.pipeline_mode<synchronous>, transform_indices = @transform_16, window_bounds = array<i64: 1, 256>}, {pipeline_mode = #tpu.pipeline_mode<synchronous>, transform_indices = @transform_17, window_bounds = array<i64: 256, 256>}, {pipeline_mode = #tpu.pipeline_mode<synchronous>, transform_indices = @transform_18, window_bounds = array<i64: 1, 256>}, {pipeline_mode = #tpu.pipeline_mode<synchronous>, transform_indices = @transform_19, window_bounds = array<i64: 256, 384>}, {pipeline_mode = #tpu.pipeline_mode<synchronous>, transform_indices = @transform_20, window_bounds = array<i64: 1, 384>}, {pipeline_mode = #tpu.pipeline_mode<synchronous>, transform_indices = @transform_21, window_bounds = array<i64: 256, 128>}, {pipeline_mode = #tpu.pipeline_mode<synchronous>, transform_indices = @transform_22, window_bounds = array<i64: 32, 128>}, {pipeline_mode = #tpu.pipeline_mode<synchronous>, transform_indices = @transform_23, window_bounds = array<i64: 1, 128>}, {pipeline_mode = #tpu.pipeline_mode<synchronous>, transform_indices = @transform_24, window_bounds = array<i64: 128, 3>}, {pipeline_mode = #tpu.pipeline_mode<synchronous>, transform_indices = @transform_25, window_bounds = array<i64: 1, 3>}, {transform_indices = @transform_26, window_bounds = array<i64: 128, 8>}]} {
    %c0 = arith.constant 0 : index
    %c0_0 = arith.constant 0 : index
    %0 = vector.load %arg1[%c0, %c0_0] : memref<128x64xbf16, #tpu.memory_space<vmem>>, vector<128x64xbf16>
    %c0_1 = arith.constant 0 : index
    %c0_2 = arith.constant 0 : index
    %1 = vector.load %arg2[%c0_1, %c0_2] : memref<128x32xbf16, #tpu.memory_space<vmem>>, vector<128x32xbf16>
    %c0_3 = arith.constant 0 : index
    %c0_4 = arith.constant 0 : index
    %2 = vector.load %arg3[%c0_3, %c0_4] : memref<64x256xbf16, #tpu.memory_space<vmem>>, vector<64x256xbf16>
    %cst = arith.constant dense<0.000000e+00> : vector<128x256xf32>
    %3 = tpu.matmul %0, %2, %cst {dimension_numbers = #tpu.dot_dimension_numbers<[1], [0], [0], [1], [0, 0, 1, 1], [], []>} : vector<128x64xbf16>, vector<64x256xbf16>, vector<128x256xf32> -> vector<128x256xf32>
    %c0_5 = arith.constant 0 : index
    %c0_6 = arith.constant 0 : index
    %4 = vector.load %arg4[%c0_5, %c0_6] : memref<1x256xf32, #tpu.memory_space<vmem>>, vector<1x256xf32>
    %5 = vector.broadcast %4 : vector<1x256xf32> to vector<128x256xf32>
    %6 = arith.addf %3, %5 : vector<128x256xf32>
    %cst_7 = arith.constant 0.000000e+00 : f32
    %7 = vector.broadcast %cst_7 : f32 to vector<128x256xf32>
    %8 = arith.maximumf %6, %7 : vector<128x256xf32>
    %9 = arith.truncf %8 : vector<128x256xf32> to vector<128x256xbf16>
    %c0_8 = arith.constant 0 : index
    %c0_9 = arith.constant 0 : index
    %10 = vector.load %arg5[%c0_8, %c0_9] : memref<256x256xbf16, #tpu.memory_space<vmem>>, vector<256x256xbf16>
    %cst_10 = arith.constant dense<0.000000e+00> : vector<128x256xf32>
    %11 = tpu.matmul %9, %10, %cst_10 {dimension_numbers = #tpu.dot_dimension_numbers<[1], [0], [0], [1], [0, 0, 1, 1], [], []>} : vector<128x256xbf16>, vector<256x256xbf16>, vector<128x256xf32> -> vector<128x256xf32>
    %c0_11 = arith.constant 0 : index
    %c0_12 = arith.constant 0 : index
    %12 = vector.load %arg6[%c0_11, %c0_12] : memref<1x256xf32, #tpu.memory_space<vmem>>, vector<1x256xf32>
    %13 = vector.broadcast %12 : vector<1x256xf32> to vector<128x256xf32>
    %14 = arith.addf %11, %13 : vector<128x256xf32>
    %cst_13 = arith.constant 0.000000e+00 : f32
    %15 = vector.broadcast %cst_13 : f32 to vector<128x256xf32>
    %16 = arith.maximumf %14, %15 : vector<128x256xf32>
    %17 = arith.truncf %16 : vector<128x256xf32> to vector<128x256xbf16>
    %c0_14 = arith.constant 0 : index
    %c0_15 = arith.constant 0 : index
    %18 = vector.load %arg7[%c0_14, %c0_15] : memref<256x256xbf16, #tpu.memory_space<vmem>>, vector<256x256xbf16>
    %cst_16 = arith.constant dense<0.000000e+00> : vector<128x256xf32>
    %19 = tpu.matmul %17, %18, %cst_16 {dimension_numbers = #tpu.dot_dimension_numbers<[1], [0], [0], [1], [0, 0, 1, 1], [], []>} : vector<128x256xbf16>, vector<256x256xbf16>, vector<128x256xf32> -> vector<128x256xf32>
    %c0_17 = arith.constant 0 : index
    %c0_18 = arith.constant 0 : index
    %20 = vector.load %arg8[%c0_17, %c0_18] : memref<1x256xf32, #tpu.memory_space<vmem>>, vector<1x256xf32>
    %21 = vector.broadcast %20 : vector<1x256xf32> to vector<128x256xf32>
    %22 = arith.addf %19, %21 : vector<128x256xf32>
    %cst_19 = arith.constant 0.000000e+00 : f32
    %23 = vector.broadcast %cst_19 : f32 to vector<128x256xf32>
    %24 = arith.maximumf %22, %23 : vector<128x256xf32>
    %25 = arith.truncf %24 : vector<128x256xf32> to vector<128x256xbf16>
    %c0_20 = arith.constant 0 : index
    %c0_21 = arith.constant 0 : index
    %26 = vector.load %arg9[%c0_20, %c0_21] : memref<256x256xbf16, #tpu.memory_space<vmem>>, vector<256x256xbf16>
    %cst_22 = arith.constant dense<0.000000e+00> : vector<128x256xf32>
    %27 = tpu.matmul %25, %26, %cst_22 {dimension_numbers = #tpu.dot_dimension_numbers<[1], [0], [0], [1], [0, 0, 1, 1], [], []>} : vector<128x256xbf16>, vector<256x256xbf16>, vector<128x256xf32> -> vector<128x256xf32>
    %c0_23 = arith.constant 0 : index
    %c0_24 = arith.constant 0 : index
    %28 = vector.load %arg10[%c0_23, %c0_24] : memref<1x256xf32, #tpu.memory_space<vmem>>, vector<1x256xf32>
    %29 = vector.broadcast %28 : vector<1x256xf32> to vector<128x256xf32>
    %30 = arith.addf %27, %29 : vector<128x256xf32>
    %cst_25 = arith.constant 0.000000e+00 : f32
    %31 = vector.broadcast %cst_25 : f32 to vector<128x256xf32>
    %32 = arith.maximumf %30, %31 : vector<128x256xf32>
    %33 = arith.truncf %32 : vector<128x256xf32> to vector<128x256xbf16>
    %c0_26 = arith.constant 0 : index
    %c0_27 = arith.constant 0 : index
    %34 = vector.load %arg11[%c0_26, %c0_27] : memref<256x256xbf16, #tpu.memory_space<vmem>>, vector<256x256xbf16>
    %cst_28 = arith.constant dense<0.000000e+00> : vector<128x256xf32>
    %35 = tpu.matmul %33, %34, %cst_28 {dimension_numbers = #tpu.dot_dimension_numbers<[1], [0], [0], [1], [0, 0, 1, 1], [], []>} : vector<128x256xbf16>, vector<256x256xbf16>, vector<128x256xf32> -> vector<128x256xf32>
    %c0_29 = arith.constant 0 : index
    %c0_30 = arith.constant 0 : index
    %36 = vector.load %arg12[%c0_29, %c0_30] : memref<1x256xf32, #tpu.memory_space<vmem>>, vector<1x256xf32>
    %37 = vector.broadcast %36 : vector<1x256xf32> to vector<128x256xf32>
    %38 = arith.addf %35, %37 : vector<128x256xf32>
    %cst_31 = arith.constant 0.000000e+00 : f32
    %39 = vector.broadcast %cst_31 : f32 to vector<128x256xf32>
    %40 = arith.maximumf %38, %39 : vector<128x256xf32>
    %41 = arith.truncf %40 : vector<128x256xf32> to vector<128x256xbf16>
    %c0_32 = arith.constant 0 : index
    %c0_33 = arith.constant 0 : index
    %42 = vector.load %arg13[%c0_32, %c0_33] : memref<256x256xbf16, #tpu.memory_space<vmem>>, vector<256x256xbf16>
    %cst_34 = arith.constant dense<0.000000e+00> : vector<128x256xf32>
    %43 = tpu.matmul %41, %42, %cst_34 {dimension_numbers = #tpu.dot_dimension_numbers<[1], [0], [0], [1], [0, 0, 1, 1], [], []>} : vector<128x256xbf16>, vector<256x256xbf16>, vector<128x256xf32> -> vector<128x256xf32>
    %c0_35 = arith.constant 0 : index
    %c0_36 = arith.constant 0 : index
    %44 = vector.load %arg14[%c0_35, %c0_36] : memref<64x256xbf16, #tpu.memory_space<vmem>>, vector<64x256xbf16>
    %cst_37 = arith.constant dense<0.000000e+00> : vector<128x256xf32>
    %45 = tpu.matmul %0, %44, %cst_37 {dimension_numbers = #tpu.dot_dimension_numbers<[1], [0], [0], [1], [0, 0, 1, 1], [], []>} : vector<128x64xbf16>, vector<64x256xbf16>, vector<128x256xf32> -> vector<128x256xf32>
    %46 = arith.addf %43, %45 : vector<128x256xf32>
    %c0_38 = arith.constant 0 : index
    %c0_39 = arith.constant 0 : index
    %47 = vector.load %arg15[%c0_38, %c0_39] : memref<1x256xf32, #tpu.memory_space<vmem>>, vector<1x256xf32>
    %48 = vector.broadcast %47 : vector<1x256xf32> to vector<128x256xf32>
    %49 = arith.addf %46, %48 : vector<128x256xf32>
    %cst_40 = arith.constant 0.000000e+00 : f32
    %50 = vector.broadcast %cst_40 : f32 to vector<128x256xf32>
    %51 = arith.maximumf %49, %50 : vector<128x256xf32>
    %52 = arith.truncf %51 : vector<128x256xf32> to vector<128x256xbf16>
    %c0_41 = arith.constant 0 : index
    %c0_42 = arith.constant 0 : index
    %53 = vector.load %arg16[%c0_41, %c0_42] : memref<256x256xbf16, #tpu.memory_space<vmem>>, vector<256x256xbf16>
    %cst_43 = arith.constant dense<0.000000e+00> : vector<128x256xf32>
    %54 = tpu.matmul %52, %53, %cst_43 {dimension_numbers = #tpu.dot_dimension_numbers<[1], [0], [0], [1], [0, 0, 1, 1], [], []>} : vector<128x256xbf16>, vector<256x256xbf16>, vector<128x256xf32> -> vector<128x256xf32>
    %c0_44 = arith.constant 0 : index
    %c0_45 = arith.constant 0 : index
    %55 = vector.load %arg17[%c0_44, %c0_45] : memref<1x256xf32, #tpu.memory_space<vmem>>, vector<1x256xf32>
    %56 = vector.broadcast %55 : vector<1x256xf32> to vector<128x256xf32>
    %57 = arith.addf %54, %56 : vector<128x256xf32>
    %cst_46 = arith.constant 0.000000e+00 : f32
    %58 = vector.broadcast %cst_46 : f32 to vector<128x256xf32>
    %59 = arith.maximumf %57, %58 : vector<128x256xf32>
    %60 = arith.truncf %59 : vector<128x256xf32> to vector<128x256xbf16>
    %c0_47 = arith.constant 0 : index
    %c0_48 = arith.constant 0 : index
    %61 = vector.load %arg18[%c0_47, %c0_48] : memref<256x256xbf16, #tpu.memory_space<vmem>>, vector<256x256xbf16>
    %cst_49 = arith.constant dense<0.000000e+00> : vector<128x256xf32>
    %62 = tpu.matmul %60, %61, %cst_49 {dimension_numbers = #tpu.dot_dimension_numbers<[1], [0], [0], [1], [0, 0, 1, 1], [], []>} : vector<128x256xbf16>, vector<256x256xbf16>, vector<128x256xf32> -> vector<128x256xf32>
    %c0_50 = arith.constant 0 : index
    %c0_51 = arith.constant 0 : index
    %63 = vector.load %arg19[%c0_50, %c0_51] : memref<1x256xf32, #tpu.memory_space<vmem>>, vector<1x256xf32>
    %64 = vector.broadcast %63 : vector<1x256xf32> to vector<128x256xf32>
    %65 = arith.addf %62, %64 : vector<128x256xf32>
    %cst_52 = arith.constant 0.000000e+00 : f32
    %66 = vector.broadcast %cst_52 : f32 to vector<128x256xf32>
    %67 = arith.maximumf %65, %66 : vector<128x256xf32>
    %68 = arith.truncf %67 : vector<128x256xf32> to vector<128x256xbf16>
    %c0_53 = arith.constant 0 : index
    %c0_54 = arith.constant 0 : index
    %69 = vector.load %arg20[%c0_53, %c0_54] : memref<256x384xbf16, #tpu.memory_space<vmem>>, vector<256x384xbf16>
    %cst_55 = arith.constant dense<0.000000e+00> : vector<128x384xf32>
    %70 = tpu.matmul %68, %69, %cst_55 {dimension_numbers = #tpu.dot_dimension_numbers<[1], [0], [0], [1], [0, 0, 1, 1], [], []>} : vector<128x256xbf16>, vector<256x384xbf16>, vector<128x384xf32> -> vector<128x384xf32>
    %c0_56 = arith.constant 0 : index
    %c0_57 = arith.constant 0 : index
    %71 = vector.load %arg21[%c0_56, %c0_57] : memref<1x384xf32, #tpu.memory_space<vmem>>, vector<1x384xf32>
    %72 = vector.broadcast %71 : vector<1x384xf32> to vector<128x384xf32>
    %73 = arith.addf %70, %72 : vector<128x384xf32>
    %74 = vector.extract_strided_slice %73 {offsets = [0, 0], sizes = [128, 256], strides = [1, 1]} : vector<128x384xf32> to vector<128x256xf32>
    %75 = vector.extract_strided_slice %73 {offsets = [0, 256], sizes = [128, 1], strides = [1, 1]} : vector<128x384xf32> to vector<128x1xf32>
    %76 = arith.truncf %74 : vector<128x256xf32> to vector<128x256xbf16>
    %c0_58 = arith.constant 0 : index
    %c0_59 = arith.constant 0 : index
    %77 = vector.load %arg22[%c0_58, %c0_59] : memref<256x128xbf16, #tpu.memory_space<vmem>>, vector<256x128xbf16>
    %cst_60 = arith.constant dense<0.000000e+00> : vector<128x128xf32>
    %78 = tpu.matmul %76, %77, %cst_60 {dimension_numbers = #tpu.dot_dimension_numbers<[1], [0], [0], [1], [0, 0, 1, 1], [], []>} : vector<128x256xbf16>, vector<256x128xbf16>, vector<128x128xf32> -> vector<128x128xf32>
    %c0_61 = arith.constant 0 : index
    %c0_62 = arith.constant 0 : index
    %79 = vector.load %arg23[%c0_61, %c0_62] : memref<32x128xbf16, #tpu.memory_space<vmem>>, vector<32x128xbf16>
    %cst_63 = arith.constant dense<0.000000e+00> : vector<128x128xf32>
    %80 = tpu.matmul %1, %79, %cst_63 {dimension_numbers = #tpu.dot_dimension_numbers<[1], [0], [0], [1], [0, 0, 1, 1], [], []>} : vector<128x32xbf16>, vector<32x128xbf16>, vector<128x128xf32> -> vector<128x128xf32>
    %81 = arith.addf %78, %80 : vector<128x128xf32>
    %c0_64 = arith.constant 0 : index
    %c0_65 = arith.constant 0 : index
    %82 = vector.load %arg24[%c0_64, %c0_65] : memref<1x128xf32, #tpu.memory_space<vmem>>, vector<1x128xf32>
    %83 = vector.broadcast %82 : vector<1x128xf32> to vector<128x128xf32>
    %84 = arith.addf %81, %83 : vector<128x128xf32>
    %cst_66 = arith.constant 0.000000e+00 : f32
    %85 = vector.broadcast %cst_66 : f32 to vector<128x128xf32>
    %86 = arith.maximumf %84, %85 : vector<128x128xf32>
    %87 = arith.truncf %86 : vector<128x128xf32> to vector<128x128xbf16>
    %c0_67 = arith.constant 0 : index
    %c0_68 = arith.constant 0 : index
    %88 = vector.load %arg25[%c0_67, %c0_68] : memref<128x3xbf16, #tpu.memory_space<vmem>>, vector<128x3xbf16>
    %cst_69 = arith.constant dense<0.000000e+00> : vector<128x3xf32>
    %89 = tpu.matmul %87, %88, %cst_69 {dimension_numbers = #tpu.dot_dimension_numbers<[1], [0], [0], [1], [0, 0, 1, 1], [], []>} : vector<128x128xbf16>, vector<128x3xbf16>, vector<128x3xf32> -> vector<128x3xf32>
    %c0_70 = arith.constant 0 : index
    %c0_71 = arith.constant 0 : index
    %90 = vector.load %arg26[%c0_70, %c0_71] : memref<1x3xf32, #tpu.memory_space<vmem>>, vector<1x3xf32>
    %91 = vector.broadcast %90 : vector<1x3xf32> to vector<128x3xf32>
    %92 = arith.addf %89, %91 : vector<128x3xf32>
    %cst_72 = arith.constant 0.000000e+00 : f32
    %93 = vector.broadcast %cst_72 : f32 to vector<128x4xf32>
    %94 = tpu.concatenate %92, %75, %93 in 1 : vector<128x3xf32>, vector<128x1xf32>, vector<128x4xf32> -> vector<128x8xf32>
    %c0_73 = arith.constant 0 : index
    %c0_74 = arith.constant 0 : index
    %95 = vector.load %arg27[%c0_73, %c0_74] : memref<128x8xf32, #tpu.memory_space<vmem>>, vector<128x8xf32>
    tpu.vector_store %arg27[%c0_73, %c0_74], %94 {strides = array<i32>} : memref<128x8xf32, #tpu.memory_space<vmem>>, vector<128x8xf32>,
    return
  }
  func.func @transform_0(%arg0: i32) -> (i32, i32) {
    %c0_i32 = arith.constant 0 : i32
    %c0_i32_0 = arith.constant 0 : i32
    return %arg0, %c0_i32 : i32, i32
  }
  func.func @transform_1(%arg0: i32) -> (i32, i32) {
    %c0_i32 = arith.constant 0 : i32
    %c0_i32_0 = arith.constant 0 : i32
    return %arg0, %c0_i32 : i32, i32
  }
  func.func @transform_2(%arg0: i32) -> (i32, i32) {
    %c0_i32 = arith.constant 0 : i32
    %c0_i32_0 = arith.constant 0 : i32
    %c0_i32_1 = arith.constant 0 : i32
    return %c0_i32, %c0_i32_0 : i32, i32
  }
  func.func @transform_3(%arg0: i32) -> (i32, i32) {
    %c0_i32 = arith.constant 0 : i32
    %c0_i32_0 = arith.constant 0 : i32
    %c0_i32_1 = arith.constant 0 : i32
    return %c0_i32, %c0_i32_0 : i32, i32
  }
  func.func @transform_4(%arg0: i32) -> (i32, i32) {
    %c0_i32 = arith.constant 0 : i32
    %c0_i32_0 = arith.constant 0 : i32
    %c0_i32_1 = arith.constant 0 : i32
    return %c0_i32, %c0_i32_0 : i32, i32
  }
  func.func @transform_5(%arg0: i32) -> (i32, i32) {
    %c0_i32 = arith.constant 0 : i32
    %c0_i32_0 = arith.constant 0 : i32
    %c0_i32_1 = arith.constant 0 : i32
    return %c0_i32, %c0_i32_0 : i32, i32
  }
  func.func @transform_6(%arg0: i32) -> (i32, i32) {
    %c0_i32 = arith.constant 0 : i32
    %c0_i32_0 = arith.constant 0 : i32
    %c0_i32_1 = arith.constant 0 : i32
    return %c0_i32, %c0_i32_0 : i32, i32
  }
  func.func @transform_7(%arg0: i32) -> (i32, i32) {
    %c0_i32 = arith.constant 0 : i32
    %c0_i32_0 = arith.constant 0 : i32
    %c0_i32_1 = arith.constant 0 : i32
    return %c0_i32, %c0_i32_0 : i32, i32
  }
  func.func @transform_8(%arg0: i32) -> (i32, i32) {
    %c0_i32 = arith.constant 0 : i32
    %c0_i32_0 = arith.constant 0 : i32
    %c0_i32_1 = arith.constant 0 : i32
    return %c0_i32, %c0_i32_0 : i32, i32
  }
  func.func @transform_9(%arg0: i32) -> (i32, i32) {
    %c0_i32 = arith.constant 0 : i32
    %c0_i32_0 = arith.constant 0 : i32
    %c0_i32_1 = arith.constant 0 : i32
    return %c0_i32, %c0_i32_0 : i32, i32
  }
  func.func @transform_10(%arg0: i32) -> (i32, i32) {
    %c0_i32 = arith.constant 0 : i32
    %c0_i32_0 = arith.constant 0 : i32
    %c0_i32_1 = arith.constant 0 : i32
    return %c0_i32, %c0_i32_0 : i32, i32
  }
  func.func @transform_11(%arg0: i32) -> (i32, i32) {
    %c0_i32 = arith.constant 0 : i32
    %c0_i32_0 = arith.constant 0 : i32
    %c0_i32_1 = arith.constant 0 : i32
    return %c0_i32, %c0_i32_0 : i32, i32
  }
  func.func @transform_12(%arg0: i32) -> (i32, i32) {
    %c0_i32 = arith.constant 0 : i32
    %c0_i32_0 = arith.constant 0 : i32
    %c0_i32_1 = arith.constant 0 : i32
    return %c0_i32, %c0_i32_0 : i32, i32
  }
  func.func @transform_13(%arg0: i32) -> (i32, i32) {
    %c0_i32 = arith.constant 0 : i32
    %c0_i32_0 = arith.constant 0 : i32
    %c0_i32_1 = arith.constant 0 : i32
    return %c0_i32, %c0_i32_0 : i32, i32
  }
  func.func @transform_14(%arg0: i32) -> (i32, i32) {
    %c0_i32 = arith.constant 0 : i32
    %c0_i32_0 = arith.constant 0 : i32
    %c0_i32_1 = arith.constant 0 : i32
    return %c0_i32, %c0_i32_0 : i32, i32
  }
  func.func @transform_15(%arg0: i32) -> (i32, i32) {
    %c0_i32 = arith.constant 0 : i32
    %c0_i32_0 = arith.constant 0 : i32
    %c0_i32_1 = arith.constant 0 : i32
    return %c0_i32, %c0_i32_0 : i32, i32
  }
  func.func @transform_16(%arg0: i32) -> (i32, i32) {
    %c0_i32 = arith.constant 0 : i32
    %c0_i32_0 = arith.constant 0 : i32
    %c0_i32_1 = arith.constant 0 : i32
    return %c0_i32, %c0_i32_0 : i32, i32
  }
  func.func @transform_17(%arg0: i32) -> (i32, i32) {
    %c0_i32 = arith.constant 0 : i32
    %c0_i32_0 = arith.constant 0 : i32
    %c0_i32_1 = arith.constant 0 : i32
    return %c0_i32, %c0_i32_0 : i32, i32
  }
  func.func @transform_18(%arg0: i32) -> (i32, i32) {
    %c0_i32 = arith.constant 0 : i32
    %c0_i32_0 = arith.constant 0 : i32
    %c0_i32_1 = arith.constant 0 : i32
    return %c0_i32, %c0_i32_0 : i32, i32
  }
  func.func @transform_19(%arg0: i32) -> (i32, i32) {
    %c0_i32 = arith.constant 0 : i32
    %c0_i32_0 = arith.constant 0 : i32
    %c0_i32_1 = arith.constant 0 : i32
    return %c0_i32, %c0_i32_0 : i32, i32
  }
  func.func @transform_20(%arg0: i32) -> (i32, i32) {
    %c0_i32 = arith.constant 0 : i32
    %c0_i32_0 = arith.constant 0 : i32
    %c0_i32_1 = arith.constant 0 : i32
    return %c0_i32, %c0_i32_0 : i32, i32
  }
  func.func @transform_21(%arg0: i32) -> (i32, i32) {
    %c0_i32 = arith.constant 0 : i32
    %c0_i32_0 = arith.constant 0 : i32
    %c0_i32_1 = arith.constant 0 : i32
    return %c0_i32, %c0_i32_0 : i32, i32
  }
  func.func @transform_22(%arg0: i32) -> (i32, i32) {
    %c0_i32 = arith.constant 0 : i32
    %c0_i32_0 = arith.constant 0 : i32
    %c0_i32_1 = arith.constant 0 : i32
    return %c0_i32, %c0_i32_0 : i32, i32
  }
  func.func @transform_23(%arg0: i32) -> (i32, i32) {
    %c0_i32 = arith.constant 0 : i32
    %c0_i32_0 = arith.constant 0 : i32
    %c0_i32_1 = arith.constant 0 : i32
    return %c0_i32, %c0_i32_0 : i32, i32
  }
  func.func @transform_24(%arg0: i32) -> (i32, i32) {
    %c0_i32 = arith.constant 0 : i32
    %c0_i32_0 = arith.constant 0 : i32
    %c0_i32_1 = arith.constant 0 : i32
    return %c0_i32, %c0_i32_0 : i32, i32
  }
  func.func @transform_25(%arg0: i32) -> (i32, i32) {
    %c0_i32 = arith.constant 0 : i32
    %c0_i32_0 = arith.constant 0 : i32
    %c0_i32_1 = arith.constant 0 : i32
    return %c0_i32, %c0_i32_0 : i32, i32
  }
  func.func @transform_26(%arg0: i32) -> (i32, i32) {
    %c0_i32 = arith.constant 0 : i32
    %c0_i32_0 = arith.constant 0 : i32
    return %arg0, %c0_i32 : i32, i32
  }
}

</mosaic_0001>

<bundles_post_ra>
// kernel: tpu_custom_call.1
= control target key start
LH: loop header
LB: loop body
LE: loop exit
PB: predicated region body
PF: predicated region fallthrough
CT: control target
= control target key end

     0   :  { %s7231_s0 = inlined_call_operand.vmem [shape: bf16[128,64], index: 0, kind: input, shape index: {}]   ;;  %s7232_s1 = inlined_call_operand.vmem [shape: bf16[128,32], index: 1, kind: input, shape index: {}]   ;;  %s7233_s2 = inlined_call_operand.hbm [shape: bf16[64,256], index: 2, kind: input, shape index: {}]   ;;  %s7234_s3 = inlined_call_operand.hbm [shape: f32[1,256], index: 3, kind: input, shape index: {}]   ;;  %s7235_s4 = inlined_call_operand.hbm [shape: bf16[256,256], index: 4, kind: input, shape index: {}]   ;;  %s7236_s5 = inlined_call_operand.hbm [shape: f32[1,256], index: 5, kind: input, shape index: {}]   ;;  %s7237_s6 = inlined_call_operand.hbm [shape: bf16[256,256], index: 6, kind: input, shape index: {}]   ;;  %s7238_s7 = inlined_call_operand.hbm [shape: f32[1,256], index: 7, kind: input, shape index: {}]   ;;  %s7239_s8 = inlined_call_operand.vmem [shape: bf16[256,256], index: 8, kind: input, shape index: {}]   ;;  %s7240_s9 = inlined_call_operand.hbm [shape: f32[1,256], index: 9, kind: input, shape index: {}]   ;;  %s7241_s10 = inlined_call_operand.hbm [shape: bf16[256,256], index: 10, kind: input, shape index: {}]   ;;  %s7242_s11 = inlined_call_operand.vmem [shape: f32[1,256], index: 11, kind: input, shape index: {}]   ;;  %s7243_s12 = inlined_call_operand.hbm [shape: bf16[256,256], index: 12, kind: input, shape index: {}]   ;;  %s7244_s13 = inlined_call_operand.hbm [shape: bf16[64,256], index: 13, kind: input, shape index: {}]   ;;  %s7245_s14 = inlined_call_operand.hbm [shape: f32[1,256], index: 14, kind: input, shape index: {}]   ;;  %s7246_s15 = inlined_call_operand.hbm [shape: bf16[256,256], index: 15, kind: input, shape index: {}]   ;;  %s7247_s16 = inlined_call_operand.hbm [shape: f32[1,256], index: 16, kind: input, shape index: {}]   ;;  %s7248_s17 = inlined_call_operand.hbm [shape: bf16[256,256], index: 17, kind: input, shape index: {}]   ;;  %s7249_s18 = inlined_call_operand.hbm [shape: f32[1,256], index: 18, kind: input, shape index: {}]   ;;  %s7250_s19 = inlined_call_operand.hbm [shape: bf16[256,384], index: 19, kind: input, shape index: {}]   ;;  %s7251_s20 = inlined_call_operand.vmem [shape: f32[1,384], index: 20, kind: input, shape index: {}]   ;;  %s7252_s21 = inlined_call_operand.hbm [shape: bf16[256,128], index: 21, kind: input, shape index: {}]   ;;  %s7253_s22 = inlined_call_operand.vmem [shape: bf16[32,128], index: 22, kind: input, shape index: {}]   ;;  %s7254_s23 = inlined_call_operand.vmem [shape: f32[1,128], index: 23, kind: input, shape index: {}]   ;;  %s7255_s24 = inlined_call_operand.vmem [shape: bf16[128,3], index: 24, kind: input, shape index: {}]   ;;  %s7256_s25 = inlined_call_operand.vmem [shape: f32[1,3], index: 25, kind: input, shape index: {}]   ;;  %s7257_s26 = inlined_call_operand.vmem [shape: f32[128,8], index: 26, kind: output, shape index: {}]  }
   0x1   :  { %7261 = sst [smem:[#allocation37_spill]] %s7231_s0 }
   0x2   :  { %7262 = sst [smem:[#allocation38_spill]] %s7232_s1 }
   0x3   :  { %7263 = sst [smem:[#allocation39_spill]] %s7233_s2 }
   0x4   :  { %7264 = sst [smem:[#allocation40_spill]] %s7234_s3 }
   0x5   :  { %7265 = sst [smem:[#allocation41_spill]] %s7235_s4 }
   0x6   :  { %7266 = sst [smem:[#allocation42_spill]] %s7236_s5 }
   0x7   :  { %7267 = sst [smem:[#allocation43_spill]] %s7237_s6 }
   0x8   :  { %7268 = sst [smem:[#allocation44_spill]] %s7238_s7 }
   0x9   :  { %7269 = sst [smem:[#allocation45_spill]] %s7239_s8 }
   0xa   :  { %7270 = sst [smem:[#allocation46_spill]] %s7240_s9 }
   0xb   :  { %7271 = sst [smem:[#allocation47_spill]] %s7241_s10 }
   0xc   :  { %31 = vsyncpa [#allocation3], 0 }
   0xd   :  { %32 = vsyncpa [#allocation5], 0 }
   0xe   :  { %33 = vsyncpa [#allocation8], 0 }
   0xf   :  { %34 = vsyncpa [#allocation11], 0 }
  0x10   :  { %35 = vsyncpa [#allocation14], 0 }
  0x11   :  { %36 = vsyncpa [#allocation17], 0 }
  0x12   :  { %37 = vsyncpa [#allocation20], 0 }
  0x13   :  { %38 = vsyncpa [#allocation23], 0 }
  0x14   :  { %39 = vsyncpa [#allocation26], 0  ;;  %s6110_s27 = smov [#allocation4]   ;;  %s6111_s7 = smov [#allocation7]  }
  0x15   :  { %s62_s3 = sshll.u32 %s6110_s27, 4  ;;  %s84_s28 = sshll.u32 %s6111_s7, 4  ;;  %s63_s3 = int_to_ptr.vmem [resolvable:$true] %s62_s3  ;;  %s85_s28 = int_to_ptr.vmem [resolvable:$true] %s84_s28 }
  0x16   :  { %s5760_s8 = scalar_lea.vmem %s63_s3, 32  ;;  %p5765_p1 = scmp.lt.s32.totalorder %s63_s3, %s63_s3 }
  0x17   :  { %p5761_p0 = scmp.ne.s32.totalorder %s63_s3, %s5760_s8  ;;  %p5766_p2 = scmp.lt.s32.totalorder %s5760_s8, %s5760_s8 }
  0x19   :  { %p5767_p3 = por %p5766_p2, %p5765_p1 }
  0x1b   :  { %p5768_p4 = pnand %p5767_p3, %p5761_p0 }
  0x1d   :  { %5771 = shalt.err (!%p5768_p4)
}
  0x1e   :  { %s7272_s0 = sld [smem:[#allocation40_spill]]  ;;  %s5780_s9 = scalar_lea.vmem %s85_s28, 32 }
  0x1f   :  { %p5781_p5 = scmp.ne.s32.totalorder %s85_s28, %s5780_s9  ;;  %p5785_p6 = scmp.lt.s32.totalorder %s85_s28, %s85_s28 }
  0x20   :  { %p5786_p7 = scmp.lt.s32.totalorder %s5780_s9, %s5780_s9 }
  0x22   :  { %p5787_p8 = por %p5786_p7, %p5785_p6 }
  0x24   :  { %65 = dma.hbm_to_vmem [thread:$0]  %s7272_s0, 32, %s63_s3, [#allocation5]  }
  0x25   :  { %p5788_p9 = pnand %p5787_p8, %p5781_p5 }
  0x27   :  { %5791 = shalt.err (!%p5788_p9)
}
  0x28   :  { %s7273_s5 = sld [smem:[#allocation42_spill]]  ;;  %s6112_s10 = smov [#allocation10]  }
  0x29   :  { %s106_s6 = sshll.u32 %s6112_s10, 4  ;;  %s107_s6 = int_to_ptr.vmem [resolvable:$true] %s106_s6 }
  0x2a   :  { %s5800_s1 = scalar_lea.vmem %s107_s6, 32  ;;  %p5805_p11 = scmp.lt.s32.totalorder %s107_s6, %s107_s6 }
  0x2b   :  { %p5801_p10 = scmp.ne.s32.totalorder %s107_s6, %s5800_s1  ;;  %p5806_p12 = scmp.lt.s32.totalorder %s5800_s1, %s5800_s1 }
  0x2d   :  { %p5807_p13 = por %p5806_p12, %p5805_p11 }
  0x2e   :  { %87 = dma.hbm_to_vmem [thread:$0]  %s7273_s5, 32, %s85_s28, [#allocation8]  }
  0x2f   :  { %p5808_p0 = pnand %p5807_p13, %p5801_p10 }
  0x31   :  { %5811 = shalt.err (!%p5808_p0)
}
  0x32   :  { %s7274_s7 = sld [smem:[#allocation44_spill]]  ;;  %s6113_s8 = smov [#allocation13]  }
  0x33   :  { %s127_s4 = sshll.u32 %s6113_s8, 4  ;;  %s6114_s29 = smov [#allocation16]   ;;  %s128_s4 = int_to_ptr.vmem [resolvable:$true] %s127_s4 }
  0x34   :  { %s153_s0 = sshll.u32 %s6114_s29, 4  ;;  %s5820_s28 = scalar_lea.vmem %s128_s4, 4096  ;;  %s154_s0 = int_to_ptr.vmem [resolvable:$true] %s153_s0 }
  0x35   :  { %p5821_p1 = scmp.ne.s32.totalorder %s128_s4, %s5820_s28  ;;  %p5825_p2 = scmp.lt.s32.totalorder %s128_s4, %s128_s4 }
  0x36   :  { %p5826_p3 = scmp.lt.s32.totalorder %s5820_s28, %s5820_s28 }
  0x38   :  { %109 = dma.hbm_to_vmem [thread:$0]  %s7274_s7, 32, %s107_s6, [#allocation11]  }
  0x39   :  { %p5827_p4 = por %p5826_p3, %p5825_p2 }
  0x3b   :  { %p5828_p5 = pnand %p5827_p4, %p5821_p1 }
  0x3d   :  { %5831 = shalt.err (!%p5828_p5)
}
  0x3e   :  { %s6115_s9 = smov 128   ;;  %s6116_s30 = smov 8  }
  0x3f   :  { %s7275_s10 = sld [smem:[#allocation47_spill]]  ;;  %s5840_s6 = scalar_lea.vmem %s154_s0, 1024 }
  0x40   :  { %p5841_p6 = scmp.ne.s32.totalorder %s154_s0, %s5840_s6  ;;  %p5845_p7 = scmp.lt.s32.totalorder %s154_s0, %s154_s0 }
  0x41   :  { %p5846_p8 = scmp.lt.s32.totalorder %s5840_s6, %s5840_s6 }
  0x43   :  { %p5847_p9 = por %p5846_p8, %p5845_p7 }
  0x45   :  { %133 = dma.hbm_to_vmem [thread:$0]  %s7275_s10, 4096, %s128_s4, [#allocation14], %s6115_s9, %s6115_s9, %s6116_s30  }
  0x46   :  { %p5848_p10 = pnand %p5847_p9, %p5841_p6 }
  0x48   :  { %5851 = shalt.err (!%p5848_p10)
}
  0x49   :  { %159 = dma.hbm_to_vmem [thread:$0]  %s7244_s13, 1024, %s154_s0, [#allocation17], %s6115_s9, %s6115_s9, %s6116_s30  }
  0x4a   :  { %s6117_s3 = smov [#allocation19]   ;;  %s6118_s8 = smov [#allocation22]  }
  0x4b   :  { %s175_s7 = sshll.u32 %s6117_s3, 4  ;;  %s197_s4 = sshll.u32 %s6118_s8, 4  ;;  %s176_s7 = int_to_ptr.vmem [resolvable:$true] %s175_s7  ;;  %s198_s4 = int_to_ptr.vmem [resolvable:$true] %s197_s4 }
  0x4c   :  { %s5860_s29 = scalar_lea.vmem %s176_s7, 4096  ;;  %p5865_p12 = scmp.lt.s32.totalorder %s176_s7, %s176_s7 }
  0x4d   :  { %p5861_p11 = scmp.ne.s32.totalorder %s176_s7, %s5860_s29  ;;  %p5866_p13 = scmp.lt.s32.totalorder %s5860_s29, %s5860_s29 }
  0x4f   :  { %p5867_p0 = por %p5866_p13, %p5865_p12 }
  0x51   :  { %p5868_p1 = pnand %p5867_p0, %p5861_p11 }
  0x53   :  { %5871 = shalt.err (!%p5868_p1)
}
  0x54   :  { %181 = dma.hbm_to_vmem [thread:$0]  %s7246_s15, 4096, %s176_s7, [#allocation20], %s6115_s9, %s6115_s9, %s6116_s30  }
  0x55   :  { %s5880_s13 = scalar_lea.vmem %s198_s4, 4096  ;;  %p5885_p3 = scmp.lt.s32.totalorder %s198_s4, %s198_s4 }
  0x56   :  { %p5881_p2 = scmp.ne.s32.totalorder %s198_s4, %s5880_s13  ;;  %p5886_p4 = scmp.lt.s32.totalorder %s5880_s13, %s5880_s13 }
  0x58   :  { %p5887_p5 = por %p5886_p4, %p5885_p3 }
  0x5a   :  { %p5888_p6 = pnand %p5887_p5, %p5881_p2 }
  0x5c   :  { %5891 = shalt.err (!%p5888_p6)
}
  0x5d   :  { %203 = dma.hbm_to_vmem [thread:$0]  %s7248_s17, 4096, %s198_s4, [#allocation23], %s6115_s9, %s6115_s9, %s6116_s30  }
  0x5e   :  { %s6119_s10 = smov [#allocation25]  }
  0x5f   :  { %s219_s6 = sshll.u32 %s6119_s10, 4  ;;  %s220_s6 = int_to_ptr.vmem [resolvable:$true] %s219_s6 }
  0x60   :  { %s5900_s1 = scalar_lea.vmem %s220_s6, 6144  ;;  %p5905_p8 = scmp.lt.s32.totalorder %s220_s6, %s220_s6 }
  0x61   :  { %p5901_p7 = scmp.ne.s32.totalorder %s220_s6, %s5900_s1  ;;  %p5906_p9 = scmp.lt.s32.totalorder %s5900_s1, %s5900_s1 }
  0x63   :  { %p5907_p10 = por %p5906_p9, %p5905_p8 }
  0x65   :  { %p5908_p11 = pnand %p5907_p10, %p5901_p7 }
  0x67   :  { %5911 = shalt.err (!%p5908_p11)
}
  0x68   :  { %s6120_s15 = smov 192   ;;  %s6121_s27 = smov 12  }
  0x69   :  { %225 = dma.hbm_to_vmem [thread:$0]  %s7250_s19, 6144, %s220_s6, [#allocation26], %s6120_s15, %s6120_s15, %s6121_s27  }
  0x6a   :  { %s6122_s8 = smov [#allocation2]   ;;  %s6123_s28 = smov [#allocation6]  }
  0x6b   :  { %s49_s29 = sshll.u32 %s6122_s8, 4  ;;  %s71_s17 = sshll.u32 %s6123_s28, 4  ;;  %s50_s29 = int_to_ptr.vmem [resolvable:$true] %s49_s29  ;;  %s72_s17 = int_to_ptr.vmem [resolvable:$true] %s71_s17 }
  0x6c   :  { %s5920_s4 = scalar_lea.vmem %s50_s29, 1024  ;;  %p5925_p13 = scmp.lt.s32.totalorder %s50_s29, %s50_s29 }
  0x6d   :  { %p5921_p12 = scmp.ne.s32.totalorder %s50_s29, %s5920_s4  ;;  %p5926_p0 = scmp.lt.s32.totalorder %s5920_s4, %s5920_s4 }
  0x6f   :  { %p5927_p1 = por %p5926_p0, %p5925_p13 }
  0x71   :  { %p5928_p2 = pnand %p5927_p1, %p5921_p12 }
  0x73   :  { %5931 = shalt.err (!%p5928_p2)
}
  0x74   :  { %s7276_s0 = sld [smem:[#allocation39_spill]]  ;;  %s5940_s19 = scalar_lea.vmem %s72_s17, 4096 }
  0x75   :  { %p5941_p3 = scmp.ne.s32.totalorder %s72_s17, %s5940_s19  ;;  %p5945_p4 = scmp.lt.s32.totalorder %s72_s17, %s72_s17 }
  0x76   :  { %p5946_p5 = scmp.lt.s32.totalorder %s5940_s19, %s5940_s19 }
  0x78   :  { %p5947_p6 = por %p5946_p5, %p5945_p4 }
  0x7a   :  { %55 = dma.hbm_to_vmem [thread:$0]  %s7276_s0, 1024, %s50_s29, [#allocation3], %s6115_s9, %s6115_s9, %s6116_s30  }
  0x7b   :  { %p5948_p7 = pnand %p5947_p6, %p5941_p3 }
  0x7d   :  { %5951 = shalt.err (!%p5948_p7)
}
  0x7e   :  { %s7277_s6 = sld [smem:[#allocation41_spill]]  ;;  %s6124_s1 = smov [#allocation9]  }
  0x7f   :  { %s93_s15 = sshll.u32 %s6124_s1, 4  ;;  %s6125_s27 = smov [#allocation12]   ;;  %s94_s15 = int_to_ptr.vmem [resolvable:$true] %s93_s15 }
  0x80   :  { %s118_s3 = sshll.u32 %s6125_s27, 4  ;;  %s5960_s7 = scalar_lea.vmem %s94_s15, 4096  ;;  %s119_s3 = int_to_ptr.vmem [resolvable:$true] %s118_s3 }
  0x81   :  { %p5961_p8 = scmp.ne.s32.totalorder %s94_s15, %s5960_s7  ;;  %p5965_p9 = scmp.lt.s32.totalorder %s94_s15, %s94_s15 }
  0x82   :  { %p5966_p10 = scmp.lt.s32.totalorder %s5960_s7, %s5960_s7 }
  0x84   :  { %77 = dma.hbm_to_vmem [thread:$0]  %s7277_s6, 4096, %s72_s17, [#allocation5], %s6115_s9, %s6115_s9, %s6116_s30  }
  0x85   :  { %p5967_p11 = por %p5966_p10, %p5965_p9 }
  0x87   :  { %p5968_p12 = pnand %p5967_p11, %p5961_p8 }
  0x89   :  { %5971 = shalt.err (!%p5968_p12)
}
  0x8a   :  { %s7278_s28 = sld [smem:[#allocation43_spill]]  ;;  %s5980_s17 = scalar_lea.vmem %s119_s3, 32 }
  0x8b   :  { %p5981_p13 = scmp.ne.s32.totalorder %s119_s3, %s5980_s17  ;;  %p5985_p0 = scmp.lt.s32.totalorder %s119_s3, %s119_s3 }
  0x8c   :  { %p5986_p1 = scmp.lt.s32.totalorder %s5980_s17, %s5980_s17 }
  0x8e   :  { %p5987_p2 = por %p5986_p1, %p5985_p0 }
  0x90   :  { %99 = dma.hbm_to_vmem [thread:$0]  %s7278_s28, 4096, %s94_s15, [#allocation8], %s6115_s9, %s6115_s9, %s6116_s30  }
  0x91   :  { %p5988_p3 = pnand %p5987_p2, %p5981_p13 }
  0x93   :  { %5991 = shalt.err (!%p5988_p3)
}
  0x94   :  { %s7279_s13 = sld [smem:[#allocation46_spill]]  ;;  %s6126_s0 = smov [#allocation15]  }
  0x95   :  { %s141_s19 = sshll.u32 %s6126_s0, 4  ;;  %s6127_s5 = smov [#allocation18]   ;;  %s142_s19 = int_to_ptr.vmem [resolvable:$true] %s141_s19 }
  0x96   :  { %s166_s10 = sshll.u32 %s6127_s5, 4  ;;  %s6000_s6 = scalar_lea.vmem %s142_s19, 4096  ;;  %s167_s10 = int_to_ptr.vmem [resolvable:$true] %s166_s10 }
  0x97   :  { %p6001_p4 = scmp.ne.s32.totalorder %s142_s19, %s6000_s6  ;;  %p6005_p5 = scmp.lt.s32.totalorder %s142_s19, %s142_s19 }
  0x98   :  { %p6006_p6 = scmp.lt.s32.totalorder %s6000_s6, %s6000_s6 }
  0x9a   :  { %121 = dma.hbm_to_vmem [thread:$0]  %s7279_s13, 32, %s119_s3, [#allocation11]  }
  0x9b   :  { %p6007_p7 = por %p6006_p6, %p6005_p5 }
  0x9d   :  { %p6008_p8 = pnand %p6007_p7, %p6001_p4 }
  0x9f   :  { %6011 = shalt.err (!%p6008_p8)
}
  0xa0   :  { %147 = dma.hbm_to_vmem [thread:$0]  %s7243_s12, 4096, %s142_s19, [#allocation14], %s6115_s9, %s6115_s9, %s6116_s30  }
  0xa1   :  { %s6020_s27 = scalar_lea.vmem %s167_s10, 32  ;;  %p6025_p10 = scmp.lt.s32.totalorder %s167_s10, %s167_s10 }
  0xa2   :  { %p6021_p9 = scmp.ne.s32.totalorder %s167_s10, %s6020_s27  ;;  %p6026_p11 = scmp.lt.s32.totalorder %s6020_s27, %s6020_s27 }
  0xa4   :  { %p6027_p12 = por %p6026_p11, %p6025_p10 }
  0xa6   :  { %p6028_p13 = pnand %p6027_p12, %p6021_p9 }
  0xa8   :  { %6031 = shalt.err (!%p6028_p13)
}
  0xa9   :  { %169 = dma.hbm_to_vmem [thread:$0]  %s7245_s14, 32, %s167_s10, [#allocation17]  }
  0xaa   :  { %s6128_s8 = smov [#allocation21]   ;;  %s6129_s28 = smov [#allocation24]  }
  0xab   :  { %s188_s29 = sshll.u32 %s6128_s8, 4  ;;  %s210_s17 = sshll.u32 %s6129_s28, 4  ;;  %s189_s29 = int_to_ptr.vmem [resolvable:$true] %s188_s29  ;;  %s211_s17 = int_to_ptr.vmem [resolvable:$true] %s210_s17 }
  0xac   :  { %s6040_s4 = scalar_lea.vmem %s189_s29, 32  ;;  %p6045_p1 = scmp.lt.s32.totalorder %s189_s29, %s189_s29 }
  0xad   :  { %p6041_p0 = scmp.ne.s32.totalorder %s189_s29, %s6040_s4  ;;  %p6046_p2 = scmp.lt.s32.totalorder %s6040_s4, %s6040_s4 }
  0xaf   :  { %p6047_p3 = por %p6046_p2, %p6045_p1 }
  0xb1   :  { %p6048_p4 = pnand %p6047_p3, %p6041_p0 }
  0xb3   :  { %6051 = shalt.err (!%p6048_p4)
}
  0xb4   :  { %191 = dma.hbm_to_vmem [thread:$0]  %s7247_s16, 32, %s189_s29, [#allocation20]  }
  0xb5   :  { %s6060_s30 = scalar_lea.vmem %s211_s17, 32  ;;  %p6065_p6 = scmp.lt.s32.totalorder %s211_s17, %s211_s17 }
  0xb6   :  { %p6061_p5 = scmp.ne.s32.totalorder %s211_s17, %s6060_s30  ;;  %p6066_p7 = scmp.lt.s32.totalorder %s6060_s30, %s6060_s30 }
  0xb8   :  { %p6067_p8 = por %p6066_p7, %p6065_p6 }
  0xba   :  { %p6068_p9 = pnand %p6067_p8, %p6061_p5 }
  0xbc   :  { %6071 = shalt.err (!%p6068_p9)
}
  0xbd   :  { %213 = dma.hbm_to_vmem [thread:$0]  %s7249_s18, 32, %s211_s17, [#allocation23]  }
  0xbe   :  { %s6130_s13 = smov [#allocation27]  }
  0xbf   :  { %s233_s0 = sshll.u32 %s6130_s13, 4  ;;  %s234_s0 = int_to_ptr.vmem [resolvable:$true] %s233_s0 }
  0xc0   :  { %s6080_s19 = scalar_lea.vmem %s234_s0, 2048  ;;  %p6085_p11 = scmp.lt.s32.totalorder %s234_s0, %s234_s0 }
  0xc1   :  { %p6081_p10 = scmp.ne.s32.totalorder %s234_s0, %s6080_s19  ;;  %p6086_p12 = scmp.lt.s32.totalorder %s6080_s19, %s6080_s19 }
  0xc3   :  { %p6087_p13 = por %p6086_p12, %p6085_p11 }
  0xc5   :  { %p6088_p0 = pnand %p6087_p13, %p6081_p10 }
  0xc7   :  { %6091 = shalt.err (!%p6088_p0)
}
  0xc8   :  { %s6131_s16 = smov 64   ;;  %s6132_s5 = smov 4  }
  0xc9   :  { %239 = dma.hbm_to_vmem [thread:$0]  %s7252_s21, 2048, %s234_s0, [#allocation26], %s6131_s16, %s6131_s16, %s6132_s5  }
  0xca   :  { %6092 = dma.done.wait [#allocation3], 1024  }
  0xcb   :  { %6093 = vsyncadd [#allocation3], 4294966272 }
  0xcc   :  { %6094 = dma.done.wait [#allocation5], 4128  }
  0xcd   :  { %6095 = vsyncadd [#allocation5], 4294963168 }
  0xce   :  { %6096 = dma.done.wait [#allocation8], 4128  }
  0xcf   :  { %6097 = vsyncadd [#allocation8], 4294963168 }
  0xd0   :  { %6098 = dma.done.wait [#allocation11], 64  }
  0xd1   :  { %6099 = vsyncadd [#allocation11], 4294967232 }
  0xd2   :  { %6100 = dma.done.wait [#allocation14], 8192  }
  0xd3   :  { %6101 = vsyncadd [#allocation14], 4294959104 }
  0xd4   :  { %6102 = dma.done.wait [#allocation17], 1056  }
  0xd5   :  { %6103 = vsyncadd [#allocation17], 4294966240 }
  0xd6   :  { %6104 = dma.done.wait [#allocation20], 4128  }
  0xd7   :  { %6105 = vsyncadd [#allocation20], 4294963168 }
  0xd8   :  { %6106 = dma.done.wait [#allocation23], 4128  }
  0xd9   :  { %6107 = vsyncadd [#allocation23], 4294963168 }
  0xda   :  { %6108 = dma.done.wait [#allocation26], 8192  }
  0xdb   :  { %6109 = vsyncadd [#allocation26], 4294959104  ;;  %v6133_v0 = vmov 0   ;;  %v5278_v1 = vld [vmem:[#allocation2 + $0x34] ss:$8 sps:$4 sm:$0xff]   ;;  %s7280_s1 = sld [smem:[#allocation37_spill]] }
  0xdc   :  { %489 = vmatprep.mubr.bf16.mxu0 %v6133_v0  ;;  %v5280_v2 = vld [vmem:[#allocation2 + $0x30] ss:$8 sps:$4 sm:$0xff]   ;;  %465 = vmatprep.subr.bf16.mxu0 %v5278_v1  ;;  %v5281_v3 = vld [vmem:[#allocation2 + $0x24] ss:$8 sps:$4 sm:$0xff]   ;;  %v5283_v4 = vld [vmem:[#allocation2 + $0x20] ss:$8 sps:$4 sm:$0xff]  }
  0xdd   :  { %466 = vmatpush1.bf16.msra.mxu0 %v5280_v2  ;;  %v5284_v5 = vld [vmem:[#allocation2 + $0x14] ss:$8 sps:$4 sm:$0xff]   ;;  %v5286_v6 = vld [vmem:[#allocation2 + $0x10] ss:$8 sps:$4 sm:$0xff]   ;;  %v5287_v7 = vld [vmem:[#allocation2 + $0x4] ss:$8 sps:$4 sm:$0xff]  }
  0xde   :  { %467 = vmatprep.subr.bf16.mxu0 %v5281_v3  ;;  %v5289_v8 = vld [vmem:[#allocation2] ss:$8 sps:$4 sm:$0xff]   ;;  %v5300_v11 = vld [vmem:[#allocation6 + $0x70] ss:$8 sps:$4 sm:$0xff]   ;;  %vm432_vm0 = vcmask 523264   ;;  %s7281_s19 = sld [smem:[#allocation45_spill]] }
  0xdf   :  { %v5298_v10 = vld [vmem:[#allocation6 + $0x74] ss:$8 sps:$4 sm:$0xff]   ;;  %v5301_v12 = vld [vmem:[#allocation6 + $0x64] ss:$8 sps:$4 sm:$0xff]   ;;  %v5303_v13 = vld [vmem:[#allocation6 + $0x60] ss:$8 sps:$4 sm:$0xff]  }
  0xe0   :  { %822 = vmatprep.subr.bf16.mxu1 %v5298_v10  ;;  %v5304_v14 = vld [vmem:[#allocation6 + $0x54] ss:$8 sps:$4 sm:$0xff]   ;;  %v5306_v15 = vld [vmem:[#allocation6 + $0x50] ss:$8 sps:$4 sm:$0xff]   ;;  %v5307_v17 = vld [vmem:[#allocation6 + $0x44] ss:$8 sps:$4 sm:$0xff]  }
  0xe1   :  { %468 = vmatpush1.bf16.msra.mxu0 %v5283_v4  ;;  %v5290_v9 = vld [vmem:[%s7280_s1] sm:$0xff]   ;;  %823 = vmatpush1.bf16.msra.mxu1 %v5300_v11  ;;  %v5291_v16 = vld [vmem:[%s7280_s1 + $0x8] sm:$0xff]   ;;  %v5312_v20 = vld [vmem:[#allocation6 + $0x30] ss:$8 sps:$4 sm:$0xff]   ;;  %s7282_s30 = sld [smem:[#allocation38_spill]]  ;;  %vm4017_vm1 = vcmask 261120  }
  0xe2   :  { %469 = vmatprep.subr.bf16.mxu0 %v5284_v5  ;;  %824 = vmatprep.subr.bf16.mxu1 %v5301_v12  ;;  %v5309_v18 = vld [vmem:[#allocation6 + $0x40] ss:$8 sps:$4 sm:$0xff]   ;;  %v5310_v19 = vld [vmem:[#allocation6 + $0x34] ss:$8 sps:$4 sm:$0xff]   ;;  %v5313_v22 = vld [vmem:[#allocation6 + $0x24] ss:$8 sps:$4 sm:$0xff]   ;;  %v342_v12 = vlaneseq }
  0xe3   :  { %v5292_v21 = vld [vmem:[%s7280_s1 + $0x10] sm:$0xff]   ;;  %v5315_v23 = vld [vmem:[#allocation6 + $0x20] ss:$8 sps:$4 sm:$0xff]   ;;  %v5293_v26 = vld [vmem:[%s7280_s1 + $0x18] sm:$0xff]   ;;  %vm4611_vm2 = vcmask 23552   ;;  %vm4628_vm3 = vcmask 31744  }
  0xe4   :  { %v5316_v24 = vld [vmem:[#allocation6 + $0x14] ss:$8 sps:$4 sm:$0xff]   ;;  %v5318_v25 = vld [vmem:[#allocation6 + $0x10] ss:$8 sps:$4 sm:$0xff]   ;;  %v5319_v27 = vld [vmem:[#allocation6 + $0x4] ss:$8 sps:$4 sm:$0xff]  }
  0xe5   :  { %470 = vmatpush1.bf16.msra.mxu0 %v5286_v6  ;;  %825 = vmatpush1.bf16.msra.mxu1 %v5303_v13  ;;  %v5321_v28 = vld [vmem:[#allocation6] ss:$8 sps:$4 sm:$0xff]   ;;  %v5322_v29 = vld [vmem:[#allocation6 + $0xf4] ss:$8 sps:$4 sm:$0xff]   ;;  %v5324_v30 = vld [vmem:[#allocation6 + $0xf0] ss:$8 sps:$4 sm:$0xff]  }
  0xe6   :  { %471 = vmatprep.subr.bf16.mxu0 %v5287_v7  ;;  %826 = vmatprep.subr.bf16.mxu1 %v5304_v14  ;;  %v5294_v31 = vld [vmem:[%s7280_s1 + $0x20] sm:$0xff]   ;;  %v5330_v35 = vld [vmem:[#allocation6 + $0xd0] ss:$8 sps:$4 sm:$0xff]   ;;  %v5295_v36 = vld [vmem:[%s7280_s1 + $0x28] sm:$0xff]   ;;  %v6385_v13 = vshrl.u32 %v342_v12, 7  ;;  %vm4645_vm4 = vcmask 64512  }
  0xe7   :  { %v5325_v32 = vld [vmem:[#allocation6 + $0xe4] ss:$8 sps:$4 sm:$0xff]   ;;  %v5327_v33 = vld [vmem:[#allocation6 + $0xe0] ss:$8 sps:$4 sm:$0xff]   ;;  %v5328_v34 = vld [vmem:[#allocation6 + $0xd4] ss:$8 sps:$4 sm:$0xff]  }
  0xe8   :  { %v5331_v37 = vld [vmem:[#allocation6 + $0xc4] ss:$8 sps:$4 sm:$0xff]   ;;  %v5333_v38 = vld [vmem:[#allocation6 + $0xc0] ss:$8 sps:$4 sm:$0xff]   ;;  %v5334_v39 = vld [vmem:[#allocation6 + $0xb4] ss:$8 sps:$4 sm:$0xff]  }
  0xe9   :  { %472 = vmatpush1.bf16.msra.mxu0 %v5289_v8  ;;  %827 = vmatpush1.bf16.msra.mxu1 %v5306_v15  ;;  %v5336_v40 = vld [vmem:[#allocation6 + $0xb0] ss:$8 sps:$4 sm:$0xff]   ;;  %v5337_v43 = vld [vmem:[#allocation6 + $0xa4] ss:$8 sps:$4 sm:$0xff]   ;;  %v5339_v44 = vld [vmem:[#allocation6 + $0xa0] ss:$8 sps:$4 sm:$0xff]  }
  0xea   :  { %828 = vmatprep.subr.bf16.mxu1 %v5307_v17  ;;  %v5296_v41 = vld [vmem:[%s7280_s1 + $0x30] sm:$0xff]   ;;  %v5297_v42 = vld [vmem:[%s7280_s1 + $0x38] sm:$0xff]   ;;  %v5345_v48 = vld [vmem:[#allocation6 + $0x80] ss:$8 sps:$4 sm:$0xff]   ;;  %v6388_v14 = vsub.s32 1, %v6385_v13  ;;  %v6391_v15 = vsub.s32 0, %v6385_v13 }
  0xeb   :  { %v5340_v45 = vld [vmem:[#allocation6 + $0x94] ss:$8 sps:$4 sm:$0xff]   ;;  %v5342_v46 = vld [vmem:[#allocation6 + $0x90] ss:$8 sps:$4 sm:$0xff]   ;;  %v5343_v47 = vld [vmem:[#allocation6 + $0x84] ss:$8 sps:$4 sm:$0xff]  }
  0xec   :  { %4691 = vmatmul.mubr.msk.bf16.vlgmr.msra.gmra.mxu0 %vm432_vm0, %v5290_v9  ;;  %v5346_v49 = vld [vmem:[#allocation9 + $0x70] ss:$8 sps:$4 sm:$0xff]   ;;  %v5348_v50 = vld [vmem:[#allocation9 + $0x74] ss:$8 sps:$4 sm:$0xff]   ;;  %v5351_v51 = vld [vmem:[#allocation9 + $0x64] ss:$8 sps:$4 sm:$0xff]  }
  0xed   :  { %499 = vmatprep.mubr.bf16.mxu0 %v6133_v0  ;;  %829 = vmatpush1.bf16.msra.mxu1 %v5309_v18  ;;  %v5349_v52 = vld [vmem:[#allocation9 + $0x60] ss:$8 sps:$4 sm:$0xff]   ;;  %v5354_v53 = vld [vmem:[#allocation9 + $0x54] ss:$8 sps:$4 sm:$0xff]   ;;  %v5352_v54 = vld [vmem:[#allocation9 + $0x50] ss:$8 sps:$4 sm:$0xff]  }
  0xee   :  { %830 = vmatprep.subr.bf16.mxu1 %v5310_v19  ;;  %1187 = vmatprep.subr.bf16.mxu0 %v5348_v50  ;;  %v5357_v55 = vld [vmem:[#allocation9 + $0x44] ss:$8 sps:$4 sm:$0xff]   ;;  %v5355_v56 = vld [vmem:[#allocation9 + $0x40] ss:$8 sps:$4 sm:$0xff]   ;;  %v5360_v57 = vld [vmem:[#allocation9 + $0x34] ss:$8 sps:$4 sm:$0xff]  }
  0xef   :  { %1188 = vmatpush1.bf16.msra.mxu0 %v5346_v49  ;;  %v5358_v58 = vld [vmem:[#allocation9 + $0x30] ss:$8 sps:$4 sm:$0xff]   ;;  %v5363_v59 = vld [vmem:[#allocation9 + $0x24] ss:$8 sps:$4 sm:$0xff]   ;;  %v5361_v60 = vld [vmem:[#allocation9 + $0x20] ss:$8 sps:$4 sm:$0xff]  }
  0xf0   :  { %1189 = vmatprep.subr.bf16.mxu0 %v5351_v51  ;;  %v5366_v61 = vld [vmem:[#allocation9 + $0x14] ss:$8 sps:$4 sm:$0xff]   ;;  %v5364_v62 = vld [vmem:[#allocation9 + $0x10] ss:$8 sps:$4 sm:$0xff]   ;;  %v5369_v63 = vld [vmem:[#allocation9 + $0x4] ss:$8 sps:$4 sm:$0xff]  }
  0xf1   :  { %831 = vmatpush1.bf16.msra.mxu1 %v5312_v20  ;;  %v5367_v1 = vld [vmem:[#allocation9] ss:$8 sps:$4 sm:$0xff]   ;;  %v5372_v2 = vld [vmem:[#allocation9 + $0xf4] ss:$8 sps:$4 sm:$0xff]   ;;  %v5370_v3 = vld [vmem:[#allocation9 + $0xf0] ss:$8 sps:$4 sm:$0xff]  }
  0xf2   :  { %832 = vmatprep.subr.bf16.mxu1 %v5313_v22  ;;  %v5375_v4 = vld [vmem:[#allocation9 + $0xe4] ss:$8 sps:$4 sm:$0xff]   ;;  %v5373_v5 = vld [vmem:[#allocation9 + $0xe0] ss:$8 sps:$4 sm:$0xff]   ;;  %v5378_v6 = vld [vmem:[#allocation9 + $0xd4] ss:$8 sps:$4 sm:$0xff]  }
  0xf3   :  { %1190 = vmatpush1.bf16.msra.mxu0 %v5349_v52  ;;  %v5376_v7 = vld [vmem:[#allocation9 + $0xd0] ss:$8 sps:$4 sm:$0xff]   ;;  %v5381_v8 = vld [vmem:[#allocation9 + $0xc4] ss:$8 sps:$4 sm:$0xff]   ;;  %v5379_v9 = vld [vmem:[#allocation9 + $0xc0] ss:$8 sps:$4 sm:$0xff]  }
  0xf4   :  { %4692 = vmatmul.mubr.msk.bf16.gmra.mxu0 %vm432_vm0, %v5291_v16  ;;  %1191 = vmatprep.subr.bf16.mxu0 %v5354_v53  ;;  %v5384_v10 = vld [vmem:[#allocation9 + $0xb4] ss:$8 sps:$4 sm:$0xff]   ;;  %v5382_v11 = vld [vmem:[#allocation9 + $0xb0] ss:$8 sps:$4 sm:$0xff]  }
  0xf5   :  { %509 = vmatprep.mubr.bf16.mxu0 %v6133_v0  ;;  %833 = vmatpush1.bf16.msra.mxu1 %v5315_v23  ;;  %v340_v16 = vld [vmem:[#allocation4] sm:$0x3] }
  0xf6   :  { %834 = vmatprep.subr.bf16.mxu1 %v5316_v24  ;;  %v6394_v18 = vrot.slane %v340_v16, %v6388_v14  ;;  %v6397_v19 = vrot.slane %v340_v16, %v6391_v15 }
  0xf7   :  { %1192 = vmatpush1.bf16.msra.mxu0 %v5352_v54 }
  0xf8   :  { %1193 = vmatprep.subr.bf16.mxu0 %v5357_v55 }
  0xf9   :  { %835 = vmatpush1.bf16.msra.mxu1 %v5318_v25 }
  0xfa   :  { %836 = vmatprep.subr.bf16.mxu1 %v5319_v27 }
  0xfb   :  { %1194 = vmatpush1.bf16.msra.mxu0 %v5355_v56 }
  0xfc   :  { %4693 = vmatmul.mubr.msk.bf16.gmra.mxu0 %vm432_vm0, %v5292_v21  ;;  %1195 = vmatprep.subr.bf16.mxu0 %v5360_v57 }
  0xfd   :  { %519 = vmatprep.mubr.bf16.mxu0 %v6133_v0  ;;  %837 = vmatpush1.bf16.msra.mxu1 %v5321_v28 }
  0xfe   :  { %838 = vmatprep.subr.bf16.mxu1 %v5322_v29 }
  0xff   :  { %1196 = vmatpush1.bf16.msra.mxu0 %v5358_v58 }
 0x100   :  { %1197 = vmatprep.subr.bf16.mxu0 %v5363_v59 }
 0x101   :  { %839 = vmatpush2.bf16.msra.mxu1 %v5324_v30 }
 0x102   :  { %840 = vmatprep.subr.bf16.mxu1 %v5325_v32 }
 0x103   :  { %1198 = vmatpush1.bf16.msra.mxu0 %v5361_v60 }
 0x104   :  { %4694 = vmatmul.mubr.msk.bf16.gmra.mxu0 %vm432_vm0, %v5293_v26  ;;  %1199 = vmatprep.subr.bf16.mxu0 %v5366_v61 }
 0x105   :  { %529 = vmatprep.mubr.bf16.mxu0 %v6133_v0  ;;  %841 = vmatpush2.bf16.msra.mxu1 %v5327_v33 }
 0x106   :  { %842 = vmatprep.subr.bf16.mxu1 %v5328_v34 }
 0x107   :  { %1200 = vmatpush1.bf16.msra.mxu0 %v5364_v62 }
 0x108   :  { %1201 = vmatprep.subr.bf16.mxu0 %v5369_v63 }
 0x109   :  { %843 = vmatpush2.bf16.msra.mxu1 %v5330_v35 }
 0x10a   :  { %844 = vmatprep.subr.bf16.mxu1 %v5331_v37 }
 0x10b   :  { %1202 = vmatpush1.bf16.msra.mxu0 %v5367_v1 }
 0x10c   :  { %4695 = vmatmul.mubr.msk.bf16.gmra.mxu0 %vm432_vm0, %v5294_v31  ;;  %1203 = vmatprep.subr.bf16.mxu0 %v5372_v2 }
 0x10d   :  { %539 = vmatprep.mubr.bf16.mxu0 %v6133_v0  ;;  %845 = vmatpush2.bf16.msra.mxu1 %v5333_v38 }
 0x10e   :  { %846 = vmatprep.subr.bf16.mxu1 %v5334_v39 }
 0x10f   :  { %1204 = vmatpush2.bf16.msra.mxu0 %v5370_v3 }
 0x110   :  { %1205 = vmatprep.subr.bf16.mxu0 %v5375_v4 }
 0x111   :  { %847 = vmatpush2.bf16.msra.mxu1 %v5336_v40 }
 0x112   :  { %848 = vmatprep.subr.bf16.mxu1 %v5337_v43 }
 0x113   :  { %1206 = vmatpush2.bf16.msra.mxu0 %v5373_v5 }
 0x114   :  { %4696 = vmatmul.mubr.msk.bf16.gmra.mxu0 %vm432_vm0, %v5295_v36  ;;  %1207 = vmatprep.subr.bf16.mxu0 %v5378_v6 }
 0x115   :  { %549 = vmatprep.mubr.bf16.mxu0 %v6133_v0  ;;  %849 = vmatpush2.bf16.msra.mxu1 %v5339_v44 }
 0x116   :  { %850 = vmatprep.subr.bf16.mxu1 %v5340_v45 }
 0x117   :  { %1208 = vmatpush2.bf16.msra.mxu0 %v5376_v7 }
 0x118   :  { %1209 = vmatprep.subr.bf16.mxu0 %v5381_v8 }
 0x119   :  { %851 = vmatpush2.bf16.msra.mxu1 %v5342_v46 }
 0x11a   :  { %852 = vmatprep.subr.bf16.mxu1 %v5343_v47 }
 0x11b   :  { %1210 = vmatpush2.bf16.msra.mxu0 %v5379_v9 }
 0x11c   :  { %4697 = vmatmul.mubr.msk.bf16.gmra.mxu0 %vm432_vm0, %v5296_v41  ;;  %1211 = vmatprep.subr.bf16.mxu0 %v5384_v10 }
 0x11d   :  { %559 = vmatprep.mubr.bf16.mxu0 %v6133_v0  ;;  %853 = vmatpush2.bf16.msra.mxu1 %v5345_v48 }
 0x11f   :  { %1212 = vmatpush2.bf16.msra.mxu0 %v5382_v11 }
 0x124   :  { %4698 = vmatmul.mubr.msk.bf16.gmra.mxu0 %vm432_vm0, %v5297_v42 }
 0x1ac   :  { %v491_v17 = vpop.f32.mrf.mxu0 }
 0x1ad   :  { %v492_v24 = vadd.f32 %v491_v17, %v6397_v19 }
 0x1ae   :  { %v493_v20 = vpop.f32.mrf.mxu0 }
 0x1af   :  { %v494_v22 = vadd.f32 %v493_v20, %v6394_v18  ;;  %v570_v31 = vmax.f32 %v492_v24, 0.0 }
 0x1b0   :  { %v495_v21 = vpop.f32.mrf.mxu0 }
 0x1b1   :  { %v496_v23 = vadd.f32 %v495_v21, %v6397_v19  ;;  %v571_v29 = vmax.f32 %v494_v22, 0.0 }
 0x1b2   :  { %v497_v25 = vpop.f32.mrf.mxu0 }
 0x1b3   :  { %v498_v26 = vadd.f32 %v497_v25, %v6394_v18  ;;  %v572_v27 = vmax.f32 %v496_v23, 0.0 }
 0x1b4   :  { %v501_v28 = vpop.f32.mrf.mxu0 }
 0x1b5   :  { %v573_v30 = vmax.f32 %v498_v26, 0.0  ;;  %v602_v34 = vpack.c.bf16 %v572_v27, %v570_v31  ;;  %v502_v38 = vadd.f32 %v501_v28, %v6397_v19 }
 0x1b6   :  { %v503_v32 = vpop.f32.mrf.mxu0 }
 0x1b7   :  { %v603_v33 = vpack.c.bf16 %v573_v30, %v571_v29  ;;  %v504_v36 = vadd.f32 %v503_v32, %v6394_v18  ;;  %v574_v45 = vmax.f32 %v502_v38, 0.0 }
 0x1b8   :  { %v505_v35 = vpop.f32.mrf.mxu0 }
 0x1b9   :  { %v506_v37 = vadd.f32 %v505_v35, %v6397_v19  ;;  %854 = vmatprep.mubr.bf16.mxu1 %v603_v33  ;;  %v575_v43 = vmax.f32 %v504_v36, 0.0 }
 0x1ba   :  { %v507_v39 = vpop.f32.mrf.mxu0  ;;  %855 = vmatmul.mubr.bf16.vlgmr.msra.gmra.mxu1 %v602_v34 }
 0x1bb   :  { %v508_v40 = vadd.f32 %v507_v39, %v6394_v18  ;;  %v576_v41 = vmax.f32 %v506_v37, 0.0 }
 0x1bc   :  { %v511_v42 = vpop.f32.mrf.mxu0 }
 0x1bd   :  { %v577_v44 = vmax.f32 %v508_v40, 0.0  ;;  %v604_v48 = vpack.c.bf16 %v576_v41, %v574_v45  ;;  %v512_v52 = vadd.f32 %v511_v42, %v6397_v19 }
 0x1be   :  { %v513_v46 = vpop.f32.mrf.mxu0 }
 0x1bf   :  { %v605_v47 = vpack.c.bf16 %v577_v44, %v575_v43  ;;  %v514_v50 = vadd.f32 %v513_v46, %v6394_v18  ;;  %v578_v59 = vmax.f32 %v512_v52, 0.0 }
 0x1c0   :  { %v515_v49 = vpop.f32.mrf.mxu0 }
 0x1c1   :  { %v516_v51 = vadd.f32 %v515_v49, %v6397_v19  ;;  %864 = vmatprep.mubr.bf16.mxu1 %v605_v47  ;;  %v579_v57 = vmax.f32 %v514_v50, 0.0 }
 0x1c2   :  { %v517_v53 = vpop.f32.mrf.mxu0  ;;  %865 = vmatmul.mubr.bf16.gmra.mxu1 %v604_v48 }
 0x1c3   :  { %v518_v54 = vadd.f32 %v517_v53, %v6394_v18  ;;  %v580_v55 = vmax.f32 %v516_v51, 0.0 }
 0x1c4   :  { %v521_v56 = vpop.f32.mrf.mxu0 }
 0x1c5   :  { %v581_v58 = vmax.f32 %v518_v54, 0.0  ;;  %v606_v62 = vpack.c.bf16 %v580_v55, %v578_v59  ;;  %v522_v3 = vadd.f32 %v521_v56, %v6397_v19 }
 0x1c6   :  { %v523_v60 = vpop.f32.mrf.mxu0 }
 0x1c7   :  { %v607_v61 = vpack.c.bf16 %v581_v58, %v579_v57  ;;  %v524_v1 = vadd.f32 %v523_v60, %v6394_v18  ;;  %v582_v10 = vmax.f32 %v522_v3, 0.0 }
 0x1c8   :  { %v525_v63 = vpop.f32.mrf.mxu0 }
 0x1c9   :  { %v526_v2 = vadd.f32 %v525_v63, %v6397_v19  ;;  %874 = vmatprep.mubr.bf16.mxu1 %v607_v61  ;;  %v583_v8 = vmax.f32 %v524_v1, 0.0 }
 0x1ca   :  { %v527_v4 = vpop.f32.mrf.mxu0  ;;  %875 = vmatmul.mubr.bf16.gmra.mxu1 %v606_v62 }
 0x1cb   :  { %v528_v5 = vadd.f32 %v527_v4, %v6394_v18  ;;  %v584_v6 = vmax.f32 %v526_v2, 0.0 }
 0x1cc   :  { %v531_v7 = vpop.f32.mrf.mxu0 }
 0x1cd   :  { %v585_v9 = vmax.f32 %v528_v5, 0.0  ;;  %v608_v16 = vpack.c.bf16 %v584_v6, %v582_v10  ;;  %v532_v22 = vadd.f32 %v531_v7, %v6397_v19  ;;  %v5387_v10 = vld [vmem:[#allocation9 + $0xa4] ss:$8 sps:$4 sm:$0xff]  }
 0x1ce   :  { %v533_v11 = vpop.f32.mrf.mxu0  ;;  %1213 = vmatprep.subr.bf16.mxu0 %v5387_v10 }
 0x1cf   :  { %v609_v12 = vpack.c.bf16 %v585_v9, %v583_v8  ;;  %v534_v20 = vadd.f32 %v533_v11, %v6394_v18  ;;  %v586_v29 = vmax.f32 %v532_v22, 0.0  ;;  %v5385_v11 = vld [vmem:[#allocation9 + $0xa0] ss:$8 sps:$4 sm:$0xff]   ;;  %v5397_v22 = vld [vmem:[%s7281_s19 + $0x60] ss:$8 sps:$4 sm:$0xff]  }
 0x1d0   :  { %v535_v17 = vpop.f32.mrf.mxu0  ;;  %1214 = vmatpush2.bf16.msra.mxu0 %v5385_v11 }
 0x1d1   :  { %v536_v21 = vadd.f32 %v535_v17, %v6397_v19  ;;  %884 = vmatprep.mubr.bf16.mxu1 %v609_v12  ;;  %v587_v27 = vmax.f32 %v534_v20, 0.0  ;;  %v5390_v12 = vld [vmem:[#allocation9 + $0x94] ss:$8 sps:$4 sm:$0xff]   ;;  %v5391_v17 = vld [vmem:[#allocation9 + $0x80] ss:$8 sps:$4 sm:$0xff]  }
 0x1d2   :  { %v537_v23 = vpop.f32.mrf.mxu0  ;;  %885 = vmatmul.mubr.bf16.gmra.mxu1 %v608_v16  ;;  %v5388_v16 = vld [vmem:[#allocation9 + $0x90] ss:$8 sps:$4 sm:$0xff]   ;;  %1215 = vmatprep.subr.bf16.mxu0 %v5390_v12 }
 0x1d3   :  { %v538_v24 = vadd.f32 %v537_v23, %v6394_v18  ;;  %v588_v25 = vmax.f32 %v536_v21, 0.0  ;;  %v5396_v20 = vld [vmem:[%s7281_s19 + $0x74] ss:$8 sps:$4 sm:$0xff]   ;;  %v5399_v21 = vld [vmem:[%s7281_s19 + $0x64] ss:$8 sps:$4 sm:$0xff]  }
 0x1d4   :  { %v541_v26 = vpop.f32.mrf.mxu0  ;;  %1216 = vmatpush2.bf16.msra.mxu0 %v5388_v16  ;;  %1552 = vmatprep.subr.bf16.mxu1 %v5396_v20  ;;  %v5402_v23 = vld [vmem:[%s7281_s19 + $0x54] ss:$8 sps:$4 sm:$0xff]  }
 0x1d5   :  { %v589_v28 = vmax.f32 %v538_v24, 0.0  ;;  %v610_v32 = vpack.c.bf16 %v588_v25, %v586_v29  ;;  %v542_v36 = vadd.f32 %v541_v26, %v6397_v19  ;;  %v5400_v24 = vld [vmem:[%s7281_s19 + $0x50] ss:$8 sps:$4 sm:$0xff]   ;;  %v5405_v25 = vld [vmem:[%s7281_s19 + $0x44] ss:$8 sps:$4 sm:$0xff]  }
 0x1d6   :  { %v543_v30 = vpop.f32.mrf.mxu0  ;;  %v5403_v26 = vld [vmem:[%s7281_s19 + $0x40] ss:$8 sps:$4 sm:$0xff]   ;;  %v5411_v29 = vld [vmem:[%s7281_s19 + $0x24] ss:$8 sps:$4 sm:$0xff]  }
 0x1d7   :  { %v611_v31 = vpack.c.bf16 %v589_v28, %v587_v27  ;;  %v544_v34 = vadd.f32 %v543_v30, %v6394_v18  ;;  %v590_v43 = vmax.f32 %v542_v36, 0.0  ;;  %v5408_v27 = vld [vmem:[%s7281_s19 + $0x34] ss:$8 sps:$4 sm:$0xff]   ;;  %v5406_v28 = vld [vmem:[%s7281_s19 + $0x30] ss:$8 sps:$4 sm:$0xff]  }
 0x1d8   :  { %v545_v33 = vpop.f32.mrf.mxu0  ;;  %v5409_v30 = vld [vmem:[%s7281_s19 + $0x20] ss:$8 sps:$4 sm:$0xff]   ;;  %v5418_v36 = vld [vmem:[%s7281_s19 + $0xf0] ss:$8 sps:$4 sm:$0xff]  }
 0x1d9   :  { %v546_v35 = vadd.f32 %v545_v33, %v6397_v19  ;;  %894 = vmatprep.mubr.bf16.mxu1 %v611_v31  ;;  %v591_v41 = vmax.f32 %v544_v34, 0.0  ;;  %v5414_v31 = vld [vmem:[%s7281_s19 + $0x14] ss:$8 sps:$4 sm:$0xff]   ;;  %v5417_v33 = vld [vmem:[%s7281_s19 + $0x4] ss:$8 sps:$4 sm:$0xff]  }
 0x1da   :  { %v547_v37 = vpop.f32.mrf.mxu0  ;;  %895 = vmatmul.mubr.bf16.gmra.mxu1 %v610_v32  ;;  %v5412_v32 = vld [vmem:[%s7281_s19 + $0x10] ss:$8 sps:$4 sm:$0xff]   ;;  %v5415_v34 = vld [vmem:[%s7281_s19] ss:$8 sps:$4 sm:$0xff]  }
 0x1db   :  { %v548_v38 = vadd.f32 %v547_v37, %v6394_v18  ;;  %v592_v39 = vmax.f32 %v546_v35, 0.0  ;;  %v5420_v35 = vld [vmem:[%s7281_s19 + $0xf4] ss:$8 sps:$4 sm:$0xff]   ;;  %v5423_v37 = vld [vmem:[%s7281_s19 + $0xe4] ss:$8 sps:$4 sm:$0xff]  }
 0x1dc   :  { %v551_v40 = vpop.f32.mrf.mxu0 }
 0x1dd   :  { %v593_v42 = vmax.f32 %v548_v38, 0.0  ;;  %v612_v46 = vpack.c.bf16 %v592_v39, %v590_v43  ;;  %v552_v50 = vadd.f32 %v551_v40, %v6397_v19  ;;  %v5421_v38 = vld [vmem:[%s7281_s19 + $0xe0] ss:$8 sps:$4 sm:$0xff]   ;;  %v5426_v39 = vld [vmem:[%s7281_s19 + $0xd4] ss:$8 sps:$4 sm:$0xff]  }
 0x1de   :  { %v553_v44 = vpop.f32.mrf.mxu0  ;;  %v5424_v40 = vld [vmem:[%s7281_s19 + $0xd0] ss:$8 sps:$4 sm:$0xff]   ;;  %v5432_v43 = vld [vmem:[%s7281_s19 + $0xb4] ss:$8 sps:$4 sm:$0xff]  }
 0x1df   :  { %v613_v45 = vpack.c.bf16 %v593_v42, %v591_v41  ;;  %v554_v48 = vadd.f32 %v553_v44, %v6394_v18  ;;  %v594_v57 = vmax.f32 %v552_v50, 0.0  ;;  %v5429_v41 = vld [vmem:[%s7281_s19 + $0xc4] ss:$8 sps:$4 sm:$0xff]   ;;  %v5427_v42 = vld [vmem:[%s7281_s19 + $0xc0] ss:$8 sps:$4 sm:$0xff]  }
 0x1e0   :  { %v555_v47 = vpop.f32.mrf.mxu0  ;;  %v5430_v44 = vld [vmem:[%s7281_s19 + $0xb0] ss:$8 sps:$4 sm:$0xff]  }
 0x1e1   :  { %v556_v49 = vadd.f32 %v555_v47, %v6397_v19  ;;  %904 = vmatprep.mubr.bf16.mxu1 %v613_v45  ;;  %v595_v55 = vmax.f32 %v554_v48, 0.0  ;;  %v650_v45 = vld [vmem:[#allocation7] sm:$0x3] }
 0x1e2   :  { %v557_v51 = vpop.f32.mrf.mxu0  ;;  %905 = vmatmul.mubr.bf16.gmra.mxu1 %v612_v46  ;;  %v6510_v47 = vrot.slane %v650_v45, %v6388_v14  ;;  %v6513_v48 = vrot.slane %v650_v45, %v6391_v15 }
 0x1e3   :  { %v558_v52 = vadd.f32 %v557_v51, %v6394_v18  ;;  %v596_v53 = vmax.f32 %v556_v49, 0.0 }
 0x1e4   :  { %v561_v54 = vpop.f32.mrf.mxu0 }
 0x1e5   :  { %v597_v56 = vmax.f32 %v558_v52, 0.0  ;;  %v614_v60 = vpack.c.bf16 %v596_v53, %v594_v57  ;;  %v562_v1 = vadd.f32 %v561_v54, %v6397_v19 }
 0x1e6   :  { %v563_v58 = vpop.f32.mrf.mxu0 }
 0x1e7   :  { %v615_v59 = vpack.c.bf16 %v597_v56, %v595_v55  ;;  %v564_v62 = vadd.f32 %v563_v58, %v6394_v18  ;;  %v598_v7 = vmax.f32 %v562_v1, 0.0 }
 0x1e8   :  { %v565_v61 = vpop.f32.mrf.mxu0 }
 0x1e9   :  { %v566_v63 = vadd.f32 %v565_v61, %v6397_v19  ;;  %914 = vmatprep.mubr.bf16.mxu1 %v615_v59  ;;  %v599_v5 = vmax.f32 %v564_v62, 0.0  ;;  %v5393_v19 = vld [vmem:[#allocation9 + $0x84] ss:$8 sps:$4 sm:$0xff]  }
 0x1ea   :  { %v567_v2 = vpop.f32.mrf.mxu0  ;;  %915 = vmatmul.mubr.bf16.gmra.mxu1 %v614_v60  ;;  %1217 = vmatprep.subr.bf16.mxu0 %v5393_v19 }
 0x1eb   :  { %v568_v3 = vadd.f32 %v567_v2, %v6394_v18  ;;  %v600_v4 = vmax.f32 %v566_v63, 0.0  ;;  %1218 = vmatpush2.bf16.msra.mxu0 %v5391_v17  ;;  %v5394_v18 = vld [vmem:[%s7281_s19 + $0x70] ss:$8 sps:$4 sm:$0xff]  }
 0x1ec   :  { %1553 = vmatpush1.bf16.msra.mxu1 %v5394_v18 }
 0x1ed   :  { %v601_v6 = vmax.f32 %v568_v3, 0.0  ;;  %v616_v9 = vpack.c.bf16 %v600_v4, %v598_v7  ;;  %1554 = vmatprep.subr.bf16.mxu1 %v5399_v21 }
 0x1ef   :  { %v617_v8 = vpack.c.bf16 %v601_v6, %v599_v5 }
 0x1f0   :  { %1555 = vmatpush1.bf16.msra.mxu1 %v5397_v22 }
 0x1f1   :  { %924 = vmatprep.mubr.bf16.mxu1 %v617_v8  ;;  %1556 = vmatprep.subr.bf16.mxu1 %v5402_v23 }
 0x1f2   :  { %925 = vmatmul.mubr.bf16.gmra.mxu1 %v616_v9 }
 0x1f4   :  { %1557 = vmatpush1.bf16.msra.mxu1 %v5400_v24 }
 0x1f5   :  { %1558 = vmatprep.subr.bf16.mxu1 %v5405_v25 }
 0x1f8   :  { %1559 = vmatpush1.bf16.msra.mxu1 %v5403_v26 }
 0x1f9   :  { %1560 = vmatprep.subr.bf16.mxu1 %v5408_v27 }
 0x1fc   :  { %1561 = vmatpush1.bf16.msra.mxu1 %v5406_v28 }
 0x1fd   :  { %1562 = vmatprep.subr.bf16.mxu1 %v5411_v29 }
 0x200   :  { %1563 = vmatpush1.bf16.msra.mxu1 %v5409_v30 }
 0x201   :  { %1564 = vmatprep.subr.bf16.mxu1 %v5414_v31 }
 0x204   :  { %1565 = vmatpush1.bf16.msra.mxu1 %v5412_v32 }
 0x205   :  { %1566 = vmatprep.subr.bf16.mxu1 %v5417_v33 }
 0x208   :  { %1567 = vmatpush1.bf16.msra.mxu1 %v5415_v34 }
 0x209   :  { %1568 = vmatprep.subr.bf16.mxu1 %v5420_v35 }
 0x20c   :  { %1569 = vmatpush2.bf16.msra.mxu1 %v5418_v36 }
 0x20d   :  { %1570 = vmatprep.subr.bf16.mxu1 %v5423_v37 }
 0x210   :  { %1571 = vmatpush2.bf16.msra.mxu1 %v5421_v38 }
 0x211   :  { %1572 = vmatprep.subr.bf16.mxu1 %v5426_v39 }
 0x214   :  { %1573 = vmatpush2.bf16.msra.mxu1 %v5424_v40 }
 0x215   :  { %1574 = vmatprep.subr.bf16.mxu1 %v5429_v41 }
 0x218   :  { %1575 = vmatpush2.bf16.msra.mxu1 %v5427_v42 }
 0x219   :  { %1576 = vmatprep.subr.bf16.mxu1 %v5432_v43 }
 0x21c   :  { %1577 = vmatpush2.bf16.msra.mxu1 %v5430_v44 }
 0x27a   :  { %v856_v46 = vpop.f32.mrf.mxu1 }
 0x27b   :  { %v857_v53 = vadd.f32 %v856_v46, %v6513_v48 }
 0x27c   :  { %v858_v49 = vpop.f32.mrf.mxu1 }
 0x27d   :  { %v859_v51 = vadd.f32 %v858_v49, %v6510_v47  ;;  %v935_v60 = vmax.f32 %v857_v53, 0.0 }
 0x27e   :  { %v860_v50 = vpop.f32.mrf.mxu1 }
 0x27f   :  { %v861_v52 = vadd.f32 %v860_v50, %v6513_v48  ;;  %v936_v58 = vmax.f32 %v859_v51, 0.0 }
 0x280   :  { %v862_v54 = vpop.f32.mrf.mxu1 }
 0x281   :  { %v863_v55 = vadd.f32 %v862_v54, %v6510_v47  ;;  %v937_v56 = vmax.f32 %v861_v52, 0.0 }
 0x282   :  { %v866_v57 = vpop.f32.mrf.mxu1 }
 0x283   :  { %v938_v59 = vmax.f32 %v863_v55, 0.0  ;;  %v967_v63 = vpack.c.bf16 %v937_v56, %v935_v60  ;;  %v867_v4 = vadd.f32 %v866_v57, %v6513_v48 }
 0x284   :  { %v868_v61 = vpop.f32.mrf.mxu1 }
 0x285   :  { %v968_v62 = vpack.c.bf16 %v938_v59, %v936_v58  ;;  %v869_v2 = vadd.f32 %v868_v61, %v6510_v47  ;;  %v939_v11 = vmax.f32 %v867_v4, 0.0 }
 0x286   :  { %v870_v1 = vpop.f32.mrf.mxu1 }
 0x287   :  { %v871_v3 = vadd.f32 %v870_v1, %v6513_v48  ;;  %1219 = vmatprep.mubr.bf16.mxu0 %v968_v62  ;;  %v940_v9 = vmax.f32 %v869_v2, 0.0 }
 0x288   :  { %v872_v5 = vpop.f32.mrf.mxu1  ;;  %1220 = vmatmul.mubr.bf16.vlgmr.msra.gmra.mxu0 %v967_v63 }
 0x289   :  { %v873_v6 = vadd.f32 %v872_v5, %v6510_v47  ;;  %v941_v7 = vmax.f32 %v871_v3, 0.0 }
 0x28a   :  { %v876_v8 = vpop.f32.mrf.mxu1 }
 0x28b   :  { %v942_v10 = vmax.f32 %v873_v6, 0.0  ;;  %v969_v19 = vpack.c.bf16 %v941_v7, %v939_v11  ;;  %v877_v21 = vadd.f32 %v876_v8, %v6513_v48 }
 0x28c   :  { %v878_v12 = vpop.f32.mrf.mxu1 }
 0x28d   :  { %v970_v16 = vpack.c.bf16 %v942_v10, %v940_v9  ;;  %v879_v18 = vadd.f32 %v878_v12, %v6510_v47  ;;  %v943_v28 = vmax.f32 %v877_v21, 0.0 }
 0x28e   :  { %v880_v17 = vpop.f32.mrf.mxu1 }
 0x28f   :  { %v881_v20 = vadd.f32 %v880_v17, %v6513_v48  ;;  %1229 = vmatprep.mubr.bf16.mxu0 %v970_v16  ;;  %v944_v26 = vmax.f32 %v879_v18, 0.0 }
 0x290   :  { %v882_v22 = vpop.f32.mrf.mxu1  ;;  %1230 = vmatmul.mubr.bf16.gmra.mxu0 %v969_v19 }
 0x291   :  { %v883_v23 = vadd.f32 %v882_v22, %v6510_v47  ;;  %v945_v24 = vmax.f32 %v881_v20, 0.0 }
 0x292   :  { %v886_v25 = vpop.f32.mrf.mxu1 }
 0x293   :  { %v946_v27 = vmax.f32 %v883_v23, 0.0  ;;  %v971_v31 = vpack.c.bf16 %v945_v24, %v943_v28  ;;  %v887_v35 = vadd.f32 %v886_v25, %v6513_v48 }
 0x294   :  { %v888_v29 = vpop.f32.mrf.mxu1 }
 0x295   :  { %v972_v30 = vpack.c.bf16 %v946_v27, %v944_v26  ;;  %v889_v33 = vadd.f32 %v888_v29, %v6510_v47  ;;  %v947_v42 = vmax.f32 %v887_v35, 0.0 }
 0x296   :  { %v890_v32 = vpop.f32.mrf.mxu1 }
 0x297   :  { %v891_v34 = vadd.f32 %v890_v32, %v6513_v48  ;;  %1239 = vmatprep.mubr.bf16.mxu0 %v972_v30  ;;  %v948_v40 = vmax.f32 %v889_v33, 0.0 }
 0x298   :  { %v892_v36 = vpop.f32.mrf.mxu1  ;;  %1240 = vmatmul.mubr.bf16.gmra.mxu0 %v971_v31 }
 0x299   :  { %v893_v37 = vadd.f32 %v892_v36, %v6510_v47  ;;  %v949_v38 = vmax.f32 %v891_v34, 0.0 }
 0x29a   :  { %v896_v39 = vpop.f32.mrf.mxu1 }
 0x29b   :  { %v950_v41 = vmax.f32 %v893_v37, 0.0  ;;  %v973_v45 = vpack.c.bf16 %v949_v38, %v947_v42  ;;  %v897_v51 = vadd.f32 %v896_v39, %v6513_v48  ;;  %v5435_v42 = vld [vmem:[%s7281_s19 + $0xa4] ss:$8 sps:$4 sm:$0xff]  }
 0x29c   :  { %v898_v43 = vpop.f32.mrf.mxu1  ;;  %1578 = vmatprep.subr.bf16.mxu1 %v5435_v42 }
 0x29d   :  { %v974_v44 = vpack.c.bf16 %v950_v41, %v948_v40  ;;  %v899_v49 = vadd.f32 %v898_v43, %v6510_v47  ;;  %v951_v58 = vmax.f32 %v897_v51, 0.0  ;;  %v5436_v43 = vld [vmem:[%s7281_s19 + $0x90] ss:$8 sps:$4 sm:$0xff]  }
 0x29e   :  { %v900_v46 = vpop.f32.mrf.mxu1  ;;  %v5445_v51 = vld [vmem:[#allocation13 + $0x60] ss:$8 sps:$4 sm:$0xff]  }
 0x29f   :  { %v901_v50 = vadd.f32 %v900_v46, %v6513_v48  ;;  %1249 = vmatprep.mubr.bf16.mxu0 %v974_v44  ;;  %v952_v56 = vmax.f32 %v899_v49, 0.0  ;;  %v5441_v44 = vld [vmem:[%s7281_s19 + $0x84] ss:$8 sps:$4 sm:$0xff]   ;;  %v5442_v46 = vld [vmem:[#allocation13 + $0x70] ss:$8 sps:$4 sm:$0xff]  }
 0x2a0   :  { %v902_v52 = vpop.f32.mrf.mxu1  ;;  %1250 = vmatmul.mubr.bf16.gmra.mxu0 %v973_v45  ;;  %v5439_v45 = vld [vmem:[%s7281_s19 + $0x80] ss:$8 sps:$4 sm:$0xff]   ;;  %v5444_v49 = vld [vmem:[#allocation13 + $0x74] ss:$8 sps:$4 sm:$0xff]  }
 0x2a1   :  { %v903_v53 = vadd.f32 %v902_v52, %v6510_v47  ;;  %v953_v54 = vmax.f32 %v901_v50, 0.0  ;;  %v5447_v50 = vld [vmem:[#allocation13 + $0x64] ss:$8 sps:$4 sm:$0xff]   ;;  %1917 = vmatprep.subr.bf16.mxu0 %v5444_v49  ;;  %v5450_v52 = vld [vmem:[#allocation13 + $0x54] ss:$8 sps:$4 sm:$0xff]  }
 0x2a2   :  { %v906_v55 = vpop.f32.mrf.mxu1  ;;  %1918 = vmatpush1.bf16.msra.mxu0 %v5442_v46 }
 0x2a3   :  { %v954_v57 = vmax.f32 %v903_v53, 0.0  ;;  %v975_v61 = vpack.c.bf16 %v953_v54, %v951_v58  ;;  %v907_v2 = vadd.f32 %v906_v55, %v6513_v48  ;;  %1919 = vmatprep.subr.bf16.mxu0 %v5447_v50  ;;  %v5448_v53 = vld [vmem:[#allocation13 + $0x50] ss:$8 sps:$4 sm:$0xff]   ;;  %v5453_v54 = vld [vmem:[#allocation13 + $0x44] ss:$8 sps:$4 sm:$0xff]  }
 0x2a4   :  { %v908_v59 = vpop.f32.mrf.mxu1  ;;  %v5451_v55 = vld [vmem:[#allocation13 + $0x40] ss:$8 sps:$4 sm:$0xff]   ;;  %v5459_v58 = vld [vmem:[#allocation13 + $0x24] ss:$8 sps:$4 sm:$0xff]  }
 0x2a5   :  { %v976_v60 = vpack.c.bf16 %v954_v57, %v952_v56  ;;  %v909_v63 = vadd.f32 %v908_v59, %v6510_v47  ;;  %v955_v9 = vmax.f32 %v907_v2, 0.0  ;;  %v5456_v56 = vld [vmem:[#allocation13 + $0x34] ss:$8 sps:$4 sm:$0xff]   ;;  %v5454_v57 = vld [vmem:[#allocation13 + $0x30] ss:$8 sps:$4 sm:$0xff]  }
 0x2a6   :  { %v910_v62 = vpop.f32.mrf.mxu1  ;;  %1920 = vmatpush1.bf16.msra.mxu0 %v5445_v51  ;;  %v5457_v59 = vld [vmem:[#allocation13 + $0x20] ss:$8 sps:$4 sm:$0xff]   ;;  %v5466_v2 = vld [vmem:[#allocation13 + $0xf0] ss:$8 sps:$4 sm:$0xff]  }
 0x2a7   :  { %v911_v1 = vadd.f32 %v910_v62, %v6513_v48  ;;  %1259 = vmatprep.mubr.bf16.mxu0 %v976_v60  ;;  %v956_v7 = vmax.f32 %v909_v63, 0.0  ;;  %1921 = vmatprep.subr.bf16.mxu0 %v5450_v52  ;;  %v5462_v60 = vld [vmem:[#allocation13 + $0x14] ss:$8 sps:$4 sm:$0xff]   ;;  %v5465_v62 = vld [vmem:[#allocation13 + $0x4] ss:$8 sps:$4 sm:$0xff]  }
 0x2a8   :  { %v912_v3 = vpop.f32.mrf.mxu1  ;;  %1260 = vmatmul.mubr.bf16.gmra.mxu0 %v975_v61  ;;  %v5460_v61 = vld [vmem:[#allocation13 + $0x10] ss:$8 sps:$4 sm:$0xff]   ;;  %v5463_v63 = vld [vmem:[#allocation13] ss:$8 sps:$4 sm:$0xff]  }
 0x2a9   :  { %v913_v4 = vadd.f32 %v912_v3, %v6510_v47  ;;  %v957_v5 = vmax.f32 %v911_v1, 0.0  ;;  %v5468_v1 = vld [vmem:[#allocation13 + $0xf4] ss:$8 sps:$4 sm:$0xff]   ;;  %v5471_v3 = vld [vmem:[#allocation13 + $0xe4] ss:$8 sps:$4 sm:$0xff]  }
 0x2aa   :  { %v916_v6 = vpop.f32.mrf.mxu1  ;;  %1922 = vmatpush1.bf16.msra.mxu0 %v5448_v53 }
 0x2ab   :  { %v958_v8 = vmax.f32 %v913_v4, 0.0  ;;  %v977_v12 = vpack.c.bf16 %v957_v5, %v955_v9  ;;  %v917_v18 = vadd.f32 %v916_v6, %v6513_v48  ;;  %1923 = vmatprep.subr.bf16.mxu0 %v5453_v54  ;;  %v5469_v4 = vld [vmem:[#allocation13 + $0xe0] ss:$8 sps:$4 sm:$0xff]   ;;  %v5474_v5 = vld [vmem:[#allocation13 + $0xd4] ss:$8 sps:$4 sm:$0xff]  }
 0x2ac   :  { %v918_v10 = vpop.f32.mrf.mxu1  ;;  %v5472_v6 = vld [vmem:[#allocation13 + $0xd0] ss:$8 sps:$4 sm:$0xff]   ;;  %v5480_v9 = vld [vmem:[#allocation13 + $0xb4] ss:$8 sps:$4 sm:$0xff]  }
 0x2ad   :  { %v978_v11 = vpack.c.bf16 %v958_v8, %v956_v7  ;;  %v919_v19 = vadd.f32 %v918_v10, %v6510_v47  ;;  %v959_v26 = vmax.f32 %v917_v18, 0.0  ;;  %v5477_v7 = vld [vmem:[#allocation13 + $0xc4] ss:$8 sps:$4 sm:$0xff]   ;;  %v5475_v8 = vld [vmem:[#allocation13 + $0xc0] ss:$8 sps:$4 sm:$0xff]  }
 0x2ae   :  { %v920_v16 = vpop.f32.mrf.mxu1  ;;  %1924 = vmatpush1.bf16.msra.mxu0 %v5451_v55  ;;  %v5478_v10 = vld [vmem:[#allocation13 + $0xb0] ss:$8 sps:$4 sm:$0xff]  }
 0x2af   :  { %v921_v17 = vadd.f32 %v920_v16, %v6513_v48  ;;  %1269 = vmatprep.mubr.bf16.mxu0 %v978_v11  ;;  %v960_v24 = vmax.f32 %v919_v19, 0.0  ;;  %1925 = vmatprep.subr.bf16.mxu0 %v5456_v56  ;;  %v1015_v11 = vld [vmem:[#allocation10] sm:$0x3] }
 0x2b0   :  { %v922_v20 = vpop.f32.mrf.mxu1  ;;  %1270 = vmatmul.mubr.bf16.gmra.mxu0 %v977_v12  ;;  %v6566_v16 = vrot.slane %v1015_v11, %v6388_v14  ;;  %v6569_v19 = vrot.slane %v1015_v11, %v6391_v15 }
 0x2b1   :  { %v923_v21 = vadd.f32 %v922_v20, %v6510_v47  ;;  %v961_v22 = vmax.f32 %v921_v17, 0.0 }
 0x2b2   :  { %v926_v23 = vpop.f32.mrf.mxu1  ;;  %1926 = vmatpush1.bf16.msra.mxu0 %v5454_v57 }
 0x2b3   :  { %v962_v25 = vmax.f32 %v923_v21, 0.0  ;;  %v979_v29 = vpack.c.bf16 %v961_v22, %v959_v26  ;;  %v927_v33 = vadd.f32 %v926_v23, %v6513_v48  ;;  %1927 = vmatprep.subr.bf16.mxu0 %v5459_v58 }
 0x2b4   :  { %v928_v27 = vpop.f32.mrf.mxu1 }
 0x2b5   :  { %v980_v28 = vpack.c.bf16 %v962_v25, %v960_v24  ;;  %v929_v31 = vadd.f32 %v928_v27, %v6510_v47  ;;  %v963_v39 = vmax.f32 %v927_v33, 0.0 }
 0x2b6   :  { %v930_v30 = vpop.f32.mrf.mxu1  ;;  %1928 = vmatpush1.bf16.msra.mxu0 %v5457_v59 }
 0x2b7   :  { %v931_v32 = vadd.f32 %v930_v30, %v6513_v48  ;;  %1279 = vmatprep.mubr.bf16.mxu0 %v980_v28  ;;  %v964_v37 = vmax.f32 %v929_v31, 0.0  ;;  %v5433_v48 = vld [vmem:[%s7281_s19 + $0xa0] ss:$8 sps:$4 sm:$0xff]   ;;  %1929 = vmatprep.subr.bf16.mxu0 %v5462_v60 }
 0x2b8   :  { %v932_v34 = vpop.f32.mrf.mxu1  ;;  %1280 = vmatmul.mubr.bf16.gmra.mxu0 %v979_v29  ;;  %1579 = vmatpush2.bf16.msra.mxu1 %v5433_v48 }
 0x2b9   :  { %v933_v35 = vadd.f32 %v932_v34, %v6510_v47  ;;  %v965_v36 = vmax.f32 %v931_v32, 0.0  ;;  %v5438_v47 = vld [vmem:[%s7281_s19 + $0x94] ss:$8 sps:$4 sm:$0xff]  }
 0x2ba   :  { %1580 = vmatprep.subr.bf16.mxu1 %v5438_v47  ;;  %1930 = vmatpush1.bf16.msra.mxu0 %v5460_v61 }
 0x2bb   :  { %v966_v38 = vmax.f32 %v933_v35, 0.0  ;;  %v981_v41 = vpack.c.bf16 %v965_v36, %v963_v39  ;;  %1931 = vmatprep.subr.bf16.mxu0 %v5465_v62 }
 0x2bc   :  { %1581 = vmatpush2.bf16.msra.mxu1 %v5436_v43 }
 0x2bd   :  { %v982_v40 = vpack.c.bf16 %v966_v38, %v964_v37  ;;  %1582 = vmatprep.subr.bf16.mxu1 %v5441_v44 }
 0x2be   :  { %1932 = vmatpush1.bf16.msra.mxu0 %v5463_v63 }
 0x2bf   :  { %1289 = vmatprep.mubr.bf16.mxu0 %v982_v40  ;;  %1933 = vmatprep.subr.bf16.mxu0 %v5468_v1 }
 0x2c0   :  { %1290 = vmatmul.mubr.bf16.gmra.mxu0 %v981_v41  ;;  %1583 = vmatpush2.bf16.msra.mxu1 %v5439_v45 }
 0x2c2   :  { %1934 = vmatpush2.bf16.msra.mxu0 %v5466_v2 }
 0x2c3   :  { %1935 = vmatprep.subr.bf16.mxu0 %v5471_v3 }
 0x2c6   :  { %1936 = vmatpush2.bf16.msra.mxu0 %v5469_v4 }
 0x2c7   :  { %1937 = vmatprep.subr.bf16.mxu0 %v5474_v5 }
 0x2ca   :  { %1938 = vmatpush2.bf16.msra.mxu0 %v5472_v6 }
 0x2cb   :  { %1939 = vmatprep.subr.bf16.mxu0 %v5477_v7 }
 0x2ce   :  { %1940 = vmatpush2.bf16.msra.mxu0 %v5475_v8 }
 0x2cf   :  { %1941 = vmatprep.subr.bf16.mxu0 %v5480_v9 }
 0x2d2   :  { %1942 = vmatpush2.bf16.msra.mxu0 %v5478_v10 }
 0x348   :  { %v1221_v12 = vpop.f32.mrf.mxu0 }
 0x349   :  { %v1222_v22 = vadd.f32 %v1221_v12, %v6569_v19 }
 0x34a   :  { %v1223_v17 = vpop.f32.mrf.mxu0 }
 0x34b   :  { %v1224_v20 = vadd.f32 %v1223_v17, %v6566_v16  ;;  %v1300_v29 = vmax.f32 %v1222_v22, 0.0 }
 0x34c   :  { %v1225_v18 = vpop.f32.mrf.mxu0 }
 0x34d   :  { %v1226_v21 = vadd.f32 %v1225_v18, %v6569_v19  ;;  %v1301_v27 = vmax.f32 %v1224_v20, 0.0 }
 0x34e   :  { %v1227_v23 = vpop.f32.mrf.mxu0 }
 0x34f   :  { %v1228_v24 = vadd.f32 %v1227_v23, %v6566_v16  ;;  %v1302_v25 = vmax.f32 %v1226_v21, 0.0 }
 0x350   :  { %v1231_v26 = vpop.f32.mrf.mxu0 }
 0x351   :  { %v1303_v28 = vmax.f32 %v1228_v24, 0.0  ;;  %v1332_v32 = vpack.c.bf16 %v1302_v25, %v1300_v29  ;;  %v1232_v36 = vadd.f32 %v1231_v26, %v6569_v19 }
 0x352   :  { %v1233_v30 = vpop.f32.mrf.mxu0 }
 0x353   :  { %v1333_v31 = vpack.c.bf16 %v1303_v28, %v1301_v27  ;;  %v1234_v34 = vadd.f32 %v1233_v30, %v6566_v16  ;;  %v1304_v48 = vmax.f32 %v1232_v36, 0.0 }
 0x354   :  { %v1235_v33 = vpop.f32.mrf.mxu0 }
 0x355   :  { %v1236_v35 = vadd.f32 %v1235_v33, %v6569_v19  ;;  %1584 = vmatprep.mubr.bf16.mxu1 %v1333_v31  ;;  %v1305_v41 = vmax.f32 %v1234_v34, 0.0 }
 0x356   :  { %v1237_v37 = vpop.f32.mrf.mxu0  ;;  %1585 = vmatmul.mubr.bf16.vlgmr.msra.gmra.mxu1 %v1332_v32 }
 0x357   :  { %v1238_v38 = vadd.f32 %v1237_v37, %v6566_v16  ;;  %v1306_v39 = vmax.f32 %v1236_v35, 0.0 }
 0x358   :  { %v1241_v40 = vpop.f32.mrf.mxu0 }
 0x359   :  { %v1307_v42 = vmax.f32 %v1238_v38, 0.0  ;;  %v1334_v44 = vpack.c.bf16 %v1306_v39, %v1304_v48  ;;  %v1242_v50 = vadd.f32 %v1241_v40, %v6569_v19 }
 0x35a   :  { %v1243_v47 = vpop.f32.mrf.mxu0 }
 0x35b   :  { %v1335_v43 = vpack.c.bf16 %v1307_v42, %v1305_v41  ;;  %v1244_v46 = vadd.f32 %v1243_v47, %v6566_v16  ;;  %v1308_v57 = vmax.f32 %v1242_v50, 0.0 }
 0x35c   :  { %v1245_v45 = vpop.f32.mrf.mxu0 }
 0x35d   :  { %v1246_v49 = vadd.f32 %v1245_v45, %v6569_v19  ;;  %1594 = vmatprep.mubr.bf16.mxu1 %v1335_v43  ;;  %v1309_v55 = vmax.f32 %v1244_v46, 0.0 }
 0x35e   :  { %v1247_v51 = vpop.f32.mrf.mxu0  ;;  %1595 = vmatmul.mubr.bf16.gmra.mxu1 %v1334_v44 }
 0x35f   :  { %v1248_v52 = vadd.f32 %v1247_v51, %v6566_v16  ;;  %v1310_v53 = vmax.f32 %v1246_v49, 0.0 }
 0x360   :  { %v1251_v54 = vpop.f32.mrf.mxu0 }
 0x361   :  { %v1311_v56 = vmax.f32 %v1248_v52, 0.0  ;;  %v1336_v60 = vpack.c.bf16 %v1310_v53, %v1308_v57  ;;  %v1252_v1 = vadd.f32 %v1251_v54, %v6569_v19 }
 0x362   :  { %v1253_v58 = vpop.f32.mrf.mxu0 }
 0x363   :  { %v1337_v59 = vpack.c.bf16 %v1311_v56, %v1309_v55  ;;  %v1254_v62 = vadd.f32 %v1253_v58, %v6566_v16  ;;  %v1312_v8 = vmax.f32 %v1252_v1, 0.0 }
 0x364   :  { %v1255_v61 = vpop.f32.mrf.mxu0 }
 0x365   :  { %v1256_v63 = vadd.f32 %v1255_v61, %v6569_v19  ;;  %1604 = vmatprep.mubr.bf16.mxu1 %v1337_v59  ;;  %v1313_v6 = vmax.f32 %v1254_v62, 0.0 }
 0x366   :  { %v1257_v2 = vpop.f32.mrf.mxu0  ;;  %1605 = vmatmul.mubr.bf16.gmra.mxu1 %v1336_v60 }
 0x367   :  { %v1258_v3 = vadd.f32 %v1257_v2, %v6566_v16  ;;  %v1314_v4 = vmax.f32 %v1256_v63, 0.0 }
 0x368   :  { %v1261_v5 = vpop.f32.mrf.mxu0 }
 0x369   :  { %v1315_v7 = vmax.f32 %v1258_v3, 0.0  ;;  %v1338_v11 = vpack.c.bf16 %v1314_v4, %v1312_v8  ;;  %v1262_v20 = vadd.f32 %v1261_v5, %v6569_v19  ;;  %v5483_v8 = vld [vmem:[#allocation13 + $0xa4] ss:$8 sps:$4 sm:$0xff]  }
 0x36a   :  { %v1263_v9 = vpop.f32.mrf.mxu0  ;;  %1943 = vmatprep.subr.bf16.mxu0 %v5483_v8 }
 0x36b   :  { %v1339_v10 = vpack.c.bf16 %v1315_v7, %v1313_v6  ;;  %v1264_v17 = vadd.f32 %v1263_v9, %v6566_v16  ;;  %v1316_v27 = vmax.f32 %v1262_v20, 0.0  ;;  %v5481_v9 = vld [vmem:[#allocation13 + $0xa0] ss:$8 sps:$4 sm:$0xff]  }
 0x36c   :  { %v1265_v12 = vpop.f32.mrf.mxu0  ;;  %1944 = vmatpush2.bf16.msra.mxu0 %v5481_v9  ;;  %v5505_v20 = vld [vmem:[#allocation16 + $0x20] ss:$8 sps:$4 sm:$0xff]   ;;  %v5504_v9 = vld [vmem:[#allocation15 + $0x44] ss:$8 sps:$4 sm:$0xff]  }
 0x36d   :  { %v1266_v18 = vadd.f32 %v1265_v12, %v6569_v19  ;;  %1614 = vmatprep.mubr.bf16.mxu1 %v1339_v10  ;;  %v1317_v25 = vmax.f32 %v1264_v17, 0.0  ;;  %v5486_v10 = vld [vmem:[#allocation13 + $0x94] ss:$8 sps:$4 sm:$0xff]   ;;  %v5490_v12 = vld [vmem:[#allocation16 + $0x30] ss:$8 sps:$4 sm:$0xff]  }
 0x36e   :  { %v1267_v21 = vpop.f32.mrf.mxu0  ;;  %1615 = vmatmul.mubr.bf16.gmra.mxu1 %v1338_v11  ;;  %1945 = vmatprep.subr.bf16.mxu0 %v5486_v10  ;;  %v5489_v11 = vld [vmem:[#allocation13 + $0x84] ss:$8 sps:$4 sm:$0xff]   ;;  %v5492_v17 = vld [vmem:[#allocation16 + $0x34] ss:$8 sps:$4 sm:$0xff]  }
 0x36f   :  { %v1268_v22 = vadd.f32 %v1267_v21, %v6566_v16  ;;  %v1318_v23 = vmax.f32 %v1266_v18, 0.0  ;;  %v5495_v18 = vld [vmem:[#allocation15 + $0x74] ss:$8 sps:$4 sm:$0xff]   ;;  %2166 = vmatprep.subr.bf16.mxu1 %v5492_v17  ;;  %v5507_v21 = vld [vmem:[#allocation16 + $0x24] ss:$8 sps:$4 sm:$0xff]  }
 0x370   :  { %v1271_v24 = vpop.f32.mrf.mxu0  ;;  %2167 = vmatpush1.bf16.msra.mxu1 %v5490_v12  ;;  %v5502_v17 = vld [vmem:[#allocation15 + $0x40] ss:$8 sps:$4 sm:$0xff]  }
 0x371   :  { %v1319_v26 = vmax.f32 %v1268_v22, 0.0  ;;  %v1340_v30 = vpack.c.bf16 %v1318_v23, %v1316_v27  ;;  %v1272_v34 = vadd.f32 %v1271_v24, %v6569_v19  ;;  %2168 = vmatprep.subr.bf16.mxu1 %v5507_v21  ;;  %v5520_v22 = vld [vmem:[#allocation16 + $0x10] ss:$8 sps:$4 sm:$0xff]   ;;  %v5522_v23 = vld [vmem:[#allocation16 + $0x14] ss:$8 sps:$4 sm:$0xff]   ;;  %v5745_v27 = vld [vmem:[%s7280_s1 + $0x8] sm:$0xff]  }
 0x372   :  { %v1273_v28 = vpop.f32.mrf.mxu0  ;;  %v5537_v24 = vld [vmem:[#allocation16 + $0x4] ss:$8 sps:$4 sm:$0xff]   ;;  %v5510_v21 = vld [vmem:[#allocation15 + $0x34] ss:$8 sps:$4 sm:$0xff]  }
 0x373   :  { %v1341_v29 = vpack.c.bf16 %v1319_v26, %v1317_v25  ;;  %v1274_v32 = vadd.f32 %v1273_v28, %v6566_v16  ;;  %v1320_v41 = vmax.f32 %v1272_v34, 0.0  ;;  %v5535_v25 = vld [vmem:[#allocation16] ss:$8 sps:$4 sm:$0xff]   ;;  %v5744_v26 = vld [vmem:[%s7280_s1] sm:$0xff]  }
 0x374   :  { %v1275_v31 = vpop.f32.mrf.mxu0  ;;  %2169 = vmatpush1.bf16.msra.mxu1 %v5505_v20  ;;  %v5746_v28 = vld [vmem:[%s7280_s1 + $0x10] sm:$0xff]  }
 0x375   :  { %v1276_v33 = vadd.f32 %v1275_v31, %v6569_v19  ;;  %1624 = vmatprep.mubr.bf16.mxu1 %v1341_v29  ;;  %v1321_v39 = vmax.f32 %v1274_v32, 0.0  ;;  %2170 = vmatprep.subr.bf16.mxu1 %v5522_v23  ;;  %v5747_v29 = vld [vmem:[%s7280_s1 + $0x18] sm:$0xff]   ;;  %v1380_v31 = vld [vmem:[#allocation12] sm:$0x3] }
 0x376   :  { %v1277_v35 = vpop.f32.mrf.mxu0  ;;  %1625 = vmatmul.mubr.bf16.gmra.mxu1 %v1340_v30  ;;  %v5748_v30 = vld [vmem:[%s7280_s1 + $0x20] sm:$0xff]   ;;  %v6634_v34 = vrot.slane %v1380_v31, %v6388_v14 }
 0x377   :  { %v1278_v36 = vadd.f32 %v1277_v35, %v6566_v16  ;;  %v1322_v37 = vmax.f32 %v1276_v33, 0.0  ;;  %v5749_v33 = vld [vmem:[%s7280_s1 + $0x28] sm:$0xff]   ;;  %v6638_v35 = vrot.slane %v1380_v31, %v6391_v15 }
 0x378   :  { %v1281_v38 = vpop.f32.mrf.mxu0  ;;  %2171 = vmatpush1.bf16.msra.mxu1 %v5520_v22 }
 0x379   :  { %v1323_v40 = vmax.f32 %v1278_v36, 0.0  ;;  %v1342_v47 = vpack.c.bf16 %v1322_v37, %v1320_v41  ;;  %v1282_v46 = vadd.f32 %v1281_v38, %v6569_v19  ;;  %2172 = vmatprep.subr.bf16.mxu1 %v5537_v24 }
 0x37a   :  { %v1283_v42 = vpop.f32.mrf.mxu0 }
 0x37b   :  { %v1343_v48 = vpack.c.bf16 %v1323_v40, %v1321_v39  ;;  %v1284_v44 = vadd.f32 %v1283_v42, %v6566_v16  ;;  %v1324_v55 = vmax.f32 %v1282_v46, 0.0 }
 0x37c   :  { %v1285_v43 = vpop.f32.mrf.mxu0  ;;  %2173 = vmatpush1.bf16.msra.mxu1 %v5535_v25 }
 0x37d   :  { %v1286_v45 = vadd.f32 %v1285_v43, %v6569_v19  ;;  %1634 = vmatprep.mubr.bf16.mxu1 %v1343_v48  ;;  %v1325_v53 = vmax.f32 %v1284_v44, 0.0  ;;  %v5750_v43 = vld [vmem:[%s7280_s1 + $0x30] sm:$0xff]  }
 0x37e   :  { %v1287_v49 = vpop.f32.mrf.mxu0  ;;  %1635 = vmatmul.mubr.bf16.gmra.mxu1 %v1342_v47 }
 0x37f   :  { %v1288_v50 = vadd.f32 %v1287_v49, %v6566_v16  ;;  %v1326_v51 = vmax.f32 %v1286_v45, 0.0 }
 0x380   :  { %v1291_v52 = vpop.f32.mrf.mxu0 }
 0x381   :  { %v1327_v54 = vmax.f32 %v1288_v50, 0.0  ;;  %v1344_v58 = vpack.c.bf16 %v1326_v51, %v1324_v55  ;;  %v1292_v62 = vadd.f32 %v1291_v52, %v6569_v19  ;;  %v5493_v51 = vld [vmem:[#allocation15 + $0x70] ss:$8 sps:$4 sm:$0xff]  }
 0x382   :  { %v1293_v56 = vpop.f32.mrf.mxu0 }
 0x383   :  { %v1345_v57 = vpack.c.bf16 %v1327_v54, %v1325_v53  ;;  %v1294_v60 = vadd.f32 %v1293_v56, %v6566_v16  ;;  %v1328_v5 = vmax.f32 %v1292_v62, 0.0  ;;  %v5498_v54 = vld [vmem:[#allocation15 + $0x64] ss:$8 sps:$4 sm:$0xff]   ;;  %v5501_v62 = vld [vmem:[#allocation15 + $0x54] ss:$8 sps:$4 sm:$0xff]  }
 0x384   :  { %v1295_v59 = vpop.f32.mrf.mxu0 }
 0x385   :  { %v1296_v61 = vadd.f32 %v1295_v59, %v6569_v19  ;;  %1644 = vmatprep.mubr.bf16.mxu1 %v1345_v57  ;;  %v1329_v3 = vmax.f32 %v1294_v60, 0.0  ;;  %v5484_v19 = vld [vmem:[#allocation13 + $0x90] ss:$8 sps:$4 sm:$0xff]  }
 0x386   :  { %v1297_v63 = vpop.f32.mrf.mxu0  ;;  %1645 = vmatmul.mubr.bf16.gmra.mxu1 %v1344_v58  ;;  %1946 = vmatpush2.bf16.msra.mxu0 %v5484_v19 }
 0x387   :  { %v1298_v1 = vadd.f32 %v1297_v63, %v6566_v16  ;;  %v1330_v2 = vmax.f32 %v1296_v61, 0.0  ;;  %v5487_v16 = vld [vmem:[#allocation13 + $0x80] ss:$8 sps:$4 sm:$0xff]   ;;  %1947 = vmatprep.subr.bf16.mxu0 %v5489_v11  ;;  %v5751_v63 = vld [vmem:[%s7280_s1 + $0x38] sm:$0xff]  }
 0x389   :  { %v1331_v4 = vmax.f32 %v1298_v1, 0.0  ;;  %v1346_v7 = vpack.c.bf16 %v1330_v2, %v1328_v5 }
 0x38a   :  { %1948 = vmatpush2.bf16.msra.mxu0 %v5487_v16 }
 0x38b   :  { %v1347_v6 = vpack.c.bf16 %v1331_v4, %v1329_v3  ;;  %2431 = vmatprep.subr.bf16.mxu0 %v5495_v18 }
 0x38d   :  { %1654 = vmatprep.mubr.bf16.mxu1 %v1347_v6  ;;  %v5499_v6 = vld [vmem:[#allocation15 + $0x50] ss:$8 sps:$4 sm:$0xff]  }
 0x38e   :  { %1655 = vmatmul.mubr.bf16.gmra.mxu1 %v1346_v7 }
 0x38f   :  { %2190 = vmatprep.mubr.bf16.mxu1 %v6133_v0 }
 0x396   :  { %4835 = vmatmul.mubr.msk.bf16.vlgmr.msra.gmra.mxu1 %vm432_vm0, %v5744_v26 }
 0x397   :  { %2200 = vmatprep.mubr.bf16.mxu1 %v6133_v0 }
 0x39e   :  { %4836 = vmatmul.mubr.msk.bf16.gmra.mxu1 %vm432_vm0, %v5745_v27  ;;  %v5508_v27 = vld [vmem:[#allocation15 + $0x30] ss:$8 sps:$4 sm:$0xff]  }
 0x39f   :  { %2210 = vmatprep.mubr.bf16.mxu1 %v6133_v0 }
 0x3a6   :  { %4837 = vmatmul.mubr.msk.bf16.gmra.mxu1 %vm432_vm0, %v5746_v28 }
 0x3a7   :  { %2220 = vmatprep.mubr.bf16.mxu1 %v6133_v0 }
 0x3ae   :  { %4838 = vmatmul.mubr.msk.bf16.gmra.mxu1 %vm432_vm0, %v5747_v29 }
 0x3af   :  { %2230 = vmatprep.mubr.bf16.mxu1 %v6133_v0 }
 0x3b6   :  { %4839 = vmatmul.mubr.msk.bf16.gmra.mxu1 %vm432_vm0, %v5748_v30  ;;  %v5513_v30 = vld [vmem:[#allocation15 + $0x24] ss:$8 sps:$4 sm:$0xff]  }
 0x3b7   :  { %2240 = vmatprep.mubr.bf16.mxu1 %v6133_v0 }
 0x3be   :  { %4840 = vmatmul.mubr.msk.bf16.gmra.mxu1 %vm432_vm0, %v5749_v33 }
 0x3bf   :  { %2250 = vmatprep.mubr.bf16.mxu1 %v6133_v0 }
 0x3c6   :  { %4841 = vmatmul.mubr.msk.bf16.gmra.mxu1 %vm432_vm0, %v5750_v43 }
 0x3c7   :  { %2260 = vmatprep.mubr.bf16.mxu1 %v6133_v0  ;;  %v5496_v0 = vld [vmem:[#allocation15 + $0x60] ss:$8 sps:$4 sm:$0xff]  }
 0x3ce   :  { %4842 = vmatmul.mubr.msk.bf16.gmra.mxu1 %vm432_vm0, %v5751_v63 }
 0x416   :  { %v1586_v32 = vpop.f32.mrf.mxu1 }
 0x417   :  { %v1587_v40 = vadd.f32 %v1586_v32, %v6638_v35 }
 0x418   :  { %v1588_v36 = vpop.f32.mrf.mxu1 }
 0x419   :  { %v1589_v38 = vadd.f32 %v1588_v36, %v6634_v34  ;;  %v1665_v46 = vmax.f32 %v1587_v40, 0.0 }
 0x41a   :  { %v1590_v37 = vpop.f32.mrf.mxu1 }
 0x41b   :  { %v1591_v39 = vadd.f32 %v1590_v37, %v6638_v35  ;;  %v1666_v44 = vmax.f32 %v1589_v38, 0.0  ;;  %v5511_v38 = vld [vmem:[#allocation15 + $0x20] ss:$8 sps:$4 sm:$0xff]  }
 0x41c   :  { %v1592_v41 = vpop.f32.mrf.mxu1 }
 0x41d   :  { %v1593_v42 = vadd.f32 %v1592_v41, %v6634_v34  ;;  %v1667_v48 = vmax.f32 %v1591_v39, 0.0  ;;  %v5516_v41 = vld [vmem:[#allocation15 + $0x14] ss:$8 sps:$4 sm:$0xff]  }
 0x41e   :  { %v1596_v47 = vpop.f32.mrf.mxu1 }
 0x41f   :  { %v1668_v45 = vmax.f32 %v1593_v42, 0.0  ;;  %v1697_v52 = vpack.c.bf16 %v1667_v48, %v1665_v46  ;;  %v1597_v57 = vadd.f32 %v1596_v47, %v6638_v35 }
 0x420   :  { %v1598_v49 = vpop.f32.mrf.mxu1 }
 0x421   :  { %v1698_v50 = vpack.c.bf16 %v1668_v45, %v1666_v44  ;;  %v1599_v55 = vadd.f32 %v1598_v49, %v6634_v34  ;;  %v1669_v3 = vmax.f32 %v1597_v57, 0.0  ;;  %v5514_v45 = vld [vmem:[#allocation15 + $0x10] ss:$8 sps:$4 sm:$0xff]  }
 0x422   :  { %v1600_v53 = vpop.f32.mrf.mxu1 }
 0x423   :  { %v1601_v56 = vadd.f32 %v1600_v53, %v6638_v35  ;;  %1949 = vmatprep.mubr.bf16.mxu0 %v1698_v50  ;;  %v1670_v1 = vmax.f32 %v1599_v55, 0.0  ;;  %v5519_v50 = vld [vmem:[#allocation15 + $0x4] ss:$8 sps:$4 sm:$0xff]  }
 0x424   :  { %v1602_v58 = vpop.f32.mrf.mxu1  ;;  %1950 = vmatmul.mubr.bf16.vlgmr.msra.gmra.mxu0 %v1697_v52 }
 0x425   :  { %v1603_v59 = vadd.f32 %v1602_v58, %v6634_v34  ;;  %2432 = vmatpush1.bf16.msra.mxu0 %v5493_v51  ;;  %v1671_v60 = vmax.f32 %v1601_v56, 0.0  ;;  %v5517_v56 = vld [vmem:[#allocation15] ss:$8 sps:$4 sm:$0xff]  }
 0x426   :  { %v1606_v61 = vpop.f32.mrf.mxu1  ;;  %2433 = vmatprep.subr.bf16.mxu0 %v5498_v54 }
 0x427   :  { %v1672_v2 = vmax.f32 %v1603_v59, 0.0  ;;  %v1699_v7 = vpack.c.bf16 %v1671_v60, %v1669_v3  ;;  %v1607_v11 = vadd.f32 %v1606_v61, %v6638_v35  ;;  %v5525_v59 = vld [vmem:[#allocation15 + $0xf4] ss:$8 sps:$4 sm:$0xff]  }
 0x428   :  { %v1608_v4 = vpop.f32.mrf.mxu1 }
 0x429   :  { %v1700_v5 = vpack.c.bf16 %v1672_v2, %v1670_v1  ;;  %2434 = vmatpush1.bf16.msra.mxu0 %v5496_v0  ;;  %v1609_v10 = vadd.f32 %v1608_v4, %v6634_v34  ;;  %v1673_v24 = vmax.f32 %v1607_v11, 0.0  ;;  %v5523_v1 = vld [vmem:[#allocation15 + $0xf0] ss:$8 sps:$4 sm:$0xff]   ;;  %v5528_v4 = vld [vmem:[#allocation15 + $0xe4] ss:$8 sps:$4 sm:$0xff]  }
 0x42a   :  { %v1610_v8 = vpop.f32.mrf.mxu1  ;;  %2435 = vmatprep.subr.bf16.mxu0 %v5501_v62 }
 0x42b   :  { %v1611_v19 = vadd.f32 %v1610_v8, %v6638_v35  ;;  %1959 = vmatprep.mubr.bf16.mxu0 %v1700_v5  ;;  %v1674_v22 = vmax.f32 %v1609_v10, 0.0  ;;  %v5526_v10 = vld [vmem:[#allocation15 + $0xe0] ss:$8 sps:$4 sm:$0xff]  }
 0x42c   :  { %v1612_v16 = vpop.f32.mrf.mxu1  ;;  %1960 = vmatmul.mubr.bf16.gmra.mxu0 %v1699_v7 }
 0x42d   :  { %v1613_v12 = vadd.f32 %v1612_v16, %v6634_v34  ;;  %2436 = vmatpush1.bf16.msra.mxu0 %v5499_v6  ;;  %v1675_v18 = vmax.f32 %v1611_v19, 0.0  ;;  %v5531_v16 = vld [vmem:[#allocation15 + $0xd4] ss:$8 sps:$4 sm:$0xff]  }
 0x42e   :  { %v1616_v20 = vpop.f32.mrf.mxu1  ;;  %2437 = vmatprep.subr.bf16.mxu0 %v5504_v9 }
 0x42f   :  { %v1676_v23 = vmax.f32 %v1613_v12, 0.0  ;;  %v1701_v28 = vpack.c.bf16 %v1675_v18, %v1673_v24  ;;  %v1617_v33 = vadd.f32 %v1616_v20, %v6638_v35 }
 0x430   :  { %v1618_v25 = vpop.f32.mrf.mxu1 }
 0x431   :  { %v1702_v26 = vpack.c.bf16 %v1676_v23, %v1674_v22  ;;  %2438 = vmatpush1.bf16.msra.mxu0 %v5502_v17  ;;  %v1619_v31 = vadd.f32 %v1618_v25, %v6634_v34  ;;  %v1677_v47 = vmax.f32 %v1617_v33, 0.0  ;;  %v5529_v22 = vld [vmem:[#allocation15 + $0xd0] ss:$8 sps:$4 sm:$0xff]   ;;  %v5534_v25 = vld [vmem:[#allocation15 + $0xc4] ss:$8 sps:$4 sm:$0xff]  }
 0x432   :  { %v1620_v29 = vpop.f32.mrf.mxu1  ;;  %2439 = vmatprep.subr.bf16.mxu0 %v5510_v21 }
 0x433   :  { %v1621_v32 = vadd.f32 %v1620_v29, %v6638_v35  ;;  %1969 = vmatprep.mubr.bf16.mxu0 %v1702_v26  ;;  %v1678_v42 = vmax.f32 %v1619_v31, 0.0  ;;  %v5532_v31 = vld [vmem:[#allocation15 + $0xc0] ss:$8 sps:$4 sm:$0xff]  }
 0x434   :  { %v1622_v36 = vpop.f32.mrf.mxu1  ;;  %1970 = vmatmul.mubr.bf16.gmra.mxu0 %v1701_v28 }
 0x435   :  { %v1623_v37 = vadd.f32 %v1622_v36, %v6634_v34  ;;  %2440 = vmatpush1.bf16.msra.mxu0 %v5508_v27  ;;  %v1679_v39 = vmax.f32 %v1621_v32, 0.0  ;;  %v5540_v36 = vld [vmem:[#allocation15 + $0xb4] ss:$8 sps:$4 sm:$0xff]  }
 0x436   :  { %v1626_v40 = vpop.f32.mrf.mxu1  ;;  %2441 = vmatprep.subr.bf16.mxu0 %v5513_v30 }
 0x437   :  { %v1680_v48 = vmax.f32 %v1623_v37, 0.0  ;;  %v1703_v46 = vpack.c.bf16 %v1679_v39, %v1677_v47  ;;  %v1627_v53 = vadd.f32 %v1626_v40, %v6638_v35 }
 0x438   :  { %v1628_v43 = vpop.f32.mrf.mxu1 }
 0x439   :  { %v1704_v44 = vpack.c.bf16 %v1680_v48, %v1678_v42  ;;  %2442 = vmatpush1.bf16.msra.mxu0 %v5511_v38  ;;  %v1629_v51 = vadd.f32 %v1628_v43, %v6634_v34  ;;  %v1681_v61 = vmax.f32 %v1627_v53, 0.0  ;;  %v5538_v42 = vld [vmem:[#allocation15 + $0xb0] ss:$8 sps:$4 sm:$0xff]  }
 0x43a   :  { %v1630_v49 = vpop.f32.mrf.mxu1  ;;  %2443 = vmatprep.subr.bf16.mxu0 %v5516_v41 }
 0x43b   :  { %v1631_v52 = vadd.f32 %v1630_v49, %v6638_v35  ;;  %1979 = vmatprep.mubr.bf16.mxu0 %v1704_v44  ;;  %v1682_v0 = vmax.f32 %v1629_v51, 0.0 }
 0x43c   :  { %v1632_v54 = vpop.f32.mrf.mxu1  ;;  %1980 = vmatmul.mubr.bf16.gmra.mxu0 %v1703_v46 }
 0x43d   :  { %v1633_v55 = vadd.f32 %v1632_v54, %v6634_v34  ;;  %2444 = vmatpush1.bf16.msra.mxu0 %v5514_v45  ;;  %v1683_v57 = vmax.f32 %v1631_v52, 0.0 }
 0x43e   :  { %v1636_v58 = vpop.f32.mrf.mxu1  ;;  %2445 = vmatprep.subr.bf16.mxu0 %v5519_v50 }
 0x43f   :  { %v1684_v60 = vmax.f32 %v1633_v55, 0.0  ;;  %v1705_v2 = vpack.c.bf16 %v1683_v57, %v1681_v61  ;;  %v1637_v7 = vadd.f32 %v1636_v58, %v6638_v35  ;;  %v5541_v57 = vld [vmem:[#allocation15 + $0xa0] ss:$8 sps:$4 sm:$0xff]   ;;  %v5546_v58 = vld [vmem:[#allocation15 + $0x94] ss:$8 sps:$4 sm:$0xff]  }
 0x440   :  { %v1638_v62 = vpop.f32.mrf.mxu1  ;;  %v5555_v61 = vld [vmem:[#allocation19 + $0x64] ss:$8 sps:$4 sm:$0xff]  }
 0x441   :  { %v1706_v63 = vpack.c.bf16 %v1684_v60, %v1682_v0  ;;  %2446 = vmatpush1.bf16.msra.mxu0 %v5517_v56  ;;  %v1639_v5 = vadd.f32 %v1638_v62, %v6634_v34  ;;  %v1685_v18 = vmax.f32 %v1637_v7, 0.0  ;;  %v5543_v56 = vld [vmem:[#allocation15 + $0xa4] ss:$8 sps:$4 sm:$0xff]   ;;  %v5547_v0 = vld [vmem:[#allocation15 + $0x80] ss:$8 sps:$4 sm:$0xff]  }
 0x442   :  { %v1640_v3 = vpop.f32.mrf.mxu1  ;;  %2447 = vmatprep.subr.bf16.mxu0 %v5525_v59  ;;  %v5544_v59 = vld [vmem:[#allocation15 + $0x90] ss:$8 sps:$4 sm:$0xff]   ;;  %v5553_v62 = vld [vmem:[#allocation19 + $0x60] ss:$8 sps:$4 sm:$0xff]  }
 0x443   :  { %v1641_v6 = vadd.f32 %v1640_v3, %v6638_v35  ;;  %1989 = vmatprep.mubr.bf16.mxu0 %v1706_v63  ;;  %v1686_v12 = vmax.f32 %v1639_v5, 0.0  ;;  %v5552_v60 = vld [vmem:[#allocation19 + $0x74] ss:$8 sps:$4 sm:$0xff]   ;;  %v5559_v3 = vld [vmem:[#allocation19 + $0x40] ss:$8 sps:$4 sm:$0xff]  }
 0x444   :  { %v1642_v8 = vpop.f32.mrf.mxu1  ;;  %1990 = vmatmul.mubr.bf16.gmra.mxu0 %v1705_v2  ;;  %2840 = vmatprep.subr.bf16.mxu1 %v5552_v60  ;;  %v5558_v63 = vld [vmem:[#allocation19 + $0x54] ss:$8 sps:$4 sm:$0xff]   ;;  %v5561_v2 = vld [vmem:[#allocation19 + $0x44] ss:$8 sps:$4 sm:$0xff]   ;;  %v5562_v5 = vld [vmem:[#allocation19 + $0x30] ss:$8 sps:$4 sm:$0xff]  }
 0x445   :  { %v1643_v9 = vadd.f32 %v1642_v8, %v6634_v34  ;;  %2448 = vmatpush2.bf16.msra.mxu0 %v5523_v1  ;;  %v1687_v19 = vmax.f32 %v1641_v6, 0.0  ;;  %v5556_v1 = vld [vmem:[#allocation19 + $0x50] ss:$8 sps:$4 sm:$0xff]   ;;  %v5567_v6 = vld [vmem:[#allocation19 + $0x24] ss:$8 sps:$4 sm:$0xff]  }
 0x446   :  { %v1646_v11 = vpop.f32.mrf.mxu1  ;;  %2449 = vmatprep.subr.bf16.mxu0 %v5528_v4  ;;  %v5564_v4 = vld [vmem:[#allocation19 + $0x34] ss:$8 sps:$4 sm:$0xff]   ;;  %v5565_v7 = vld [vmem:[#allocation19 + $0x20] ss:$8 sps:$4 sm:$0xff]  }
 0x447   :  { %v1688_v17 = vmax.f32 %v1643_v9, 0.0  ;;  %v1707_v23 = vpack.c.bf16 %v1687_v19, %v1685_v18  ;;  %v1647_v28 = vadd.f32 %v1646_v11, %v6638_v35  ;;  %v5570_v8 = vld [vmem:[#allocation19 + $0x14] ss:$8 sps:$4 sm:$0xff]   ;;  %v5568_v9 = vld [vmem:[#allocation19 + $0x10] ss:$8 sps:$4 sm:$0xff]  }
 0x448   :  { %v1648_v20 = vpop.f32.mrf.mxu1  ;;  %v5571_v19 = vld [vmem:[#allocation19] ss:$8 sps:$4 sm:$0xff]   ;;  %v5576_v11 = vld [vmem:[#allocation19 + $0xf4] ss:$8 sps:$4 sm:$0xff]  }
 0x449   :  { %v1708_v21 = vpack.c.bf16 %v1688_v17, %v1686_v12  ;;  %2450 = vmatpush2.bf16.msra.mxu0 %v5526_v10  ;;  %v1649_v26 = vadd.f32 %v1648_v20, %v6634_v34  ;;  %v1689_v39 = vmax.f32 %v1647_v28, 0.0  ;;  %v5573_v10 = vld [vmem:[#allocation19 + $0x4] ss:$8 sps:$4 sm:$0xff]   ;;  %v5577_v17 = vld [vmem:[#allocation19 + $0xe0] ss:$8 sps:$4 sm:$0xff]  }
 0x44a   :  { %v1650_v24 = vpop.f32.mrf.mxu1  ;;  %2451 = vmatprep.subr.bf16.mxu0 %v5531_v16  ;;  %v5574_v16 = vld [vmem:[#allocation19 + $0xf0] ss:$8 sps:$4 sm:$0xff]   ;;  %v5579_v12 = vld [vmem:[#allocation19 + $0xe4] ss:$8 sps:$4 sm:$0xff]   ;;  %v5582_v18 = vld [vmem:[#allocation19 + $0xd4] ss:$8 sps:$4 sm:$0xff]  }
 0x44b   :  { %v1651_v27 = vadd.f32 %v1650_v24, %v6638_v35  ;;  %1999 = vmatprep.mubr.bf16.mxu0 %v1708_v21  ;;  %v1690_v37 = vmax.f32 %v1649_v26, 0.0  ;;  %v5580_v20 = vld [vmem:[#allocation19 + $0xd0] ss:$8 sps:$4 sm:$0xff]   ;;  %v5585_v21 = vld [vmem:[#allocation19 + $0xc4] ss:$8 sps:$4 sm:$0xff]  }
 0x44c   :  { %v1652_v29 = vpop.f32.mrf.mxu1  ;;  %2000 = vmatmul.mubr.bf16.gmra.mxu0 %v1707_v23  ;;  %v5588_v23 = vld [vmem:[#allocation19 + $0xb4] ss:$8 sps:$4 sm:$0xff]   ;;  %v5586_v24 = vld [vmem:[#allocation19 + $0xb0] ss:$8 sps:$4 sm:$0xff]  }
 0x44d   :  { %v1653_v30 = vadd.f32 %v1652_v29, %v6634_v34  ;;  %2452 = vmatpush2.bf16.msra.mxu0 %v5529_v22  ;;  %v1691_v32 = vmax.f32 %v1651_v27, 0.0  ;;  %v5583_v22 = vld [vmem:[#allocation19 + $0xc0] ss:$8 sps:$4 sm:$0xff]  }
 0x44e   :  { %v1656_v33 = vpop.f32.mrf.mxu1  ;;  %2453 = vmatprep.subr.bf16.mxu0 %v5534_v25  ;;  %v1745_v25 = vld [vmem:[%s7242_s11] sm:$0x3] }
 0x44f   :  { %v1692_v38 = vmax.f32 %v1653_v30, 0.0  ;;  %v1709_v48 = vpack.c.bf16 %v1691_v32, %v1689_v39  ;;  %v1657_v45 = vadd.f32 %v1656_v33, %v6638_v35  ;;  %v6685_v27 = vrot.slane %v1745_v25, %v6388_v14 }
 0x450   :  { %v1658_v40 = vpop.f32.mrf.mxu1  ;;  %v6688_v28 = vrot.slane %v1745_v25, %v6391_v15 }
 0x451   :  { %v1710_v41 = vpack.c.bf16 %v1692_v38, %v1690_v37  ;;  %2454 = vmatpush2.bf16.msra.mxu0 %v5532_v31  ;;  %v1659_v43 = vadd.f32 %v1658_v40, %v6634_v34  ;;  %v1693_v53 = vmax.f32 %v1657_v45, 0.0 }
 0x452   :  { %v1660_v47 = vpop.f32.mrf.mxu1  ;;  %2455 = vmatprep.subr.bf16.mxu0 %v5540_v36 }
 0x453   :  { %v1661_v44 = vadd.f32 %v1660_v47, %v6638_v35  ;;  %2009 = vmatprep.mubr.bf16.mxu0 %v1710_v41  ;;  %v1694_v51 = vmax.f32 %v1659_v43, 0.0  ;;  %v5549_v35 = vld [vmem:[#allocation15 + $0x84] ss:$8 sps:$4 sm:$0xff]  }
 0x454   :  { %v1662_v46 = vpop.f32.mrf.mxu1  ;;  %2010 = vmatmul.mubr.bf16.gmra.mxu0 %v1709_v48 }
 0x455   :  { %v1663_v49 = vadd.f32 %v1662_v46, %v6634_v34  ;;  %2456 = vmatpush2.bf16.msra.mxu0 %v5538_v42  ;;  %v1695_v50 = vmax.f32 %v1661_v44, 0.0  ;;  %v5550_v34 = vld [vmem:[#allocation19 + $0x70] ss:$8 sps:$4 sm:$0xff]  }
 0x456   :  { %2457 = vmatprep.subr.bf16.mxu0 %v5543_v56  ;;  %2841 = vmatpush1.bf16.msra.mxu1 %v5550_v34 }
 0x457   :  { %v1696_v52 = vmax.f32 %v1663_v49, 0.0  ;;  %v1711_v55 = vpack.c.bf16 %v1695_v50, %v1693_v53  ;;  %2842 = vmatprep.subr.bf16.mxu1 %v5555_v61 }
 0x459   :  { %v1712_v54 = vpack.c.bf16 %v1696_v52, %v1694_v51  ;;  %2458 = vmatpush2.bf16.msra.mxu0 %v5541_v57 }
 0x45a   :  { %2459 = vmatprep.subr.bf16.mxu0 %v5546_v58  ;;  %2843 = vmatpush1.bf16.msra.mxu1 %v5553_v62 }
 0x45b   :  { %2019 = vmatprep.mubr.bf16.mxu0 %v1712_v54  ;;  %2844 = vmatprep.subr.bf16.mxu1 %v5558_v63 }
 0x45c   :  { %2020 = vmatmul.mubr.bf16.gmra.mxu0 %v1711_v55 }
 0x45d   :  { %2460 = vmatpush2.bf16.msra.mxu0 %v5544_v59 }
 0x45e   :  { %2461 = vmatprep.subr.bf16.mxu0 %v5549_v35  ;;  %2845 = vmatpush1.bf16.msra.mxu1 %v5556_v1 }
 0x45f   :  { %2846 = vmatprep.subr.bf16.mxu1 %v5561_v2 }
 0x461   :  { %2462 = vmatpush2.bf16.msra.mxu0 %v5547_v0 }
 0x462   :  { %2847 = vmatpush1.bf16.msra.mxu1 %v5559_v3 }
 0x463   :  { %2848 = vmatprep.subr.bf16.mxu1 %v5564_v4 }
 0x466   :  { %2849 = vmatpush1.bf16.msra.mxu1 %v5562_v5 }
 0x467   :  { %2850 = vmatprep.subr.bf16.mxu1 %v5567_v6 }
 0x46a   :  { %2851 = vmatpush1.bf16.msra.mxu1 %v5565_v7 }
 0x46b   :  { %2852 = vmatprep.subr.bf16.mxu1 %v5570_v8 }
 0x46e   :  { %2853 = vmatpush1.bf16.msra.mxu1 %v5568_v9 }
 0x46f   :  { %2854 = vmatprep.subr.bf16.mxu1 %v5573_v10 }
 0x472   :  { %2855 = vmatpush1.bf16.msra.mxu1 %v5571_v19 }
 0x473   :  { %2856 = vmatprep.subr.bf16.mxu1 %v5576_v11 }
 0x476   :  { %2857 = vmatpush2.bf16.msra.mxu1 %v5574_v16 }
 0x477   :  { %2858 = vmatprep.subr.bf16.mxu1 %v5579_v12 }
 0x47a   :  { %2859 = vmatpush2.bf16.msra.mxu1 %v5577_v17 }
 0x47b   :  { %2860 = vmatprep.subr.bf16.mxu1 %v5582_v18 }
 0x47e   :  { %2861 = vmatpush2.bf16.msra.mxu1 %v5580_v20 }
 0x47f   :  { %2862 = vmatprep.subr.bf16.mxu1 %v5585_v21 }
 0x482   :  { %2863 = vmatpush2.bf16.msra.mxu1 %v5583_v22 }
 0x483   :  { %2864 = vmatprep.subr.bf16.mxu1 %v5588_v23 }
 0x486   :  { %2865 = vmatpush2.bf16.msra.mxu1 %v5586_v24 }
 0x4e4   :  { %v1951_v26 = vpop.f32.mrf.mxu0 }
 0x4e5   :  { %v1952_v33 = vadd.f32 %v1951_v26, %v6688_v28 }
 0x4e6   :  { %v1953_v29 = vpop.f32.mrf.mxu0 }
 0x4e7   :  { %v1954_v31 = vadd.f32 %v1953_v29, %v6685_v27  ;;  %v2030_v42 = vmax.f32 %v1952_v33, 0.0 }
 0x4e8   :  { %v1955_v30 = vpop.f32.mrf.mxu0 }
 0x4e9   :  { %v1956_v32 = vadd.f32 %v1955_v30, %v6688_v28  ;;  %v2031_v40 = vmax.f32 %v1954_v31, 0.0 }
 0x4ea   :  { %v1957_v36 = vpop.f32.mrf.mxu0 }
 0x4eb   :  { %v1958_v37 = vadd.f32 %v1957_v36, %v6685_v27  ;;  %v2032_v38 = vmax.f32 %v1956_v32, 0.0 }
 0x4ec   :  { %v1961_v39 = vpop.f32.mrf.mxu0 }
 0x4ed   :  { %v2033_v41 = vmax.f32 %v1958_v37, 0.0  ;;  %v2062_v43 = vpack.c.bf16 %v2032_v38, %v2030_v42  ;;  %v1962_v49 = vadd.f32 %v1961_v39, %v6688_v28 }
 0x4ee   :  { %v1963_v48 = vpop.f32.mrf.mxu0 }
 0x4ef   :  { %v2063_v47 = vpack.c.bf16 %v2033_v41, %v2031_v40  ;;  %v1964_v45 = vadd.f32 %v1963_v48, %v6685_v27  ;;  %v2034_v56 = vmax.f32 %v1962_v49, 0.0 }
 0x4f0   :  { %v1965_v44 = vpop.f32.mrf.mxu0 }
 0x4f1   :  { %v1966_v46 = vadd.f32 %v1965_v44, %v6688_v28  ;;  %2463 = vmatprep.mubr.bf16.mxu0 %v2063_v47  ;;  %v2035_v54 = vmax.f32 %v1964_v45, 0.0 }
 0x4f2   :  { %v1967_v50 = vpop.f32.mrf.mxu0  ;;  %2464 = vmatmul.mubr.bf16.vlgmr.msra.gmra.mxu0 %v2062_v43 }
 0x4f3   :  { %v1968_v51 = vadd.f32 %v1967_v50, %v6685_v27  ;;  %v2036_v52 = vmax.f32 %v1966_v46, 0.0 }
 0x4f4   :  { %v1971_v53 = vpop.f32.mrf.mxu0 }
 0x4f5   :  { %v2037_v55 = vmax.f32 %v1968_v51, 0.0  ;;  %v2064_v59 = vpack.c.bf16 %v2036_v52, %v2034_v56  ;;  %v1972_v60 = vadd.f32 %v1971_v53, %v6688_v28 }
 0x4f6   :  { %v1973_v57 = vpop.f32.mrf.mxu0 }
 0x4f7   :  { %v2065_v58 = vpack.c.bf16 %v2037_v55, %v2035_v54  ;;  %v1974_v0 = vadd.f32 %v1973_v57, %v6685_v27  ;;  %v2038_v4 = vmax.f32 %v1972_v60, 0.0 }
 0x4f8   :  { %v1975_v35 = vpop.f32.mrf.mxu0 }
 0x4f9   :  { %v1976_v34 = vadd.f32 %v1975_v35, %v6688_v28  ;;  %2473 = vmatprep.mubr.bf16.mxu0 %v2065_v58  ;;  %v2039_v2 = vmax.f32 %v1974_v0, 0.0 }
 0x4fa   :  { %v1977_v61 = vpop.f32.mrf.mxu0  ;;  %2474 = vmatmul.mubr.bf16.gmra.mxu0 %v2064_v59 }
 0x4fb   :  { %v1978_v62 = vadd.f32 %v1977_v61, %v6685_v27  ;;  %v2040_v63 = vmax.f32 %v1976_v34, 0.0 }
 0x4fc   :  { %v1981_v1 = vpop.f32.mrf.mxu0 }
 0x4fd   :  { %v2041_v3 = vmax.f32 %v1978_v62, 0.0  ;;  %v2066_v7 = vpack.c.bf16 %v2040_v63, %v2038_v4  ;;  %v1982_v19 = vadd.f32 %v1981_v1, %v6688_v28 }
 0x4fe   :  { %v1983_v5 = vpop.f32.mrf.mxu0 }
 0x4ff   :  { %v2067_v6 = vpack.c.bf16 %v2041_v3, %v2039_v2  ;;  %v1984_v9 = vadd.f32 %v1983_v5, %v6685_v27  ;;  %v2042_v21 = vmax.f32 %v1982_v19, 0.0 }
 0x500   :  { %v1985_v8 = vpop.f32.mrf.mxu0 }
 0x501   :  { %v1986_v10 = vadd.f32 %v1985_v8, %v6688_v28  ;;  %2483 = vmatprep.mubr.bf16.mxu0 %v2067_v6  ;;  %v2043_v18 = vmax.f32 %v1984_v9, 0.0 }
 0x502   :  { %v1987_v11 = vpop.f32.mrf.mxu0  ;;  %2484 = vmatmul.mubr.bf16.gmra.mxu0 %v2066_v7 }
 0x503   :  { %v1988_v16 = vadd.f32 %v1987_v11, %v6685_v27  ;;  %v2044_v12 = vmax.f32 %v1986_v10, 0.0 }
 0x504   :  { %v1991_v17 = vpop.f32.mrf.mxu0 }
 0x505   :  { %v2045_v20 = vmax.f32 %v1988_v16, 0.0  ;;  %v2068_v24 = vpack.c.bf16 %v2044_v12, %v2042_v21  ;;  %v1992_v30 = vadd.f32 %v1991_v17, %v6688_v28  ;;  %v5589_v21 = vld [vmem:[#allocation19 + $0xa0] ss:$8 sps:$4 sm:$0xff]  }
 0x506   :  { %v1993_v22 = vpop.f32.mrf.mxu0 }
 0x507   :  { %v2069_v23 = vpack.c.bf16 %v2045_v20, %v2043_v18  ;;  %v1994_v26 = vadd.f32 %v1993_v22, %v6685_v27  ;;  %v2046_v39 = vmax.f32 %v1992_v30, 0.0  ;;  %v5591_v20 = vld [vmem:[#allocation19 + $0xa4] ss:$8 sps:$4 sm:$0xff]   ;;  %v5594_v22 = vld [vmem:[#allocation19 + $0x94] ss:$8 sps:$4 sm:$0xff]  }
 0x508   :  { %v1995_v25 = vpop.f32.mrf.mxu0  ;;  %2866 = vmatprep.subr.bf16.mxu1 %v5591_v20  ;;  %v5603_v30 = vld [vmem:[#allocation22 + $0x64] ss:$8 sps:$4 sm:$0xff]  }
 0x509   :  { %v1996_v29 = vadd.f32 %v1995_v25, %v6688_v28  ;;  %2493 = vmatprep.mubr.bf16.mxu0 %v2069_v23  ;;  %v2047_v37 = vmax.f32 %v1994_v26, 0.0  ;;  %2867 = vmatpush2.bf16.msra.mxu1 %v5589_v21  ;;  %v5592_v23 = vld [vmem:[#allocation19 + $0x90] ss:$8 sps:$4 sm:$0xff]  }
 0x50a   :  { %v1997_v31 = vpop.f32.mrf.mxu0  ;;  %2494 = vmatmul.mubr.bf16.gmra.mxu0 %v2068_v24  ;;  %2868 = vmatprep.subr.bf16.mxu1 %v5594_v22  ;;  %v5595_v24 = vld [vmem:[#allocation19 + $0x80] ss:$8 sps:$4 sm:$0xff]   ;;  %v5598_v26 = vld [vmem:[#allocation22 + $0x70] ss:$8 sps:$4 sm:$0xff]  }
 0x50b   :  { %v1998_v32 = vadd.f32 %v1997_v31, %v6685_v27  ;;  %v2048_v33 = vmax.f32 %v1996_v29, 0.0  ;;  %v5600_v29 = vld [vmem:[#allocation22 + $0x74] ss:$8 sps:$4 sm:$0xff]  }
 0x50c   :  { %v2001_v36 = vpop.f32.mrf.mxu0  ;;  %3205 = vmatprep.subr.bf16.mxu0 %v5600_v29 }
 0x50d   :  { %v2049_v38 = vmax.f32 %v1998_v32, 0.0  ;;  %v2070_v42 = vpack.c.bf16 %v2048_v33, %v2046_v39  ;;  %v2002_v44 = vadd.f32 %v2001_v36, %v6688_v28  ;;  %2869 = vmatpush2.bf16.msra.mxu1 %v5592_v23  ;;  %3206 = vmatpush1.bf16.msra.mxu0 %v5598_v26  ;;  %v5601_v32 = vld [vmem:[#allocation22 + $0x60] ss:$8 sps:$4 sm:$0xff]   ;;  %v5606_v33 = vld [vmem:[#allocation22 + $0x54] ss:$8 sps:$4 sm:$0xff]  }
 0x50e   :  { %v2003_v40 = vpop.f32.mrf.mxu0  ;;  %3207 = vmatprep.subr.bf16.mxu0 %v5603_v30 }
 0x50f   :  { %v2071_v41 = vpack.c.bf16 %v2049_v38, %v2047_v37  ;;  %v2004_v47 = vadd.f32 %v2003_v40, %v6685_v27  ;;  %v2050_v53 = vmax.f32 %v2002_v44, 0.0  ;;  %v5604_v37 = vld [vmem:[#allocation22 + $0x50] ss:$8 sps:$4 sm:$0xff]   ;;  %v5609_v38 = vld [vmem:[#allocation22 + $0x44] ss:$8 sps:$4 sm:$0xff]  }
 0x510   :  { %v2005_v48 = vpop.f32.mrf.mxu0  ;;  %v5607_v40 = vld [vmem:[#allocation22 + $0x40] ss:$8 sps:$4 sm:$0xff]  }
 0x511   :  { %v2006_v43 = vadd.f32 %v2005_v48, %v6688_v28  ;;  %2503 = vmatprep.mubr.bf16.mxu0 %v2071_v41  ;;  %v2051_v51 = vmax.f32 %v2004_v47, 0.0  ;;  %3208 = vmatpush1.bf16.msra.mxu0 %v5601_v32  ;;  %v5612_v41 = vld [vmem:[#allocation22 + $0x34] ss:$8 sps:$4 sm:$0xff]   ;;  %v5610_v48 = vld [vmem:[#allocation22 + $0x30] ss:$8 sps:$4 sm:$0xff]  }
 0x512   :  { %v2007_v45 = vpop.f32.mrf.mxu0  ;;  %2504 = vmatmul.mubr.bf16.gmra.mxu0 %v2070_v42  ;;  %3209 = vmatprep.subr.bf16.mxu0 %v5606_v33  ;;  %v5615_v47 = vld [vmem:[#allocation22 + $0x24] ss:$8 sps:$4 sm:$0xff]   ;;  %v5613_v44 = vld [vmem:[#allocation22 + $0x20] ss:$8 sps:$4 sm:$0xff]  }
 0x513   :  { %v2008_v46 = vadd.f32 %v2007_v45, %v6685_v27  ;;  %v2052_v49 = vmax.f32 %v2006_v43, 0.0  ;;  %v5618_v45 = vld [vmem:[#allocation22 + $0x14] ss:$8 sps:$4 sm:$0xff]  }
 0x514   :  { %v2011_v50 = vpop.f32.mrf.mxu0 }
 0x515   :  { %v2053_v52 = vmax.f32 %v2008_v46, 0.0  ;;  %v2072_v56 = vpack.c.bf16 %v2052_v49, %v2050_v53  ;;  %v2012_v35 = vadd.f32 %v2011_v50, %v6688_v28  ;;  %3210 = vmatpush1.bf16.msra.mxu0 %v5604_v37  ;;  %v5616_v49 = vld [vmem:[#allocation22 + $0x10] ss:$8 sps:$4 sm:$0xff]   ;;  %v5621_v50 = vld [vmem:[#allocation22 + $0x4] ss:$8 sps:$4 sm:$0xff]  }
 0x516   :  { %v2013_v54 = vpop.f32.mrf.mxu0  ;;  %3211 = vmatprep.subr.bf16.mxu0 %v5609_v38  ;;  %v5624_v53 = vld [vmem:[#allocation22 + $0xf4] ss:$8 sps:$4 sm:$0xff]  }
 0x517   :  { %v2073_v55 = vpack.c.bf16 %v2053_v52, %v2051_v51  ;;  %v2014_v58 = vadd.f32 %v2013_v54, %v6685_v27  ;;  %v2054_v1 = vmax.f32 %v2012_v35, 0.0  ;;  %v5619_v52 = vld [vmem:[#allocation22] ss:$8 sps:$4 sm:$0xff]  }
 0x518   :  { %v2015_v57 = vpop.f32.mrf.mxu0 }
 0x519   :  { %v2016_v59 = vadd.f32 %v2015_v57, %v6688_v28  ;;  %2513 = vmatprep.mubr.bf16.mxu0 %v2073_v55  ;;  %v2055_v62 = vmax.f32 %v2014_v58, 0.0  ;;  %3212 = vmatpush1.bf16.msra.mxu0 %v5607_v40  ;;  %v5622_v55 = vld [vmem:[#allocation22 + $0xf0] ss:$8 sps:$4 sm:$0xff]   ;;  %v5625_v58 = vld [vmem:[#allocation22 + $0xe0] ss:$8 sps:$4 sm:$0xff]  }
 0x51a   :  { %v2017_v0 = vpop.f32.mrf.mxu0  ;;  %2514 = vmatmul.mubr.bf16.gmra.mxu0 %v2072_v56  ;;  %3213 = vmatprep.subr.bf16.mxu0 %v5612_v41  ;;  %v5627_v56 = vld [vmem:[#allocation22 + $0xe4] ss:$8 sps:$4 sm:$0xff]  }
 0x51b   :  { %v2018_v34 = vadd.f32 %v2017_v0, %v6685_v27  ;;  %v2056_v60 = vmax.f32 %v2016_v59, 0.0  ;;  %v5630_v59 = vld [vmem:[#allocation22 + $0xd4] ss:$8 sps:$4 sm:$0xff]   ;;  %v5628_v0 = vld [vmem:[#allocation22 + $0xd0] ss:$8 sps:$4 sm:$0xff]  }
 0x51c   :  { %v2021_v61 = vpop.f32.mrf.mxu0 }
 0x51d   :  { %v2057_v63 = vmax.f32 %v2018_v34, 0.0  ;;  %v2074_v4 = vpack.c.bf16 %v2056_v60, %v2054_v1  ;;  %v2022_v8 = vadd.f32 %v2021_v61, %v6688_v28  ;;  %3214 = vmatpush1.bf16.msra.mxu0 %v5610_v48  ;;  %v5633_v34 = vld [vmem:[#allocation22 + $0xc4] ss:$8 sps:$4 sm:$0xff]   ;;  %v5631_v61 = vld [vmem:[#allocation22 + $0xc0] ss:$8 sps:$4 sm:$0xff]  }
 0x51e   :  { %v2023_v2 = vpop.f32.mrf.mxu0  ;;  %3215 = vmatprep.subr.bf16.mxu0 %v5615_v47  ;;  %v5634_v1 = vld [vmem:[#allocation22 + $0xb0] ss:$8 sps:$4 sm:$0xff]  }
 0x51f   :  { %v2075_v3 = vpack.c.bf16 %v2057_v63, %v2055_v62  ;;  %v2024_v6 = vadd.f32 %v2023_v2, %v6685_v27  ;;  %v2058_v12 = vmax.f32 %v2022_v8, 0.0  ;;  %v5636_v62 = vld [vmem:[#allocation22 + $0xb4] ss:$8 sps:$4 sm:$0xff]  }
 0x520   :  { %v2025_v5 = vpop.f32.mrf.mxu0 }
 0x521   :  { %v2026_v7 = vadd.f32 %v2025_v5, %v6688_v28  ;;  %2523 = vmatprep.mubr.bf16.mxu0 %v2075_v3  ;;  %v2059_v11 = vmax.f32 %v2024_v6, 0.0  ;;  %v5597_v28 = vld [vmem:[#allocation19 + $0x84] ss:$8 sps:$4 sm:$0xff]   ;;  %3216 = vmatpush1.bf16.msra.mxu0 %v5613_v44  ;;  %v2544_v5 = vld [vmem:[#allocation18] sm:$0x3] }
 0x522   :  { %v2027_v9 = vpop.f32.mrf.mxu0  ;;  %2524 = vmatmul.mubr.bf16.gmra.mxu0 %v2074_v4  ;;  %2870 = vmatprep.subr.bf16.mxu1 %v5597_v28 }
 0x523   :  { %v2028_v10 = vadd.f32 %v2027_v9, %v6685_v27  ;;  %v2060_v19 = vmax.f32 %v2026_v7, 0.0  ;;  %2871 = vmatpush2.bf16.msra.mxu1 %v5595_v24  ;;  %v6722_v27 = vpop.f32.mrf.mxu1  ;;  %3217 = vmatprep.subr.bf16.mxu0 %v5618_v45  ;;  %v6758_v9 = vrot.slane %v2544_v5, %v6388_v14 }
 0x525   :  { %v2061_v16 = vmax.f32 %v2028_v10, 0.0  ;;  %v2076_v18 = vpack.c.bf16 %v2060_v19, %v2058_v12  ;;  %v6724_v25 = vpop.f32.mrf.mxu1  ;;  %3218 = vmatpush1.bf16.msra.mxu0 %v5616_v49  ;;  %v6762_v19 = vrot.slane %v2544_v5, %v6391_v15 }
 0x526   :  { %3219 = vmatprep.subr.bf16.mxu0 %v5621_v50 }
 0x527   :  { %v2077_v17 = vpack.c.bf16 %v2061_v16, %v2059_v11  ;;  %v6726_v31 = vpop.f32.mrf.mxu1 }
 0x529   :  { %2533 = vmatprep.mubr.bf16.mxu0 %v2077_v17  ;;  %v6728_v36 = vpop.f32.mrf.mxu1  ;;  %3220 = vmatpush1.bf16.msra.mxu0 %v5619_v52 }
 0x52a   :  { %2534 = vmatmul.mubr.bf16.gmra.mxu0 %v2076_v18  ;;  %3221 = vmatprep.subr.bf16.mxu0 %v5624_v53 }
 0x52b   :  { %v6730_v39 = vpop.f32.mrf.mxu1 }
 0x52d   :  { %v6732_v42 = vpop.f32.mrf.mxu1  ;;  %3222 = vmatpush2.bf16.msra.mxu0 %v5622_v55 }
 0x52e   :  { %3223 = vmatprep.subr.bf16.mxu0 %v5627_v56 }
 0x52f   :  { %v6734_v43 = vpop.f32.mrf.mxu1 }
 0x531   :  { %v6736_v46 = vpop.f32.mrf.mxu1  ;;  %3224 = vmatpush2.bf16.msra.mxu0 %v5625_v58 }
 0x532   :  { %3225 = vmatprep.subr.bf16.mxu0 %v5630_v59 }
 0x533   :  { %v6738_v51 = vpop.f32.mrf.mxu1 }
 0x535   :  { %v6740_v54 = vpop.f32.mrf.mxu1  ;;  %3226 = vmatpush2.bf16.msra.mxu0 %v5628_v0 }
 0x536   :  { %3227 = vmatprep.subr.bf16.mxu0 %v5633_v34 }
 0x537   :  { %v6742_v57 = vpop.f32.mrf.mxu1 }
 0x539   :  { %v6744_v35 = vpop.f32.mrf.mxu1  ;;  %3228 = vmatpush2.bf16.msra.mxu0 %v5631_v61 }
 0x53a   :  { %3229 = vmatprep.subr.bf16.mxu0 %v5636_v62 }
 0x53b   :  { %v6746_v60 = vpop.f32.mrf.mxu1 }
 0x53d   :  { %v6748_v63 = vpop.f32.mrf.mxu1  ;;  %3230 = vmatpush2.bf16.msra.mxu0 %v5634_v1 }
 0x53f   :  { %v6750_v2 = vpop.f32.mrf.mxu1 }
 0x541   :  { %v6752_v3 = vpop.f32.mrf.mxu1 }
 0x543   :  { %v6754_v7 = vpop.f32.mrf.mxu1 }
 0x545   :  { %v6765_v17 = vpop.f32.mrf.mxu1 }
 0x5b2   :  { %v2465_v4 = vpop.f32.mrf.mxu0 }
 0x5b3   :  { %v2466_v10 = vadd.f32 %v2465_v4, %v6722_v27 }
 0x5b4   :  { %v2467_v6 = vpop.f32.mrf.mxu0 }
 0x5b5   :  { %v2468_v8 = vadd.f32 %v2467_v6, %v6724_v25  ;;  %v2556_v22 = vadd.f32 %v6762_v19, %v2466_v10  ;;  %v6772_v25 = vpop.f32.mrf.mxu1 }
 0x5b6   :  { %v2469_v11 = vpop.f32.mrf.mxu0 }
 0x5b7   :  { %v2470_v16 = vadd.f32 %v2469_v11, %v6726_v31  ;;  %v2557_v18 = vadd.f32 %v6758_v9, %v2468_v8  ;;  %v2588_v31 = vmax.f32 %v2556_v22, 0.0  ;;  %v6777_v41 = vpop.f32.mrf.mxu1 }
 0x5b8   :  { %v2471_v12 = vpop.f32.mrf.mxu0 }
 0x5b9   :  { %v2558_v20 = vadd.f32 %v6762_v19, %v2470_v16  ;;  %v2472_v21 = vadd.f32 %v2471_v12, %v6728_v36  ;;  %v2589_v26 = vmax.f32 %v2557_v18, 0.0  ;;  %v6784_v50 = vpop.f32.mrf.mxu1 }
 0x5ba   :  { %v2475_v23 = vpop.f32.mrf.mxu0 }
 0x5bb   :  { %v2559_v28 = vadd.f32 %v6758_v9, %v2472_v21  ;;  %v2590_v24 = vmax.f32 %v2558_v20, 0.0  ;;  %v2476_v32 = vadd.f32 %v2475_v23, %v6730_v39  ;;  %v2244_v62 = vpop.f32.mrf.mxu1 }
 0x5bc   :  { %v2477_v27 = vpop.f32.mrf.mxu0 }
 0x5bd   :  { %v2591_v29 = vmax.f32 %v2559_v28, 0.0  ;;  %v2478_v30 = vadd.f32 %v2477_v27, %v6732_v42  ;;  %v2620_v38 = vpack.c.bf16 %v2590_v24, %v2588_v31  ;;  %v2560_v42 = vadd.f32 %v6762_v19, %v2476_v32 }
 0x5be   :  { %v2479_v33 = vpop.f32.mrf.mxu0 }
 0x5bf   :  { %v2480_v37 = vadd.f32 %v2479_v33, %v6734_v43  ;;  %v2621_v36 = vpack.c.bf16 %v2591_v29, %v2589_v26  ;;  %v2561_v48 = vadd.f32 %v6758_v9, %v2478_v30  ;;  %v2592_v56 = vmax.f32 %v2560_v42, 0.0 }
 0x5c0   :  { %v2481_v40 = vpop.f32.mrf.mxu0 }
 0x5c1   :  { %v2562_v47 = vadd.f32 %v6762_v19, %v2480_v37  ;;  %v2482_v44 = vadd.f32 %v2481_v40, %v6736_v46  ;;  %2872 = vmatprep.mubr.bf16.mxu1 %v2621_v36  ;;  %v2593_v52 = vmax.f32 %v2561_v48, 0.0 }
 0x5c2   :  { %v2485_v45 = vpop.f32.mrf.mxu0  ;;  %2873 = vmatmul.mubr.bf16.vlgmr.msra.gmra.mxu1 %v2620_v38 }
 0x5c3   :  { %v2563_v39 = vadd.f32 %v6758_v9, %v2482_v44  ;;  %v2594_v49 = vmax.f32 %v2562_v47, 0.0  ;;  %v2486_v58 = vadd.f32 %v2485_v45, %v6738_v51 }
 0x5c4   :  { %v2487_v43 = vpop.f32.mrf.mxu0 }
 0x5c5   :  { %v2595_v53 = vmax.f32 %v2563_v39, 0.0  ;;  %v2488_v55 = vadd.f32 %v2487_v43, %v6740_v54  ;;  %v2622_v61 = vpack.c.bf16 %v2594_v49, %v2592_v56  ;;  %v2564_v6 = vadd.f32 %v6762_v19, %v2486_v58 }
 0x5c6   :  { %v2489_v59 = vpop.f32.mrf.mxu0 }
 0x5c7   :  { %v2490_v46 = vadd.f32 %v2489_v59, %v6742_v57  ;;  %v2623_v0 = vpack.c.bf16 %v2595_v53, %v2593_v52  ;;  %v2565_v1 = vadd.f32 %v6758_v9, %v2488_v55  ;;  %v2246_v57 = vpop.f32.mrf.mxu1  ;;  %v2596_v18 = vmax.f32 %v2564_v6, 0.0 }
 0x5c8   :  { %v2491_v34 = vpop.f32.mrf.mxu0 }
 0x5c9   :  { %v2566_v4 = vadd.f32 %v6762_v19, %v2490_v46  ;;  %v2492_v5 = vadd.f32 %v2491_v34, %v6744_v35  ;;  %2882 = vmatprep.mubr.bf16.mxu1 %v2623_v0  ;;  %v2597_v11 = vmax.f32 %v2565_v1, 0.0  ;;  %v2248_v24 = vpop.f32.mrf.mxu1 }
 0x5ca   :  { %v2495_v54 = vpop.f32.mrf.mxu0  ;;  %2883 = vmatmul.mubr.bf16.gmra.mxu1 %v2622_v61 }
 0x5cb   :  { %v2567_v51 = vadd.f32 %v6758_v9, %v2492_v5  ;;  %v2598_v8 = vmax.f32 %v2566_v4, 0.0  ;;  %v2496_v20 = vadd.f32 %v2495_v54, %v6746_v60 }
 0x5cc   :  { %v2497_v10 = vpop.f32.mrf.mxu0 }
 0x5cd   :  { %v2599_v16 = vmax.f32 %v2567_v51, 0.0  ;;  %v2498_v12 = vadd.f32 %v2497_v10, %v6748_v63  ;;  %v2624_v28 = vpack.c.bf16 %v2598_v8, %v2596_v18  ;;  %v2568_v30 = vadd.f32 %v6762_v19, %v2496_v20 }
 0x5ce   :  { %v2499_v21 = vpop.f32.mrf.mxu0 }
 0x5cf   :  { %v2500_v35 = vadd.f32 %v2499_v21, %v6750_v2  ;;  %v2625_v22 = vpack.c.bf16 %v2599_v16, %v2597_v11  ;;  %v2569_v27 = vadd.f32 %v6758_v9, %v2498_v12  ;;  %v2252_v2 = vpop.f32.mrf.mxu1  ;;  %v2600_v38 = vmax.f32 %v2568_v30, 0.0 }
 0x5d0   :  { %v2501_v23 = vpop.f32.mrf.mxu0 }
 0x5d1   :  { %v2570_v26 = vadd.f32 %v6762_v19, %v2500_v35  ;;  %v2502_v29 = vadd.f32 %v2501_v23, %v6752_v3  ;;  %2892 = vmatprep.mubr.bf16.mxu1 %v2625_v22  ;;  %v2601_v33 = vmax.f32 %v2569_v27, 0.0  ;;  %v2254_v45 = vpop.f32.mrf.mxu1 }
 0x5d2   :  { %v2505_v63 = vpop.f32.mrf.mxu0  ;;  %2893 = vmatmul.mubr.bf16.gmra.mxu1 %v2624_v28 }
 0x5d3   :  { %v2571_v60 = vadd.f32 %v6758_v9, %v2502_v29  ;;  %v2602_v31 = vmax.f32 %v2570_v26, 0.0  ;;  %v2506_v40 = vadd.f32 %v2505_v63, %v6754_v7 }
 0x5d4   :  { %v2507_v32 = vpop.f32.mrf.mxu0 }
 0x5d5   :  { %v2603_v37 = vmax.f32 %v2571_v60, 0.0  ;;  %v2508_v36 = vadd.f32 %v2507_v32, %v6765_v17  ;;  %v2626_v42 = vpack.c.bf16 %v2602_v31, %v2600_v38  ;;  %v2572_v52 = vadd.f32 %v6762_v19, %v2506_v40 }
 0x5d6   :  { %v2509_v48 = vpop.f32.mrf.mxu0 }
 0x5d7   :  { %v2510_v3 = vadd.f32 %v2509_v48, %v6772_v25  ;;  %v2627_v47 = vpack.c.bf16 %v2603_v37, %v2601_v33  ;;  %v2573_v39 = vadd.f32 %v6758_v9, %v2508_v36  ;;  %v2256_v25 = vpop.f32.mrf.mxu1  ;;  %v2604_v46 = vmax.f32 %v2572_v52, 0.0 }
 0x5d8   :  { %v2511_v44 = vpop.f32.mrf.mxu0 }
 0x5d9   :  { %v2574_v49 = vadd.f32 %v6762_v19, %v2510_v3  ;;  %v2512_v43 = vadd.f32 %v2511_v44, %v6777_v41  ;;  %2902 = vmatprep.mubr.bf16.mxu1 %v2627_v47  ;;  %v2605_v56 = vmax.f32 %v2573_v39, 0.0  ;;  %v2258_v5 = vpop.f32.mrf.mxu1 }
 0x5da   :  { %v2515_v17 = vpop.f32.mrf.mxu0  ;;  %2903 = vmatmul.mubr.bf16.gmra.mxu1 %v2626_v42 }
 0x5db   :  { %v2575_v7 = vadd.f32 %v6758_v9, %v2512_v43  ;;  %v2606_v53 = vmax.f32 %v2574_v49, 0.0  ;;  %v2516_v0 = vadd.f32 %v2515_v17, %v6784_v50  ;;  %v2262_v50 = vpop.f32.mrf.mxu1 }
 0x5dc   :  { %v2517_v55 = vpop.f32.mrf.mxu0 }
 0x5dd   :  { %v2607_v58 = vmax.f32 %v2575_v7, 0.0  ;;  %v2518_v59 = vadd.f32 %v2517_v55, %v2244_v62  ;;  %v2628_v41 = vpack.c.bf16 %v2606_v53, %v2604_v46  ;;  %v2576_v8 = vadd.f32 %v6762_v19, %v2516_v0  ;;  %v5639_v46 = vld [vmem:[#allocation22 + $0xa4] ss:$8 sps:$4 sm:$0xff]   ;;  %v5637_v0 = vld [vmem:[#allocation22 + $0xa0] ss:$8 sps:$4 sm:$0xff]  }
 0x5de   :  { %v2519_v34 = vpop.f32.mrf.mxu0  ;;  %3231 = vmatprep.subr.bf16.mxu0 %v5639_v46 }
 0x5df   :  { %v2520_v61 = vadd.f32 %v2519_v34, %v2246_v57  ;;  %v2629_v1 = vpack.c.bf16 %v2607_v58, %v2605_v56  ;;  %v2577_v6 = vadd.f32 %v6758_v9, %v2518_v59  ;;  %v2608_v20 = vmax.f32 %v2576_v8, 0.0  ;;  %3232 = vmatpush2.bf16.msra.mxu0 %v5637_v0  ;;  %v5642_v34 = vld [vmem:[#allocation22 + $0x94] ss:$8 sps:$4 sm:$0xff]  }
 0x5e0   :  { %v2521_v4 = vpop.f32.mrf.mxu0  ;;  %3233 = vmatprep.subr.bf16.mxu0 %v5642_v34  ;;  %v5657_v8 = vld [vmem:[#allocation25 + $0x64] ss:$12 sps:$4 sm:$0xff]   ;;  %v6848_v34 = vld [vmem:[#allocation25 + $0x140] ss:$12 sps:$4 sm:$0xff]  }
 0x5e1   :  { %v2578_v54 = vadd.f32 %v6762_v19, %v2520_v61  ;;  %v2522_v51 = vadd.f32 %v2521_v4, %v2248_v24  ;;  %2912 = vmatprep.mubr.bf16.mxu1 %v2629_v1  ;;  %v2609_v57 = vmax.f32 %v2577_v6, 0.0  ;;  %v2264_v24 = vpop.f32.mrf.mxu1  ;;  %v5640_v61 = vld [vmem:[#allocation22 + $0x90] ss:$8 sps:$4 sm:$0xff]   ;;  %v5643_v1 = vld [vmem:[#allocation22 + $0x80] ss:$8 sps:$4 sm:$0xff]  }
 0x5e2   :  { %v2525_v10 = vpop.f32.mrf.mxu0  ;;  %2913 = vmatmul.mubr.bf16.gmra.mxu1 %v2628_v41  ;;  %v5648_v41 = vld [vmem:[#allocation25 + $0xac] ss:$12 sps:$4 sm:$0xff]   ;;  %v5651_v4 = vld [vmem:[#allocation25 + $0x94] ss:$12 sps:$4 sm:$0xff]   ;;  %v5654_v6 = vld [vmem:[#allocation25 + $0x7c] ss:$12 sps:$4 sm:$0xff]  }
 0x5e3   :  { %v2579_v62 = vadd.f32 %v6758_v9, %v2522_v51  ;;  %v2610_v11 = vmax.f32 %v2578_v54, 0.0  ;;  %v2526_v21 = vadd.f32 %v2525_v10, %v2252_v2  ;;  %v2266_v2 = vpop.f32.mrf.mxu1  ;;  %3234 = vmatpush2.bf16.msra.mxu0 %v5640_v61  ;;  %3703 = vmatprep.subr.bf16.mxu1 %v5648_v41  ;;  %v6823_v54 = vld [vmem:[#allocation25 + $0x170] ss:$12 sps:$4 sm:$0xff]   ;;  %v5652_v51 = vld [vmem:[#allocation25 + $0x78] ss:$12 sps:$4 sm:$0xff]  }
 0x5e4   :  { %v2527_v16 = vpop.f32.mrf.mxu0  ;;  %v5655_v10 = vld [vmem:[#allocation25 + $0x60] ss:$12 sps:$4 sm:$0xff]  }
 0x5e5   :  { %v2611_v12 = vmax.f32 %v2579_v62, 0.0  ;;  %v2528_v18 = vadd.f32 %v2527_v16, %v2254_v45  ;;  %v2630_v28 = vpack.c.bf16 %v2610_v11, %v2608_v20  ;;  %v2580_v63 = vadd.f32 %v6762_v19, %v2526_v21  ;;  %v2268_v45 = vpop.f32.mrf.mxu1  ;;  %v5660_v62 = vld [vmem:[#allocation25 + $0x4c] ss:$12 sps:$4 sm:$0xff]   ;;  %v5658_v11 = vld [vmem:[#allocation25 + $0x48] ss:$12 sps:$4 sm:$0xff]  }
 0x5e6   :  { %v2529_v35 = vpop.f32.mrf.mxu0  ;;  %v5661_v16 = vld [vmem:[#allocation25 + $0x30] ss:$12 sps:$4 sm:$0xff]   ;;  %v5667_v20 = vld [vmem:[#allocation25] ss:$12 sps:$4 sm:$0xff]  }
 0x5e7   :  { %v2530_v22 = vadd.f32 %v2529_v35, %v2256_v25  ;;  %v2631_v23 = vpack.c.bf16 %v2611_v12, %v2609_v57  ;;  %v2581_v26 = vadd.f32 %v6758_v9, %v2528_v18  ;;  %v2612_v40 = vmax.f32 %v2580_v63, 0.0  ;;  %v5666_v57 = vld [vmem:[#allocation25 + $0x1c] ss:$12 sps:$4 sm:$0xff]   ;;  %v5664_v12 = vld [vmem:[#allocation25 + $0x18] ss:$12 sps:$4 sm:$0xff]  }
 0x5e8   :  { %v2531_v27 = vpop.f32.mrf.mxu0  ;;  %v5669_v18 = vld [vmem:[#allocation25 + $0x4] ss:$12 sps:$4 sm:$0xff]   ;;  %v5672_v21 = vld [vmem:[#allocation25 + $0x16c] ss:$12 sps:$4 sm:$0xff]   ;;  %v5670_v35 = vld [vmem:[#allocation25 + $0x168] ss:$12 sps:$4 sm:$0xff]  }
 0x5e9   :  { %v2582_v29 = vadd.f32 %v6762_v19, %v2530_v22  ;;  %v2532_v30 = vadd.f32 %v2531_v27, %v2258_v5  ;;  %2922 = vmatprep.mubr.bf16.mxu1 %v2631_v23  ;;  %v2613_v37 = vmax.f32 %v2581_v26, 0.0  ;;  %v5649_v5 = vld [vmem:[#allocation25 + $0x90] ss:$12 sps:$4 sm:$0xff]   ;;  %v5677_v22 = vld [vmem:[#allocation25 + $0x154] ss:$12 sps:$4 sm:$0xff]  }
 0x5ea   :  { %v2535_v60 = vpop.f32.mrf.mxu0  ;;  %2923 = vmatmul.mubr.bf16.gmra.mxu1 %v2630_v28  ;;  %v5675_v23 = vld [vmem:[#allocation25 + $0x150] ss:$12 sps:$4 sm:$0xff]   ;;  %v5685_v26 = vld [vmem:[#allocation25 + $0x120] ss:$12 sps:$4 sm:$0xff]  }
 0x5eb   :  { %v2583_v31 = vadd.f32 %v6758_v9, %v2532_v30  ;;  %v2614_v32 = vmax.f32 %v2582_v29, 0.0  ;;  %v2536_v48 = vadd.f32 %v2535_v60, %v2262_v50  ;;  %v5663_v50 = vld [vmem:[#allocation25 + $0x34] ss:$12 sps:$4 sm:$0xff]   ;;  %v5682_v28 = vld [vmem:[#allocation25 + $0x13c] ss:$12 sps:$4 sm:$0xff]  }
 0x5ec   :  { %v2537_v33 = vpop.f32.mrf.mxu0  ;;  %v5687_v27 = vld [vmem:[#allocation25 + $0x124] ss:$12 sps:$4 sm:$0xff]   ;;  %v5692_v29 = vld [vmem:[#allocation25 + $0x10c] ss:$12 sps:$4 sm:$0xff]   ;;  %v5690_v30 = vld [vmem:[#allocation25 + $0x108] ss:$12 sps:$4 sm:$0xff]  }
 0x5ed   :  { %v2615_v36 = vmax.f32 %v2583_v31, 0.0  ;;  %v2538_v38 = vadd.f32 %v2537_v33, %v2264_v24  ;;  %v2632_v42 = vpack.c.bf16 %v2614_v32, %v2612_v40  ;;  %v2584_v17 = vadd.f32 %v6762_v19, %v2536_v48  ;;  %v5680_v24 = vld [vmem:[#allocation25 + $0x138] ss:$12 sps:$4 sm:$0xff]   ;;  %v2668_v63 = vld [vmem:[#allocation21] sm:$0x3] }
 0x5ee   :  { %v2539_v3 = vpop.f32.mrf.mxu0  ;;  %v6827_v31 = vrot.slane %v2668_v63, %v6388_v14  ;;  %v6830_v32 = vrot.slane %v2668_v63, %v6391_v15 }
 0x5ef   :  { %v2540_v47 = vadd.f32 %v2539_v3, %v2266_v2  ;;  %v2633_v44 = vpack.c.bf16 %v2615_v36, %v2613_v37  ;;  %v2585_v49 = vadd.f32 %v6758_v9, %v2538_v38  ;;  %v2616_v56 = vmax.f32 %v2584_v17, 0.0 }
 0x5f0   :  { %v2541_v39 = vpop.f32.mrf.mxu0 }
 0x5f1   :  { %v2586_v43 = vadd.f32 %v6762_v19, %v2540_v47  ;;  %v2542_v52 = vadd.f32 %v2541_v39, %v2268_v45  ;;  %2932 = vmatprep.mubr.bf16.mxu1 %v2633_v44  ;;  %v2617_v55 = vmax.f32 %v2585_v49, 0.0  ;;  %v5645_v19 = vld [vmem:[#allocation22 + $0x84] ss:$8 sps:$4 sm:$0xff]  }
 0x5f2   :  { %2933 = vmatmul.mubr.bf16.gmra.mxu1 %v2632_v42  ;;  %3235 = vmatprep.subr.bf16.mxu0 %v5645_v19 }
 0x5f3   :  { %v2587_v7 = vadd.f32 %v6758_v9, %v2542_v52  ;;  %v2618_v53 = vmax.f32 %v2586_v43, 0.0  ;;  %3236 = vmatpush2.bf16.msra.mxu0 %v5643_v1  ;;  %v5646_v9 = vld [vmem:[#allocation25 + $0xa8] ss:$12 sps:$4 sm:$0xff]   ;;  %v6836_v43 = vld [vmem:[#allocation25 + $0xb0] ss:$12 sps:$4 sm:$0xff]  }
 0x5f4   :  { %3704 = vmatpush1.bf16.msra.mxu1 %v5646_v9  ;;  %5031 = vmatprep.subr.bf16.mxu0 %v6823_v54 }
 0x5f5   :  { %v2619_v25 = vmax.f32 %v2587_v7, 0.0  ;;  %v2634_v59 = vpack.c.bf16 %v2618_v53, %v2616_v56  ;;  %3705 = vmatprep.subr.bf16.mxu1 %v5651_v4  ;;  %v6838_v7 = vld [vmem:[#allocation25 + $0x158] ss:$12 sps:$4 sm:$0xff]   ;;  %v6851_v4 = vld [vmem:[#allocation25 + $0x80] ss:$12 sps:$4 sm:$0xff]  }
 0x5f7   :  { %v2635_v58 = vpack.c.bf16 %v2619_v25, %v2617_v55 }
 0x5f8   :  { %3706 = vmatpush1.bf16.msra.mxu1 %v5649_v5 }
 0x5f9   :  { %2942 = vmatprep.mubr.bf16.mxu1 %v2635_v58  ;;  %3707 = vmatprep.subr.bf16.mxu1 %v5654_v6 }
 0x5fa   :  { %2943 = vmatmul.mubr.bf16.gmra.mxu1 %v2634_v59  ;;  %v6845_v59 = vld [vmem:[#allocation25 + $0x98] ss:$12 sps:$4 sm:$0xff]  }
 0x5fc   :  { %3708 = vmatpush1.bf16.msra.mxu1 %v5652_v51  ;;  %v6854_v51 = vld [vmem:[#allocation25 + $0x128] ss:$12 sps:$4 sm:$0xff]  }
 0x5fd   :  { %3709 = vmatprep.subr.bf16.mxu1 %v5657_v8 }
 0x600   :  { %3710 = vmatpush1.bf16.msra.mxu1 %v5655_v10 }
 0x601   :  { %3711 = vmatprep.subr.bf16.mxu1 %v5660_v62 }
 0x604   :  { %3712 = vmatpush1.bf16.msra.mxu1 %v5658_v11 }
 0x605   :  { %3713 = vmatprep.subr.bf16.mxu1 %v5663_v50 }
 0x608   :  { %3714 = vmatpush1.bf16.msra.mxu1 %v5661_v16  ;;  %v6861_v16 = vld [vmem:[#allocation25 + $0x68] ss:$12 sps:$4 sm:$0xff]  }
 0x609   :  { %3715 = vmatprep.subr.bf16.mxu1 %v5666_v57 }
 0x60c   :  { %3716 = vmatpush1.bf16.msra.mxu1 %v5664_v12 }
 0x60d   :  { %3717 = vmatprep.subr.bf16.mxu1 %v5669_v18  ;;  %v6864_v18 = vld [vmem:[#allocation25 + $0x110] ss:$12 sps:$4 sm:$0xff]  }
 0x610   :  { %3718 = vmatpush1.bf16.msra.mxu1 %v5667_v20 }
 0x611   :  { %3719 = vmatprep.subr.bf16.mxu1 %v5672_v21 }
 0x614   :  { %3720 = vmatpush2.bf16.msra.mxu1 %v5670_v35 }
 0x615   :  { %3721 = vmatprep.subr.bf16.mxu1 %v5677_v22 }
 0x618   :  { %3722 = vmatpush2.bf16.msra.mxu1 %v5675_v23 }
 0x619   :  { %3723 = vmatprep.subr.bf16.mxu1 %v5682_v28  ;;  %v6867_v28 = vld [vmem:[#allocation25 + $0x50] ss:$12 sps:$4 sm:$0xff]  }
 0x61c   :  { %3724 = vmatpush2.bf16.msra.mxu1 %v5680_v24 }
 0x61d   :  { %3725 = vmatprep.subr.bf16.mxu1 %v5687_v27 }
 0x620   :  { %3726 = vmatpush2.bf16.msra.mxu1 %v5685_v26 }
 0x621   :  { %3727 = vmatprep.subr.bf16.mxu1 %v5692_v29 }
 0x624   :  { %3728 = vmatpush2.bf16.msra.mxu1 %v5690_v30 }
 0x682   :  { %v2874_v60 = vpop.f32.mrf.mxu1 }
 0x683   :  { %v2875_v38 = vadd.f32 %v2874_v60, %v6830_v32 }
 0x684   :  { %v2876_v2 = vpop.f32.mrf.mxu1 }
 0x685   :  { %v2877_v37 = vadd.f32 %v2876_v2, %v6827_v31  ;;  %v2953_v45 = vmax.f32 %v2875_v38, 0.0 }
 0x686   :  { %v2878_v33 = vpop.f32.mrf.mxu1 }
 0x687   :  { %v2879_v36 = vadd.f32 %v2878_v33, %v6830_v32  ;;  %v2954_v44 = vmax.f32 %v2877_v37, 0.0 }
 0x688   :  { %v2880_v40 = vpop.f32.mrf.mxu1 }
 0x689   :  { %v2881_v48 = vadd.f32 %v2880_v40, %v6827_v31  ;;  %v2955_v3 = vmax.f32 %v2879_v36, 0.0 }
 0x68a   :  { %v2884_v47 = vpop.f32.mrf.mxu1 }
 0x68b   :  { %v2956_v42 = vmax.f32 %v2881_v48, 0.0  ;;  %v2985_v52 = vpack.c.bf16 %v2955_v3, %v2953_v45  ;;  %v2885_v25 = vadd.f32 %v2884_v47, %v6830_v32 }
 0x68c   :  { %v2886_v39 = vpop.f32.mrf.mxu1 }
 0x68d   :  { %v2986_v49 = vpack.c.bf16 %v2956_v42, %v2954_v44  ;;  %v2887_v53 = vadd.f32 %v2886_v39, %v6827_v31  ;;  %v2957_v1 = vmax.f32 %v2885_v25, 0.0 }
 0x68e   :  { %v2888_v17 = vpop.f32.mrf.mxu1 }
 0x68f   :  { %v2889_v55 = vadd.f32 %v2888_v17, %v6830_v32  ;;  %3237 = vmatprep.mubr.bf16.mxu0 %v2986_v49  ;;  %v2958_v61 = vmax.f32 %v2887_v53, 0.0 }
 0x690   :  { %v2890_v56 = vpop.f32.mrf.mxu1  ;;  %3238 = vmatmul.mubr.bf16.vlgmr.msra.gmra.mxu0 %v2985_v52 }
 0x691   :  { %v2891_v58 = vadd.f32 %v2890_v56, %v6827_v31  ;;  %5032 = vmatpush3.bf16.msra.mxu0 %v6836_v43  ;;  %v2959_v46 = vmax.f32 %v2889_v55, 0.0 }
 0x692   :  { %v2894_v0 = vpop.f32.mrf.mxu1  ;;  %5033 = vmatprep.subr.bf16.mxu0 %v6838_v7 }
 0x693   :  { %v2960_v19 = vmax.f32 %v2891_v58, 0.0  ;;  %v2987_v5 = vpack.c.bf16 %v2959_v46, %v2957_v1  ;;  %v2895_v62 = vadd.f32 %v2894_v0, %v6830_v32 }
 0x694   :  { %v2896_v9 = vpop.f32.mrf.mxu1 }
 0x695   :  { %v2988_v41 = vpack.c.bf16 %v2960_v19, %v2958_v61  ;;  %5034 = vmatpush3.bf16.msra.mxu0 %v6845_v59  ;;  %v2897_v8 = vadd.f32 %v2896_v9, %v6827_v31  ;;  %v2961_v35 = vmax.f32 %v2895_v62, 0.0 }
 0x696   :  { %v2898_v6 = vpop.f32.mrf.mxu1  ;;  %5035 = vmatprep.subr.bf16.mxu0 %v6848_v34 }
 0x697   :  { %v2899_v10 = vadd.f32 %v2898_v6, %v6830_v32  ;;  %3247 = vmatprep.mubr.bf16.mxu0 %v2988_v41  ;;  %v2962_v20 = vmax.f32 %v2897_v8, 0.0 }
 0x698   :  { %v2900_v11 = vpop.f32.mrf.mxu1  ;;  %3248 = vmatmul.mubr.bf16.gmra.mxu0 %v2987_v5 }
 0x699   :  { %v2901_v50 = vadd.f32 %v2900_v11, %v6827_v31  ;;  %5036 = vmatpush3.bf16.msra.mxu0 %v6851_v4  ;;  %v2963_v57 = vmax.f32 %v2899_v10, 0.0 }
 0x69a   :  { %v2904_v12 = vpop.f32.mrf.mxu1  ;;  %5037 = vmatprep.subr.bf16.mxu0 %v6854_v51 }
 0x69b   :  { %v2964_v21 = vmax.f32 %v2901_v50, 0.0  ;;  %v2989_v24 = vpack.c.bf16 %v2963_v57, %v2961_v35  ;;  %v2905_v30 = vadd.f32 %v2904_v12, %v6830_v32 }
 0x69c   :  { %v2906_v22 = vpop.f32.mrf.mxu1 }
 0x69d   :  { %v2990_v23 = vpack.c.bf16 %v2964_v21, %v2962_v20  ;;  %5038 = vmatpush3.bf16.msra.mxu0 %v6861_v16  ;;  %v2907_v26 = vadd.f32 %v2906_v22, %v6827_v31  ;;  %v2965_v38 = vmax.f32 %v2905_v30, 0.0 }
 0x69e   :  { %v2908_v27 = vpop.f32.mrf.mxu1  ;;  %5039 = vmatprep.subr.bf16.mxu0 %v6864_v18 }
 0x69f   :  { %v2909_v29 = vadd.f32 %v2908_v27, %v6830_v32  ;;  %3257 = vmatprep.mubr.bf16.mxu0 %v2990_v23  ;;  %v2966_v37 = vmax.f32 %v2907_v26, 0.0 }
 0x6a0   :  { %v2910_v63 = vpop.f32.mrf.mxu1  ;;  %3258 = vmatmul.mubr.bf16.gmra.mxu0 %v2989_v24 }
 0x6a1   :  { %v2911_v60 = vadd.f32 %v2910_v63, %v6827_v31  ;;  %5040 = vmatpush3.bf16.msra.mxu0 %v6867_v28  ;;  %v2967_v2 = vmax.f32 %v2909_v29, 0.0 }
 0x6a2   :  { %v2914_v33 = vpop.f32.mrf.mxu1 }
 0x6a3   :  { %v2968_v36 = vmax.f32 %v2911_v60, 0.0  ;;  %v2991_v3 = vpack.c.bf16 %v2967_v2, %v2965_v38  ;;  %v2915_v45 = vadd.f32 %v2914_v33, %v6830_v32 }
 0x6a4   :  { %v2916_v40 = vpop.f32.mrf.mxu1 }
 0x6a5   :  { %v2992_v48 = vpack.c.bf16 %v2968_v36, %v2966_v37  ;;  %v2917_v44 = vadd.f32 %v2916_v40, %v6827_v31  ;;  %v2969_v25 = vmax.f32 %v2915_v45, 0.0 }
 0x6a6   :  { %v2918_v47 = vpop.f32.mrf.mxu1 }
 0x6a7   :  { %v2919_v42 = vadd.f32 %v2918_v47, %v6830_v32  ;;  %3267 = vmatprep.mubr.bf16.mxu0 %v2992_v48  ;;  %v2970_v53 = vmax.f32 %v2917_v44, 0.0 }
 0x6a8   :  { %v2920_v39 = vpop.f32.mrf.mxu1  ;;  %3268 = vmatmul.mubr.bf16.gmra.mxu0 %v2991_v3 }
 0x6a9   :  { %v2921_v49 = vadd.f32 %v2920_v39, %v6827_v31  ;;  %v2971_v52 = vmax.f32 %v2919_v42, 0.0 }
 0x6aa   :  { %v2924_v17 = vpop.f32.mrf.mxu1 }
 0x6ab   :  { %v2972_v55 = vmax.f32 %v2921_v49, 0.0  ;;  %v2993_v46 = vpack.c.bf16 %v2971_v52, %v2969_v25  ;;  %v2925_v1 = vadd.f32 %v2924_v17, %v6830_v32  ;;  %v5697_v49 = vld [vmem:[#allocation25 + $0xf4] ss:$12 sps:$4 sm:$0xff]   ;;  %v6891_v52 = vld [vmem:[#allocation25 + $0xf8] ss:$12 sps:$4 sm:$0xff]  }
 0x6ac   :  { %v2926_v56 = vpop.f32.mrf.mxu1  ;;  %v5695_v17 = vld [vmem:[#allocation25 + $0xf0] ss:$12 sps:$4 sm:$0xff]   ;;  %3729 = vmatprep.subr.bf16.mxu1 %v5697_v49  ;;  %5041 = vmatprep.subr.bf16.mxu0 %v6891_v52  ;;  %v6899_v25 = vld [vmem:[#allocation25 + $0x20] ss:$12 sps:$4 sm:$0xff]  }
 0x6ad   :  { %v2994_v58 = vpack.c.bf16 %v2972_v55, %v2970_v53  ;;  %v2927_v61 = vadd.f32 %v2926_v56, %v6827_v31  ;;  %v2973_v62 = vmax.f32 %v2925_v1, 0.0  ;;  %v6893_v53 = vld [vmem:[#allocation25 + $0x38] ss:$12 sps:$4 sm:$0xff]   ;;  %3730 = vmatpush2.bf16.msra.mxu1 %v5695_v17 }
 0x6ae   :  { %v2928_v0 = vpop.f32.mrf.mxu1  ;;  %5042 = vmatpush3.bf16.msra.mxu0 %v6893_v53  ;;  %v5700_v55 = vld [vmem:[#allocation25 + $0xd8] ss:$12 sps:$4 sm:$0xff]  }
 0x6af   :  { %v2929_v19 = vadd.f32 %v2928_v0, %v6830_v32  ;;  %3277 = vmatprep.mubr.bf16.mxu0 %v2994_v58  ;;  %v2974_v8 = vmax.f32 %v2927_v61, 0.0  ;;  %v5707_v56 = vld [vmem:[#allocation25 + $0xc4] ss:$12 sps:$4 sm:$0xff]   ;;  %v6903_v58 = vld [vmem:[#allocation25 + $0xc8] ss:$12 sps:$4 sm:$0xff]   ;;  %v5710_v61 = vld [vmem:[#allocation27 + $0x78] sm:$0xff]  }
 0x6b0   :  { %v2930_v9 = vpop.f32.mrf.mxu1  ;;  %3278 = vmatmul.mubr.bf16.gmra.mxu0 %v2993_v46  ;;  %v5705_v46 = vld [vmem:[#allocation25 + $0xc0] ss:$12 sps:$4 sm:$0xff]   ;;  %v6905_v0 = vld [vmem:[#allocation25 + $0x8] ss:$12 sps:$4 sm:$0xff]  }
 0x6b1   :  { %v2931_v41 = vadd.f32 %v2930_v9, %v6827_v31  ;;  %v2975_v5 = vmax.f32 %v2929_v19, 0.0  ;;  %v3033_v19 = vld [vmem:[#allocation24] sm:$0x3] }
 0x6b2   :  { %v2934_v6 = vpop.f32.mrf.mxu1  ;;  %v6911_v9 = vrot.slane %v3033_v19, %v6388_v14 }
 0x6b3   :  { %v2976_v10 = vmax.f32 %v2931_v41, 0.0  ;;  %v2995_v57 = vpack.c.bf16 %v2975_v5, %v2973_v62  ;;  %v2935_v35 = vadd.f32 %v2934_v6, %v6830_v32  ;;  %v6914_v41 = vrot.slane %v3033_v19, %v6391_v15 }
 0x6b4   :  { %v2936_v11 = vpop.f32.mrf.mxu1 }
 0x6b5   :  { %v2996_v50 = vpack.c.bf16 %v2976_v10, %v2974_v8  ;;  %v2937_v20 = vadd.f32 %v2936_v11, %v6827_v31  ;;  %v2977_v30 = vmax.f32 %v2935_v35, 0.0 }
 0x6b6   :  { %v2938_v12 = vpop.f32.mrf.mxu1 }
 0x6b7   :  { %v2939_v21 = vadd.f32 %v2938_v12, %v6830_v32  ;;  %3287 = vmatprep.mubr.bf16.mxu0 %v2996_v50  ;;  %v2978_v26 = vmax.f32 %v2937_v20, 0.0 }
 0x6b8   :  { %v2940_v22 = vpop.f32.mrf.mxu1  ;;  %3288 = vmatmul.mubr.bf16.gmra.mxu0 %v2995_v57 }
 0x6b9   :  { %v2941_v23 = vadd.f32 %v2940_v22, %v6827_v31  ;;  %v2979_v24 = vmax.f32 %v2939_v21, 0.0 }
 0x6ba   :  { %v2944_v27 = vpop.f32.mrf.mxu1 }
 0x6bb   :  { %v2980_v29 = vmax.f32 %v2941_v23, 0.0  ;;  %v2997_v2 = vpack.c.bf16 %v2979_v24, %v2977_v30  ;;  %v2945_v38 = vadd.f32 %v2944_v27, %v6830_v32  ;;  %v5711_v23 = vld [vmem:[#allocation27 + $0x38] sm:$0xff]  }
 0x6bc   :  { %v2946_v63 = vpop.f32.mrf.mxu1 }
 0x6bd   :  { %v2998_v60 = vpack.c.bf16 %v2980_v29, %v2978_v26  ;;  %v2947_v37 = vadd.f32 %v2946_v63, %v6827_v31  ;;  %v2981_v42 = vmax.f32 %v2945_v38, 0.0  ;;  %v5712_v26 = vld [vmem:[#allocation27 + $0x70] sm:$0xff]   ;;  %v5714_v38 = vld [vmem:[#allocation27 + $0x68] sm:$0xff]  }
 0x6be   :  { %v2948_v33 = vpop.f32.mrf.mxu1 }
 0x6bf   :  { %v2949_v36 = vadd.f32 %v2948_v33, %v6830_v32  ;;  %3297 = vmatprep.mubr.bf16.mxu0 %v2998_v60  ;;  %v2982_v47 = vmax.f32 %v2947_v37, 0.0  ;;  %v6897_v32 = vld [vmem:[#allocation25 + $0xe0] ss:$12 sps:$4 sm:$0xff]   ;;  %v5713_v33 = vld [vmem:[#allocation27 + $0x30] sm:$0xff]  }
 0x6c0   :  { %v2950_v40 = vpop.f32.mrf.mxu1  ;;  %3298 = vmatmul.mubr.bf16.gmra.mxu0 %v2997_v2  ;;  %5043 = vmatprep.subr.bf16.mxu0 %v6897_v32 }
 0x6c1   :  { %v2951_v48 = vadd.f32 %v2950_v40, %v6827_v31  ;;  %v2983_v3 = vmax.f32 %v2949_v36, 0.0  ;;  %v5702_v31 = vld [vmem:[#allocation25 + $0xdc] ss:$12 sps:$4 sm:$0xff]   ;;  %5044 = vmatpush3.bf16.msra.mxu0 %v6899_v25 }
 0x6c2   :  { %3731 = vmatprep.subr.bf16.mxu1 %v5702_v31  ;;  %5045 = vmatprep.subr.bf16.mxu0 %v6903_v58 }
 0x6c3   :  { %v2984_v44 = vmax.f32 %v2951_v48, 0.0  ;;  %v2999_v39 = vpack.c.bf16 %v2983_v3, %v2981_v42  ;;  %3732 = vmatpush2.bf16.msra.mxu1 %v5700_v55  ;;  %v5715_v42 = vld [vmem:[#allocation27 + $0x28] sm:$0xff]   ;;  %v5717_v55 = vld [vmem:[#allocation27 + $0x20] sm:$0xff]  }
 0x6c4   :  { %3733 = vmatprep.subr.bf16.mxu1 %v5707_v56 }
 0x6c5   :  { %v3000_v45 = vpack.c.bf16 %v2984_v44, %v2982_v47  ;;  %5046 = vmatpush3.bf16.msra.mxu0 %v6905_v0 }
 0x6c6   :  { %5105 = vmatprep.subr.bf16.mxu0 %v5710_v61 }
 0x6c7   :  { %3307 = vmatprep.mubr.bf16.mxu0 %v3000_v45  ;;  %3734 = vmatpush2.bf16.msra.mxu1 %v5705_v46  ;;  %v5718_v46 = vld [vmem:[#allocation27 + $0x58] sm:$0xff]  }
 0x6c8   :  { %3308 = vmatmul.mubr.bf16.gmra.mxu0 %v2999_v39  ;;  %5237 = vmatprep.subr.bf16.mxu1 %v6823_v54 }
 0x750   :  { %v3239_v1 = vpop.f32.mrf.mxu0 }
 0x751   :  { %v3240_v62 = vadd.f32 %v3239_v1, %v6914_v41 }
 0x752   :  { %v3241_v5 = vpop.f32.mrf.mxu0 }
 0x753   :  { %v3242_v8 = vadd.f32 %v3241_v5, %v6911_v9  ;;  %v3318_v21 = vmax.f32 %v3240_v62, 0.0 }
 0x754   :  { %v3243_v6 = vpop.f32.mrf.mxu0 }
 0x755   :  { %v3244_v10 = vadd.f32 %v3243_v6, %v6914_v41  ;;  %v3319_v12 = vmax.f32 %v3242_v8, 0.0  ;;  %v5719_v8 = vld [vmem:[#allocation27 + $0x18] sm:$0xff]  }
 0x756   :  { %v3245_v11 = vpop.f32.mrf.mxu0 }
 0x757   :  { %v3246_v54 = vadd.f32 %v3245_v11, %v6911_v9  ;;  %v3320_v50 = vmax.f32 %v3244_v10, 0.0 }
 0x758   :  { %v3249_v57 = vpop.f32.mrf.mxu0 }
 0x759   :  { %v3321_v20 = vmax.f32 %v3246_v54, 0.0  ;;  %v3350_v24 = vpack.c.bf16 %v3320_v50, %v3318_v21  ;;  %v3250_v63 = vadd.f32 %v3249_v57, %v6914_v41  ;;  %v5721_v57 = vld [vmem:[#allocation27 + $0x10] sm:$0xff]  }
 0x75a   :  { %v3251_v35 = vpop.f32.mrf.mxu0 }
 0x75b   :  { %v3351_v22 = vpack.c.bf16 %v3321_v20, %v3319_v12  ;;  %v3252_v29 = vadd.f32 %v3251_v35, %v6911_v9  ;;  %v3322_v3 = vmax.f32 %v3250_v63, 0.0  ;;  %v5722_v20 = vld [vmem:[#allocation27 + $0x48] sm:$0xff]  }
 0x75c   :  { %v3253_v27 = vpop.f32.mrf.mxu0 }
 0x75d   :  { %v3254_v30 = vadd.f32 %v3253_v27, %v6914_v41  ;;  %3735 = vmatprep.mubr.bf16.mxu1 %v3351_v22  ;;  %3848 = vmatprep.mubr.bf16.mxu0 %v3351_v22  ;;  %v3323_v40 = vmax.f32 %v3252_v29, 0.0  ;;  %v5723_v27 = vld [vmem:[#allocation27 + $0x8] sm:$0xff]  }
 0x75e   :  { %v3255_v60 = vpop.f32.mrf.mxu0  ;;  %3736 = vmatmul.mubr.bf16.vlgmr.msra.gmra.mxu1 %v3350_v24  ;;  %3849 = vmatmul.mubr.bf16.vlgmr.msra.gmra.mxu0 %v3350_v24 }
 0x75f   :  { %v3256_v2 = vadd.f32 %v3255_v60, %v6911_v9  ;;  %5245 = vmatpush3.bf16.msra.mxu1 %v6836_v43  ;;  %5106 = vmatpush3.bf16.msra.mxu0 %v5711_v23  ;;  %v3324_v37 = vmax.f32 %v3254_v30, 0.0  ;;  %v5716_v43 = vld [vmem:[#allocation27 + $0x60] sm:$0xff]  }
 0x760   :  { %v3259_v36 = vpop.f32.mrf.mxu0  ;;  %5238 = vmatprep.subr.bf16.mxu1 %v6838_v7  ;;  %5107 = vmatprep.subr.bf16.mxu0 %v5712_v26 }
 0x761   :  { %v3325_v48 = vmax.f32 %v3256_v2, 0.0  ;;  %v3352_v45 = vpack.c.bf16 %v3324_v37, %v3322_v3  ;;  %v3260_v17 = vadd.f32 %v3259_v36, %v6914_v41 }
 0x762   :  { %v3261_v47 = vpop.f32.mrf.mxu0 }
 0x763   :  { %v3353_v44 = vpack.c.bf16 %v3325_v48, %v3323_v40  ;;  %5246 = vmatpush3.bf16.msra.mxu1 %v6845_v59  ;;  %5108 = vmatpush3.bf16.msra.mxu0 %v5713_v33  ;;  %v3262_v49 = vadd.f32 %v3261_v47, %v6911_v9  ;;  %v3326_v1 = vmax.f32 %v3260_v17, 0.0 }
 0x764   :  { %v3263_v39 = vpop.f32.mrf.mxu0  ;;  %5239 = vmatprep.subr.bf16.mxu1 %v6848_v34  ;;  %5109 = vmatprep.subr.bf16.mxu0 %v5714_v38 }
 0x765   :  { %v3264_v7 = vadd.f32 %v3263_v39, %v6914_v41  ;;  %3745 = vmatprep.mubr.bf16.mxu1 %v3353_v44  ;;  %3856 = vmatprep.mubr.bf16.mxu0 %v3353_v44  ;;  %v3327_v61 = vmax.f32 %v3262_v49, 0.0 }
 0x766   :  { %v3265_v31 = vpop.f32.mrf.mxu0  ;;  %3746 = vmatmul.mubr.bf16.gmra.mxu1 %v3352_v45  ;;  %3857 = vmatmul.mubr.bf16.gmra.mxu0 %v3352_v45 }
 0x767   :  { %v3266_v59 = vadd.f32 %v3265_v31, %v6911_v9  ;;  %5247 = vmatpush3.bf16.msra.mxu1 %v6851_v4  ;;  %5110 = vmatpush3.bf16.msra.mxu0 %v5715_v42  ;;  %v3328_v34 = vmax.f32 %v3264_v7, 0.0  ;;  %v5720_v4 = vld [vmem:[#allocation27 + $0x50] sm:$0xff]  }
 0x768   :  { %v3269_v56 = vpop.f32.mrf.mxu0  ;;  %5240 = vmatprep.subr.bf16.mxu1 %v6854_v51  ;;  %5111 = vmatprep.subr.bf16.mxu0 %v5716_v43 }
 0x769   :  { %v3329_v19 = vmax.f32 %v3266_v59, 0.0  ;;  %v3354_v10 = vpack.c.bf16 %v3328_v34, %v3326_v1  ;;  %v3270_v54 = vadd.f32 %v3269_v56, %v6914_v41 }
 0x76a   :  { %v3271_v5 = vpop.f32.mrf.mxu0 }
 0x76b   :  { %v3355_v6 = vpack.c.bf16 %v3329_v19, %v3327_v61  ;;  %5248 = vmatpush3.bf16.msra.mxu1 %v6861_v16  ;;  %5112 = vmatpush3.bf16.msra.mxu0 %v5717_v55  ;;  %v3272_v11 = vadd.f32 %v3271_v5, %v6911_v9  ;;  %v3330_v22 = vmax.f32 %v3270_v54, 0.0 }
 0x76c   :  { %v3273_v62 = vpop.f32.mrf.mxu0  ;;  %5241 = vmatprep.subr.bf16.mxu1 %v6864_v18  ;;  %5113 = vmatprep.subr.bf16.mxu0 %v5718_v46 }
 0x76d   :  { %v3274_v51 = vadd.f32 %v3273_v62, %v6914_v41  ;;  %3755 = vmatprep.mubr.bf16.mxu1 %v3355_v6  ;;  %3864 = vmatprep.mubr.bf16.mxu0 %v3355_v6  ;;  %v3331_v21 = vmax.f32 %v3272_v11, 0.0 }
 0x76e   :  { %v3275_v50 = vpop.f32.mrf.mxu0  ;;  %3756 = vmatmul.mubr.bf16.gmra.mxu1 %v3354_v10  ;;  %3865 = vmatmul.mubr.bf16.gmra.mxu0 %v3354_v10 }
 0x76f   :  { %v3276_v16 = vadd.f32 %v3275_v50, %v6911_v9  ;;  %5249 = vmatpush3.bf16.msra.mxu1 %v6867_v28  ;;  %5114 = vmatpush3.bf16.msra.mxu0 %v5719_v8  ;;  %v3332_v18 = vmax.f32 %v3274_v51, 0.0 }
 0x770   :  { %v3279_v12 = vpop.f32.mrf.mxu0  ;;  %5242 = vmatprep.subr.bf16.mxu1 %v6891_v52  ;;  %5115 = vmatprep.subr.bf16.mxu0 %v5720_v4 }
 0x771   :  { %v3333_v35 = vmax.f32 %v3276_v16, 0.0  ;;  %v3356_v26 = vpack.c.bf16 %v3332_v18, %v3330_v22  ;;  %v3280_v30 = vadd.f32 %v3279_v12, %v6914_v41  ;;  %v5726_v22 = vld [vmem:[%s7253_s22 + $0x8] sm:$0xff]  }
 0x772   :  { %v3281_v23 = vpop.f32.mrf.mxu0 }
 0x773   :  { %v3357_v24 = vpack.c.bf16 %v3333_v35, %v3331_v21  ;;  %5250 = vmatpush3.bf16.msra.mxu1 %v6893_v53  ;;  %5116 = vmatpush3.bf16.msra.mxu0 %v5721_v57  ;;  %v3282_v28 = vadd.f32 %v3281_v23, %v6911_v9  ;;  %v3334_v37 = vmax.f32 %v3280_v30, 0.0  ;;  %v5725_v23 = vld [vmem:[#allocation27] sm:$0xff]  }
 0x774   :  { %v3283_v29 = vpop.f32.mrf.mxu0  ;;  %5243 = vmatprep.subr.bf16.mxu1 %v6897_v32  ;;  %5117 = vmatprep.subr.bf16.mxu0 %v5722_v20  ;;  %v5734_v30 = vld [vmem:[%s7282_s30 + $0x30] sm:$0xff]  }
 0x775   :  { %v3284_v52 = vadd.f32 %v3283_v29, %v6914_v41  ;;  %3765 = vmatprep.mubr.bf16.mxu1 %v3357_v24  ;;  %3872 = vmatprep.mubr.bf16.mxu0 %v3357_v24  ;;  %v3335_v32 = vmax.f32 %v3282_v28, 0.0  ;;  %v5728_v24 = vld [vmem:[%s7282_s30] sm:$0xff]   ;;  %v5731_v29 = vld [vmem:[%s7282_s30 + $0x18] sm:$0xff]  }
 0x776   :  { %v3285_v63 = vpop.f32.mrf.mxu0  ;;  %3766 = vmatmul.mubr.bf16.gmra.mxu1 %v3356_v26  ;;  %3873 = vmatmul.mubr.bf16.gmra.mxu0 %v3356_v26  ;;  %v5730_v26 = vld [vmem:[%s7282_s30 + $0x10] sm:$0xff]   ;;  %v5732_v28 = vld [vmem:[%s7282_s30 + $0x20] sm:$0xff]  }
 0x777   :  { %v3286_v53 = vadd.f32 %v3285_v63, %v6911_v9  ;;  %5251 = vmatpush3.bf16.msra.mxu1 %v6899_v25  ;;  %5118 = vmatpush3.bf16.msra.mxu0 %v5723_v27  ;;  %v3336_v60 = vmax.f32 %v3284_v52, 0.0  ;;  %v5729_v27 = vld [vmem:[%s7282_s30 + $0x8] sm:$0xff]   ;;  %v5735_v63 = vld [vmem:[%s7282_s30 + $0x38] sm:$0xff]  }
 0x778   :  { %v3289_v2 = vpop.f32.mrf.mxu0  ;;  %5244 = vmatprep.subr.bf16.mxu1 %v6903_v58  ;;  %v5733_v52 = vld [vmem:[%s7282_s30 + $0x28] sm:$0xff]  }
 0x779   :  { %v3337_v33 = vmax.f32 %v3286_v53, 0.0  ;;  %v3358_v40 = vpack.c.bf16 %v3336_v60, %v3334_v37  ;;  %v3290_v25 = vadd.f32 %v3289_v2, %v6914_v41  ;;  %v3442_v53 = vsub.s32 2, %v6385_v13  ;;  %v3430_v60 = vld [vmem:[%s7251_s20] sm:$0x7]  ;;  %s6134_s20 = smov 3  }
 0x77a   :  { %v3291_v36 = vpop.f32.mrf.mxu0 }
 0x77b   :  { %v3359_v38 = vpack.c.bf16 %v3337_v33, %v3335_v32  ;;  %5252 = vmatpush3.bf16.msra.mxu1 %v6905_v0  ;;  %v3292_v3 = vadd.f32 %v3291_v36, %v6911_v9  ;;  %v3338_v0 = vmax.f32 %v3290_v25, 0.0  ;;  %v6997_v33 = vrot.slane %v3430_v60, %v3442_v53 }
 0x77c   :  { %v3293_v48 = vpop.f32.mrf.mxu0  ;;  %5185 = vmatprep.subr.bf16.mxu1 %v5726_v22 }
 0x77d   :  { %v3294_v47 = vadd.f32 %v3293_v48, %v6914_v41  ;;  %3775 = vmatprep.mubr.bf16.mxu1 %v3359_v38  ;;  %3880 = vmatprep.mubr.bf16.mxu0 %v3359_v38  ;;  %v3339_v39 = vmax.f32 %v3292_v3, 0.0  ;;  %v7000_v38 = vrot.slane %v3430_v60, %v6388_v14  ;;  %v7003_v48 = vrot.slane %v3430_v60, %v6391_v15 }
 0x77e   :  { %v3295_v44 = vpop.f32.mrf.mxu0  ;;  %3776 = vmatmul.mubr.bf16.gmra.mxu1 %v3358_v40  ;;  %3881 = vmatmul.mubr.bf16.gmra.mxu0 %v3358_v40 }
 0x77f   :  { %v3296_v58 = vadd.f32 %v3295_v44, %v6911_v9  ;;  %v3340_v42 = vmax.f32 %v3294_v47, 0.0 }
 0x780   :  { %v3299_v45 = vpop.f32.mrf.mxu0 }
 0x781   :  { %v3341_v43 = vmax.f32 %v3296_v58, 0.0  ;;  %v3360_v17 = vpack.c.bf16 %v3340_v42, %v3338_v0  ;;  %v3300_v34 = vadd.f32 %v3299_v45, %v6914_v41 }
 0x782   :  { %v3301_v49 = vpop.f32.mrf.mxu0 }
 0x783   :  { %v3361_v7 = vpack.c.bf16 %v3341_v43, %v3339_v39  ;;  %v3302_v59 = vadd.f32 %v3301_v49, %v6911_v9  ;;  %v3342_v6 = vmax.f32 %v3300_v34, 0.0 }
 0x784   :  { %v3303_v31 = vpop.f32.mrf.mxu0 }
 0x785   :  { %v3304_v55 = vadd.f32 %v3303_v31, %v6914_v41  ;;  %3785 = vmatprep.mubr.bf16.mxu1 %v3361_v7  ;;  %3888 = vmatprep.mubr.bf16.mxu0 %v3361_v7  ;;  %v3343_v1 = vmax.f32 %v3302_v59, 0.0 }
 0x786   :  { %v3305_v56 = vpop.f32.mrf.mxu0  ;;  %3786 = vmatmul.mubr.bf16.gmra.mxu1 %v3360_v17  ;;  %3889 = vmatmul.mubr.bf16.gmra.mxu0 %v3360_v17 }
 0x787   :  { %v3306_v46 = vadd.f32 %v3305_v56, %v6911_v9  ;;  %v3344_v61 = vmax.f32 %v3304_v55, 0.0 }
 0x788   :  { %v3309_v19 = vpop.f32.mrf.mxu0 }
 0x789   :  { %v3345_v5 = vmax.f32 %v3306_v46, 0.0  ;;  %v3362_v62 = vpack.c.bf16 %v3344_v61, %v3342_v6  ;;  %v3310_v54 = vadd.f32 %v3309_v19, %v6914_v41 }
 0x78a   :  { %v3311_v8 = vpop.f32.mrf.mxu0 }
 0x78b   :  { %v3363_v10 = vpack.c.bf16 %v3345_v5, %v3343_v1  ;;  %v3312_v11 = vadd.f32 %v3311_v8, %v6911_v9  ;;  %v3346_v20 = vmax.f32 %v3310_v54, 0.0 }
 0x78c   :  { %v3313_v4 = vpop.f32.mrf.mxu0 }
 0x78d   :  { %v3314_v51 = vadd.f32 %v3313_v4, %v6914_v41  ;;  %3795 = vmatprep.mubr.bf16.mxu1 %v3363_v10  ;;  %3896 = vmatprep.mubr.bf16.mxu0 %v3363_v10  ;;  %v3347_v18 = vmax.f32 %v3312_v11, 0.0  ;;  %v5724_v41 = vld [vmem:[#allocation27 + $0x40] sm:$0xff]  }
 0x78e   :  { %v3315_v50 = vpop.f32.mrf.mxu0  ;;  %3796 = vmatmul.mubr.bf16.gmra.mxu1 %v3362_v62  ;;  %3897 = vmatmul.mubr.bf16.gmra.mxu0 %v3362_v62 }
 0x78f   :  { %v3316_v16 = vadd.f32 %v3315_v50, %v6911_v9  ;;  %v3348_v57 = vmax.f32 %v3314_v51, 0.0  ;;  %5119 = vmatprep.subr.bf16.mxu0 %v5724_v41  ;;  %v5727_v9 = vld [vmem:[%s7253_s22] sm:$0xff]  }
 0x790   :  { %5120 = vmatpush3.bf16.msra.mxu0 %v5725_v23 }
 0x791   :  { %v3349_v12 = vmax.f32 %v3316_v16, 0.0  ;;  %v3364_v35 = vpack.c.bf16 %v3348_v57, %v3346_v20 }
 0x793   :  { %v3365_v21 = vpack.c.bf16 %v3349_v12, %v3347_v18 }
 0x795   :  { %3805 = vmatprep.mubr.bf16.mxu1 %v3365_v21 }
 0x796   :  { %3806 = vmatmul.mubr.bf16.gmra.mxu1 %v3364_v35 }
 0x797   :  { %3904 = vmatprep.mubr.bf16.mxu1 %v3365_v21 }
 0x79e   :  { %3905 = vmatmul.mubr.bf16.vlgmr.msra.gmra.mxu1 %v3364_v35 }
 0x79f   :  { %5186 = vmatpush3.bf16.msra.mxu1 %v5726_v22  ;;  %5189 = vmatprep.mubr.msk.bf16.mxu1 %vm4017_vm1, %v5728_v24 }
 0x7a0   :  { %5187 = vmatprep.subr.bf16.mxu1 %v5727_v9 }
 0x7a3   :  { %5188 = vmatpush3.bf16.msra.mxu1 %v5727_v9 }
 0x7a6   :  { %5190 = vmatmul.mubr.msk.bf16.vlgmr.msra.gmra.mxu1 %vm4017_vm1, %v5729_v27 }
 0x7a7   :  { %5193 = vmatprep.mubr.msk.bf16.mxu1 %vm4017_vm1, %v5730_v26 }
 0x7ae   :  { %5194 = vmatmul.mubr.msk.bf16.gmra.mxu1 %vm4017_vm1, %v5731_v29 }
 0x7af   :  { %5197 = vmatprep.mubr.msk.bf16.mxu1 %vm4017_vm1, %v5732_v28 }
 0x7b6   :  { %5198 = vmatmul.mubr.msk.bf16.gmra.mxu1 %vm4017_vm1, %v5733_v52 }
 0x7b7   :  { %5201 = vmatprep.mubr.msk.bf16.mxu1 %vm4017_vm1, %v5734_v30 }
 0x7be   :  { %5202 = vmatmul.mubr.msk.bf16.gmra.mxu1 %vm4017_vm1, %v5735_v63 }
 0x81e   :  { %v3737_v2 = vpop.f32.mrf.mxu1  ;;  %v5047_v32 = vpop.f32.mrf.mxu0 }
 0x81f   :  { %v3738_v14 = vadd.f32 %v3737_v2, %v7003_v48 }
 0x820   :  { %v3739_v37 = vpop.f32.mrf.mxu1  ;;  %v5048_v36 = vpop.f32.mrf.mxu0 }
 0x821   :  { %v5049_v40 = vadd.f32 %v5048_v36, %v5047_v32  ;;  %v3740_v42 = vadd.f32 %v3739_v37, %v7000_v38 }
 0x822   :  { %v3741_v3 = vpop.f32.mrf.mxu1  ;;  %v5050_v47 = vpop.f32.mrf.mxu0 }
 0x823   :  { %v3851_v13 = vadd.f32 %v5049_v40, %v6997_v33  ;;  %v3742_v25 = vadd.f32 %v3741_v3, %v7003_v48 }
 0x824   :  { %v3743_v44 = vpop.f32.mrf.mxu1  ;;  %v5051_v58 = vpop.f32.mrf.mxu0 }
 0x825   :  { %v3744_v45 = vadd.f32 %v3743_v44, %v7000_v38  ;;  %v5052_v39 = vadd.f32 %v5051_v58, %v5050_v47  ;;  %4563 = vrot.lane.b32.xlu0 %v3851_v13, %s6134_s20  ;;  %v3913_v7 = vpack.c.bf16 %v3742_v25, %v3738_v14 }
 0x826   :  { %v3747_v15 = vpop.f32.mrf.mxu1  ;;  %v5053_v43 = vpop.f32.mrf.mxu0 }
 0x827   :  { %v3914_v0 = vpack.c.bf16 %v3744_v45, %v3740_v42  ;;  %v3854_v49 = vadd.f32 %v5052_v39, %v6997_v33  ;;  %v3748_v8 = vadd.f32 %v3747_v15, %v7003_v48 }
 0x828   :  { %v3749_v17 = vpop.f32.mrf.mxu1  ;;  %v5054_v31 = vpop.f32.mrf.mxu0 }
 0x829   :  { %v5055_v59 = vadd.f32 %v5054_v31, %v5053_v43  ;;  %4565 = vrot.lane.b32.xlu0 %v3854_v49, %s6134_s20  ;;  %4267 = vmatprep.mubr.bf16.mxu0 %v3914_v0  ;;  %v3750_v1 = vadd.f32 %v3749_v17, %v7000_v38 }
 0x82a   :  { %v3751_v55 = vpop.f32.mrf.mxu1  ;;  %v5056_v34 = vpop.f32.mrf.mxu0  ;;  %4268 = vmatmul.mubr.bf16.vlgmr.msra.gmra.mxu0 %v3913_v7 }
 0x82b   :  { %v3859_v56 = vadd.f32 %v5055_v59, %v6997_v33  ;;  %v3752_v46 = vadd.f32 %v3751_v55, %v7003_v48 }
 0x82c   :  { %v3753_v61 = vpop.f32.mrf.mxu1  ;;  %v5057_v19 = vpop.f32.mrf.mxu0 }
 0x82d   :  { %v3754_v5 = vadd.f32 %v3753_v61, %v7000_v38  ;;  %v5058_v6 = vadd.f32 %v5057_v19, %v5056_v34  ;;  %4567 = vrot.lane.b32.xlu1 %v3859_v56, %s6134_s20  ;;  %v3915_v51 = vpack.c.bf16 %v3752_v46, %v3748_v8 }
 0x82e   :  { %v3757_v10 = vpop.f32.mrf.mxu1  ;;  %v5059_v62 = vpop.f32.mrf.mxu0 }
 0x82f   :  { %v3916_v4 = vpack.c.bf16 %v3754_v5, %v3750_v1  ;;  %v3862_v11 = vadd.f32 %v5058_v6, %v6997_v33  ;;  %v3758_v9 = vadd.f32 %v3757_v10, %v7003_v48 }
 0x830   :  { %v3759_v54 = vpop.f32.mrf.mxu1  ;;  %v5060_v50 = vpop.f32.mrf.mxu0 }
 0x831   :  { %v5061_v16 = vadd.f32 %v5060_v50, %v5059_v62  ;;  %4569 = vrot.lane.b32.xlu1 %v3862_v11, %s6134_s20  ;;  %4275 = vmatprep.mubr.bf16.mxu0 %v3916_v4  ;;  %v3760_v22 = vadd.f32 %v3759_v54, %v7000_v38 }
 0x832   :  { %v3761_v57 = vpop.f32.mrf.mxu1  ;;  %v5062_v18 = vpop.f32.mrf.mxu0  ;;  %4276 = vmatmul.mubr.bf16.gmra.mxu0 %v3915_v51 }
 0x833   :  { %v3867_v12 = vadd.f32 %v5061_v16, %v6997_v33  ;;  %v3762_v20 = vadd.f32 %v3761_v57, %v7003_v48 }
 0x834   :  { %v3763_v21 = vpop.f32.mrf.mxu1  ;;  %v5063_v35 = vpop.f32.mrf.mxu0 }
 0x835   :  { %v3764_v41 = vadd.f32 %v3763_v21, %v7000_v38  ;;  %v5064_v23 = vadd.f32 %v5063_v35, %v5062_v18  ;;  %4571 = vrot.lane.b32.xlu0 %v3867_v12, %s6134_s20  ;;  %v3917_v28 = vpack.c.bf16 %v3762_v20, %v3758_v9 }
 0x836   :  { %v3767_v24 = vpop.f32.mrf.mxu1  ;;  %v5065_v27 = vpop.f32.mrf.mxu0 }
 0x837   :  { %v3918_v26 = vpack.c.bf16 %v3764_v41, %v3760_v22  ;;  %v3870_v29 = vadd.f32 %v5064_v23, %v6997_v33  ;;  %v3768_v13 = vadd.f32 %v3767_v24, %v7003_v48 }
 0x838   :  { %v3769_v52 = vpop.f32.mrf.mxu1  ;;  %v5066_v30 = vpop.f32.mrf.mxu0 }
 0x839   :  { %v5067_v63 = vadd.f32 %v5066_v30, %v5065_v27  ;;  %4573 = vrot.lane.b32.xlu1 %v3870_v29, %s6134_s20  ;;  %4283 = vmatprep.mubr.bf16.mxu0 %v3918_v26  ;;  %v3770_v40 = vadd.f32 %v3769_v52, %v7000_v38 }
 0x83a   :  { %v3771_v53 = vpop.f32.mrf.mxu1  ;;  %v5068_v60 = vpop.f32.mrf.mxu0  ;;  %4284 = vmatmul.mubr.bf16.gmra.mxu0 %v3917_v28 }
 0x83b   :  { %v3875_v2 = vadd.f32 %v5067_v63, %v6997_v33  ;;  %v3772_v32 = vadd.f32 %v3771_v53, %v7003_v48 }
 0x83c   :  { %v3773_v37 = vpop.f32.mrf.mxu1  ;;  %v5069_v36 = vpop.f32.mrf.mxu0 }
 0x83d   :  { %v3774_v3 = vadd.f32 %v3773_v37, %v7000_v38  ;;  %v5070_v47 = vadd.f32 %v5069_v36, %v5068_v60  ;;  %4575 = vrot.lane.b32.xlu0 %v3875_v2, %s6134_s20  ;;  %v3919_v45 = vpack.c.bf16 %v3772_v32, %v3768_v13  ;;  %v5736_v13 = vld [vmem:[%s7255_s24 + $0x38] sm:$0xff]  }
 0x83e   :  { %v3777_v25 = vpop.f32.mrf.mxu1  ;;  %v5071_v44 = vpop.f32.mrf.mxu0  ;;  %5205 = vmatprep.subr.bf16.mxu1 %v5736_v13 }
 0x83f   :  { %v3920_v58 = vpack.c.bf16 %v3774_v3, %v3770_v40  ;;  %v3878_v42 = vadd.f32 %v5070_v47, %v6997_v33  ;;  %v3778_v56 = vadd.f32 %v3777_v25, %v7003_v48  ;;  %v5737_v25 = vld [vmem:[%s7255_s24 + $0x30] sm:$0xff]   ;;  %5206 = vmatpush3.bf16.msra.mxu1 %v5736_v13 }
 0x840   :  { %v3779_v39 = vpop.f32.mrf.mxu1  ;;  %v5072_v14 = vpop.f32.mrf.mxu0  ;;  %5207 = vmatprep.subr.bf16.mxu1 %v5737_v25 }
 0x841   :  { %v5073_v15 = vadd.f32 %v5072_v14, %v5071_v44  ;;  %4577 = vrot.lane.b32.xlu1 %v3878_v42, %s6134_s20  ;;  %4291 = vmatprep.mubr.bf16.mxu0 %v3920_v58  ;;  %v3780_v59 = vadd.f32 %v3779_v39, %v7000_v38 }
 0x842   :  { %v3781_v43 = vpop.f32.mrf.mxu1  ;;  %v5074_v0 = vpop.f32.mrf.mxu0  ;;  %4292 = vmatmul.mubr.bf16.gmra.mxu0 %v3919_v45 }
 0x843   :  { %v3883_v49 = vadd.f32 %v5073_v15, %v6997_v33  ;;  %v3782_v7 = vadd.f32 %v3781_v43, %v7003_v48  ;;  %5208 = vmatpush3.bf16.msra.mxu1 %v5737_v25 }
 0x844   :  { %v3783_v17 = vpop.f32.mrf.mxu1  ;;  %v5075_v31 = vpop.f32.mrf.mxu0 }
 0x845   :  { %v3784_v55 = vadd.f32 %v3783_v17, %v7000_v38  ;;  %v5076_v34 = vadd.f32 %v5075_v31, %v5074_v0  ;;  %4579 = vrot.lane.b32.xlu0 %v3883_v49, %s6134_s20  ;;  %v3921_v5 = vpack.c.bf16 %v3782_v7, %v3778_v56  ;;  %v5742_v56 = vld [vmem:[%s7255_s24 + $0x8] sm:$0xff]  }
 0x846   :  { %v3787_v46 = vpop.f32.mrf.mxu1  ;;  %v5077_v61 = vpop.f32.mrf.mxu0 }
 0x847   :  { %v3922_v19 = vpack.c.bf16 %v3784_v55, %v3780_v59  ;;  %v3886_v1 = vadd.f32 %v5076_v34, %v6997_v33  ;;  %v3788_v12 = vadd.f32 %v3787_v46, %v7003_v48  ;;  %v5739_v55 = vld [vmem:[%s7255_s24 + $0x20] sm:$0xff]   ;;  %v5740_v34 = vld [vmem:[%s7255_s24 + $0x18] sm:$0xff]  }
 0x848   :  { %v3789_v6 = vpop.f32.mrf.mxu1  ;;  %v5078_v8 = vpop.f32.mrf.mxu0  ;;  %v5743_v46 = vld [vmem:[%s7255_s24] sm:$0xff]  }
 0x849   :  { %v5079_v10 = vadd.f32 %v5078_v8, %v5077_v61  ;;  %4581 = vrot.lane.b32.xlu1 %v3886_v1, %s6134_s20  ;;  %4299 = vmatprep.mubr.bf16.mxu0 %v3922_v19  ;;  %v3790_v16 = vadd.f32 %v3789_v6, %v7000_v38 }
 0x84a   :  { %v3791_v62 = vpop.f32.mrf.mxu1  ;;  %v5080_v4 = vpop.f32.mrf.mxu0  ;;  %4300 = vmatmul.mubr.bf16.gmra.mxu0 %v3921_v5 }
 0x84b   :  { %v3891_v11 = vadd.f32 %v5079_v10, %v6997_v33  ;;  %v3792_v51 = vadd.f32 %v3791_v62, %v7003_v48 }
 0x84c   :  { %v3793_v54 = vpop.f32.mrf.mxu1  ;;  %v5081_v50 = vpop.f32.mrf.mxu0 }
 0x84d   :  { %v3794_v57 = vadd.f32 %v3793_v54, %v7000_v38  ;;  %v5082_v18 = vadd.f32 %v5081_v50, %v5080_v4  ;;  %4583 = vrot.lane.b32.xlu0 %v3891_v11, %s6134_s20  ;;  %v3923_v41 = vpack.c.bf16 %v3792_v51, %v3788_v12  ;;  %v7096_v4 = vld [vmem:[%s7254_s23] ss:$0 sm:$0xff] }
 0x84e   :  { %v3797_v20 = vpop.f32.mrf.mxu1  ;;  %v5083_v21 = vpop.f32.mrf.mxu0 }
 0x84f   :  { %v3924_v35 = vpack.c.bf16 %v3794_v57, %v3790_v16  ;;  %v3894_v22 = vadd.f32 %v5082_v18, %v6997_v33  ;;  %v3798_v2 = vadd.f32 %v3797_v20, %v7003_v48 }
 0x850   :  { %v3799_v23 = vpop.f32.mrf.mxu1  ;;  %v5084_v9 = vpop.f32.mrf.mxu0 }
 0x851   :  { %v5085_v24 = vadd.f32 %v5084_v9, %v5083_v21  ;;  %4585 = vrot.lane.b32.xlu1 %v3894_v22, %s6134_s20  ;;  %4307 = vmatprep.mubr.bf16.mxu0 %v3924_v35  ;;  %v3800_v63 = vadd.f32 %v3799_v23, %v7000_v38 }
 0x852   :  { %v3801_v27 = vpop.f32.mrf.mxu1  ;;  %v5086_v26 = vpop.f32.mrf.mxu0  ;;  %4308 = vmatmul.mubr.bf16.gmra.mxu0 %v3923_v41 }
 0x853   :  { %v3899_v29 = vadd.f32 %v5085_v24, %v6997_v33  ;;  %v3802_v28 = vadd.f32 %v3801_v27, %v7003_v48 }
 0x854   :  { %v3803_v52 = vpop.f32.mrf.mxu1  ;;  %v5087_v30 = vpop.f32.mrf.mxu0 }
 0x855   :  { %v3804_v53 = vadd.f32 %v3803_v52, %v7000_v38  ;;  %v5088_v60 = vadd.f32 %v5087_v30, %v5086_v26  ;;  %4587 = vrot.lane.b32.xlu0 %v3899_v29, %s6134_s20  ;;  %v3925_v40 = vpack.c.bf16 %v3802_v28, %v3798_v2 }
 0x856   :  { %v3807_v32 = vpop.f32.mrf.mxu1 }
 0x857   :  { %v3926_v37 = vpack.c.bf16 %v3804_v53, %v3800_v63  ;;  %v3902_v36 = vadd.f32 %v5088_v60, %v6997_v33  ;;  %v3808_v39 = vadd.f32 %v3807_v32, %v7003_v48 }
 0x858   :  { %v3809_v3 = vpop.f32.mrf.mxu1 }
 0x859   :  { %4589 = vrot.lane.b32.xlu1 %v3902_v36, %s6134_s20  ;;  %4315 = vmatprep.mubr.bf16.mxu0 %v3926_v37  ;;  %v3810_v42 = vadd.f32 %v3809_v3, %v7000_v38 }
 0x85a   :  { %v3811_v47 = vpop.f32.mrf.mxu1  ;;  %4316 = vmatmul.mubr.bf16.gmra.mxu0 %v3925_v40 }
 0x85b   :  { %v3812_v44 = vadd.f32 %v3811_v47, %v7003_v48  ;;  %v5738_v48 = vld [vmem:[%s7255_s24 + $0x28] sm:$0xff]  }
 0x85c   :  { %v3813_v58 = vpop.f32.mrf.mxu1  ;;  %5209 = vmatprep.subr.bf16.mxu1 %v5738_v48 }
 0x85d   :  { %v3814_v45 = vadd.f32 %v3813_v58, %v7000_v38  ;;  %v3927_v43 = vpack.c.bf16 %v3812_v44, %v3808_v39  ;;  %5210 = vmatpush3.bf16.msra.mxu1 %v5738_v48 }
 0x85e   :  { %v5089_v14 = vpop.f32.mrf.mxu1  ;;  %5211 = vmatprep.subr.bf16.mxu1 %v5739_v55 }
 0x85f   :  { %v3928_v15 = vpack.c.bf16 %v3814_v45, %v3810_v42 }
 0x860   :  { %v5090_v0 = vpop.f32.mrf.mxu1 }
 0x861   :  { %v5091_v49 = vadd.f32 %v5090_v0, %v5089_v14  ;;  %4323 = vmatprep.mubr.bf16.mxu0 %v3928_v15  ;;  %5212 = vmatpush3.bf16.msra.mxu1 %v5739_v55 }
 0x862   :  { %v5092_v7 = vpop.f32.mrf.mxu1  ;;  %4324 = vmatmul.mubr.bf16.gmra.mxu0 %v3927_v43  ;;  %5213 = vmatprep.subr.bf16.mxu1 %v5740_v34 }
 0x863   :  { %v3907_v17 = vadd.f32 %v5091_v49, %v6997_v33 }
 0x864   :  { %v5093_v31 = vpop.f32.mrf.mxu1 }
 0x865   :  { %v5094_v59 = vadd.f32 %v5093_v31, %v5092_v7  ;;  %4591 = vrot.lane.b32.xlu0 %v3907_v17, %s6134_s20  ;;  %5214 = vmatpush3.bf16.msra.mxu1 %v5740_v34 }
 0x866   :  { %v5191_v61 = vpop.f32.mrf.mxu1 }
 0x867   :  { %v3910_v38 = vadd.f32 %v5094_v59, %v6997_v33  ;;  %v5741_v33 = vld [vmem:[%s7255_s24 + $0x10] sm:$0xff]  }
 0x868   :  { %5215 = vmatprep.subr.bf16.mxu1 %v5741_v33  ;;  %v4076_v19 = vpop.f32.mrf.mxu1 }
 0x869   :  { %4593 = vrot.lane.b32.xlu1 %v3910_v38, %s6134_s20  ;;  %5216 = vmatpush3.bf16.msra.mxu1 %v5741_v33 }
 0x86a   :  { %5217 = vmatprep.subr.bf16.mxu1 %v5742_v56  ;;  %v5192_v6 = vpop.f32.mrf.mxu1 }
 0x86c   :  { %v4079_v51 = vpop.f32.mrf.mxu1 }
 0x86d   :  { %5218 = vmatpush3.bf16.msra.mxu1 %v5742_v56 }
 0x86e   :  { %5219 = vmatprep.subr.bf16.mxu1 %v5743_v46  ;;  %v5195_v12 = vpop.f32.mrf.mxu1 }
 0x870   :  { %v4092_v24 = vpop.f32.mrf.mxu1 }
 0x871   :  { %5220 = vmatpush3.bf16.msra.mxu1 %v5743_v46 }
 0x872   :  { %v5196_v63 = vpop.f32.mrf.mxu1 }
 0x874   :  { %v4095_v3 = vpop.f32.mrf.mxu1 }
 0x876   :  { %v5199_v45 = vpop.f32.mrf.mxu1 }
 0x878   :  { %v4108_v17 = vpop.f32.mrf.mxu1 }
 0x87a   :  { %v5200_v33 = vpop.f32.mrf.mxu1 }
 0x8ea   :  { %v5121_v1 = vpop.f32.mrf.mxu0 }
 0x8ec   :  { %v5122_v5 = vpop.f32.mrf.mxu0 }
 0x8ed   :  { %v5123_v8 = vadd.f32 %v5122_v5, %v5121_v1 }
 0x8ee   :  { %v5124_v10 = vpop.f32.mrf.mxu0 }
 0x8ef   :  { %v4270_v62 = vadd.f32 %v5123_v8, %v4076_v19  ;;  %v4111_v8 = vpop.f32.mrf.mxu1 }
 0x8f0   :  { %v5125_v11 = vpop.f32.mrf.mxu0 }
 0x8f1   :  { %v5126_v54 = vadd.f32 %v5125_v11, %v5124_v10  ;;  %v4339_v16 = vadd.f32 %v7096_v4, %v4270_v62 }
 0x8f2   :  { %v5127_v50 = vpop.f32.mrf.mxu0 }
 0x8f3   :  { %v4273_v57 = vadd.f32 %v5126_v54, %v4079_v51  ;;  %v4355_v22 = vmax.f32 %v4339_v16, 0.0  ;;  %v5203_v16 = vpop.f32.mrf.mxu1 }
 0x8f4   :  { %v5128_v18 = vpop.f32.mrf.mxu0 }
 0x8f5   :  { %v4340_v20 = vadd.f32 %v7096_v4, %v4273_v57  ;;  %v5129_v21 = vadd.f32 %v5128_v18, %v5127_v50 }
 0x8f6   :  { %v5130_v35 = vpop.f32.mrf.mxu0 }
 0x8f7   :  { %v4356_v41 = vmax.f32 %v4340_v20, 0.0  ;;  %v4278_v23 = vadd.f32 %v5191_v61, %v5129_v21 }
 0x8f8   :  { %v5131_v9 = vpop.f32.mrf.mxu0 }
 0x8f9   :  { %v5132_v27 = vadd.f32 %v5131_v9, %v5130_v35  ;;  %v4371_v26 = vpack.c.bf16 %v4356_v41, %v4355_v22  ;;  %v4341_v28 = vadd.f32 %v7096_v4, %v4278_v23  ;;  %v4124_v41 = vpop.f32.mrf.mxu1 }
 0x8fa   :  { %v5133_v29 = vpop.f32.mrf.mxu0 }
 0x8fb   :  { %v4281_v52 = vadd.f32 %v5192_v6, %v5132_v27  ;;  %5221 = vmatprep.mubr.bf16.mxu1 %v4371_v26  ;;  %v4357_v32 = vmax.f32 %v4341_v28, 0.0  ;;  %v5204_v28 = vpop.f32.mrf.mxu1 }
 0x8fc   :  { %v5134_v30 = vpop.f32.mrf.mxu0 }
 0x8fd   :  { %v4342_v53 = vadd.f32 %v7096_v4, %v4281_v52  ;;  %v5135_v60 = vadd.f32 %v5134_v30, %v5133_v29 }
 0x8fe   :  { %v5136_v2 = vpop.f32.mrf.mxu0 }
 0x8ff   :  { %v4358_v37 = vmax.f32 %v4342_v53, 0.0  ;;  %v4286_v36 = vadd.f32 %v5135_v60, %v4092_v24 }
 0x900   :  { %v5137_v40 = vpop.f32.mrf.mxu0 }
 0x901   :  { %v4372_v47 = vpack.c.bf16 %v4358_v37, %v4357_v32  ;;  %v5138_v13 = vadd.f32 %v5137_v40, %v5136_v2  ;;  %v4343_v44 = vadd.f32 %v7096_v4, %v4286_v36  ;;  %v4127_v37 = vpop.f32.mrf.mxu1 }
 0x902   :  { %v5139_v25 = vpop.f32.mrf.mxu0 }
 0x903   :  { %v4289_v58 = vadd.f32 %v5138_v13, %v4095_v3  ;;  %5222 = vmatmul.mubr.bf16.vlgmr.msra.gmra.mxu1 %v4372_v47  ;;  %v4359_v43 = vmax.f32 %v4343_v44, 0.0 }
 0x904   :  { %v5140_v42 = vpop.f32.mrf.mxu0 }
 0x905   :  { %v4344_v39 = vadd.f32 %v7096_v4, %v4289_v58  ;;  %v5141_v14 = vadd.f32 %v5140_v42, %v5139_v25 }
 0x906   :  { %v5142_v15 = vpop.f32.mrf.mxu0 }
 0x907   :  { %v4360_v0 = vmax.f32 %v4344_v39, 0.0  ;;  %v4294_v49 = vadd.f32 %v5195_v12, %v5141_v14 }
 0x908   :  { %v5143_v7 = vpop.f32.mrf.mxu0 }
 0x909   :  { %v5144_v31 = vadd.f32 %v5143_v7, %v5142_v15  ;;  %v4373_v59 = vpack.c.bf16 %v4360_v0, %v4359_v43  ;;  %v4345_v48 = vadd.f32 %v7096_v4, %v4294_v49 }
 0x90a   :  { %v5145_v38 = vpop.f32.mrf.mxu0 }
 0x90b   :  { %v4297_v55 = vadd.f32 %v5196_v63, %v5144_v31  ;;  %5225 = vmatprep.mubr.bf16.mxu1 %v4373_v59  ;;  %v4361_v19 = vmax.f32 %v4345_v48, 0.0  ;;  %v7117_v48 = vld [vmem:[%s7256_s25] ss:$0 sm:$0xff] }
 0x90c   :  { %v5146_v34 = vpop.f32.mrf.mxu0 }
 0x90d   :  { %v4346_v56 = vadd.f32 %v7096_v4, %v4297_v55  ;;  %v5147_v46 = vadd.f32 %v5146_v34, %v5145_v38  ;;  %v4568_v55 = vpop.permute.xlu1 %4567 }
 0x90e   :  { %v5148_v61 = vpop.f32.mrf.mxu0 }
 0x90f   :  { %v4362_v1 = vmax.f32 %v4346_v56, 0.0  ;;  %v4302_v5 = vadd.f32 %v5147_v46, %v4108_v17  ;;  %v4564_v56 = vpop.permute.xlu0 %4563 }
 0x910   :  { %v5149_v6 = vpop.f32.mrf.mxu0 }
 0x911   :  { %v4374_v10 = vpack.c.bf16 %v4362_v1, %v4361_v19  ;;  %v5150_v62 = vadd.f32 %v5149_v6, %v5148_v61  ;;  %v4347_v51 = vadd.f32 %v7096_v4, %v4302_v5 }
 0x912   :  { %v5151_v11 = vpop.f32.mrf.mxu0 }
 0x913   :  { %v4305_v54 = vadd.f32 %v5150_v62, %v4111_v8  ;;  %5226 = vmatmul.mubr.bf16.gmra.mxu1 %v4374_v10  ;;  %v4363_v20 = vmax.f32 %v4347_v51, 0.0  ;;  %v4570_v8 = vpop.permute.xlu1 %4569 }
 0x914   :  { %v5152_v50 = vpop.f32.mrf.mxu0 }
 0x915   :  { %v4348_v57 = vadd.f32 %v7096_v4, %v4305_v54  ;;  %v5153_v18 = vadd.f32 %v5152_v50, %v5151_v11  ;;  %v4566_v54 = vpop.permute.xlu0 %4565 }
 0x916   :  { %v5154_v12 = vpop.f32.mrf.mxu0 }
 0x917   :  { %v4364_v21 = vmax.f32 %v4348_v57, 0.0  ;;  %v4310_v35 = vadd.f32 %v5199_v45, %v5153_v18 }
 0x918   :  { %v5155_v22 = vpop.f32.mrf.mxu0 }
 0x919   :  { %v5156_v23 = vadd.f32 %v5155_v22, %v5154_v12  ;;  %v4375_v9 = vpack.c.bf16 %v4364_v21, %v4363_v20  ;;  %v4349_v27 = vadd.f32 %v7096_v4, %v4310_v35  ;;  %v4572_v18 = vpop.permute.xlu0 %4571  ;;  %v4574_v20 = vpop.permute.xlu1 %4573 }
 0x91a   :  { %v5157_v24 = vpop.f32.mrf.mxu0 }
 0x91b   :  { %v4313_v26 = vadd.f32 %v5200_v33, %v5156_v23  ;;  %5229 = vmatprep.mubr.bf16.mxu1 %v4375_v9  ;;  %v4365_v53 = vmax.f32 %v4349_v27, 0.0 }
 0x91c   :  { %v5158_v29 = vpop.f32.mrf.mxu0 }
 0x91d   :  { %v4350_v52 = vadd.f32 %v7096_v4, %v4313_v26  ;;  %v5159_v30 = vadd.f32 %v5158_v29, %v5157_v24  ;;  %v4576_v35 = vpop.permute.xlu0 %4575  ;;  %v4578_v29 = vpop.permute.xlu1 %4577 }
 0x91e   :  { %v5160_v63 = vpop.f32.mrf.mxu0 }
 0x91f   :  { %v4366_v60 = vmax.f32 %v4350_v52, 0.0  ;;  %v4318_v2 = vadd.f32 %v5159_v30, %v4124_v41 }
 0x920   :  { %v5161_v32 = vpop.f32.mrf.mxu0 }
 0x921   :  { %v4376_v36 = vpack.c.bf16 %v4366_v60, %v4365_v53  ;;  %v5162_v40 = vadd.f32 %v5161_v32, %v5160_v63  ;;  %v4351_v47 = vadd.f32 %v7096_v4, %v4318_v2  ;;  %v4580_v32 = vpop.permute.xlu0 %4579 }
 0x922   :  { %v5163_v3 = vpop.f32.mrf.mxu0 }
 0x923   :  { %v4321_v13 = vadd.f32 %v5162_v40, %v4127_v37  ;;  %5230 = vmatmul.mubr.bf16.gmra.mxu1 %v4376_v36  ;;  %v4367_v45 = vmax.f32 %v4351_v47, 0.0  ;;  %v4582_v36 = vpop.permute.xlu1 %4581 }
 0x924   :  { %v5164_v25 = vpop.f32.mrf.mxu0 }
 0x925   :  { %v4352_v44 = vadd.f32 %v7096_v4, %v4321_v13  ;;  %v5165_v58 = vadd.f32 %v5164_v25, %v5163_v3  ;;  %v4584_v3 = vpop.permute.xlu0 %4583 }
 0x926   :  { %v5166_v42 = vpop.f32.mrf.mxu0 }
 0x927   :  { %v4368_v39 = vmax.f32 %v4352_v44, 0.0  ;;  %v4326_v14 = vadd.f32 %v5203_v16, %v5165_v58 }
 0x928   :  { %v5167_v15 = vpop.f32.mrf.mxu0 }
 0x929   :  { %v5168_v43 = vadd.f32 %v5167_v15, %v5166_v42  ;;  %v4377_v0 = vpack.c.bf16 %v4368_v39, %v4367_v45  ;;  %v4353_v49 = vadd.f32 %v7096_v4, %v4326_v14  ;;  %v4586_v39 = vpop.permute.xlu1 %4585 }
 0x92b   :  { %v4329_v7 = vadd.f32 %v5204_v28, %v5168_v43  ;;  %5233 = vmatprep.mubr.bf16.mxu1 %v4377_v0  ;;  %v4369_v31 = vmax.f32 %v4353_v49, 0.0 }
 0x92d   :  { %v4354_v17 = vadd.f32 %v7096_v4, %v4329_v7 }
 0x92f   :  { %v4370_v59 = vmax.f32 %v4354_v17, 0.0 }
 0x931   :  { %v4378_v38 = vpack.c.bf16 %v4370_v59, %v4369_v31  ;;  %v4588_v31 = vpop.permute.xlu0 %4587 }
 0x933   :  { %5234 = vmatmul.mubr.bf16.gmra.mxu1 %v4378_v38  ;;  %v4590_v38 = vpop.permute.xlu1 %4589 }
 0x9c3   :  { %v5223_v34 = vpop.f32.mrf.mxu1 }
 0x9c4   :  { %v4493_v33 = vadd.f32 %v5223_v34, %v7117_v48  ;;  %v4592_v34 = vpop.permute.xlu0 %4591 }
 0x9c5   :  { %v4484_v46 = vpop.f32.mrf.mxu1 }
 0x9c6   :  { %v4614_v4 = vsel %vm4611_vm2, %v4493_v33, %v4568_v55  ;;  %v4485_v61 = vadd.f32 %v7117_v48, %v4484_v46 }
 0x9c7   :  { %v4631_v19 = vsel %vm4628_vm3, %v4614_v4, 0.0  ;;  %v5224_v1 = vpop.f32.mrf.mxu1 }
 0x9c8   :  { %4648 = vst.msk [vmem:[%s7257_s26 + $0x10] sm:$0xff] %vm4645_vm4, %v4631_v19  ;;  %v4612_v5 = vsel %vm4611_vm2, %v4485_v61, %v4564_v56  ;;  %v4496_v6 = vadd.f32 %v5224_v1, %v7117_v48 }
 0x9c9   :  { %v4629_v10 = vsel %vm4628_vm3, %v4612_v5, 0.0  ;;  %v4487_v62 = vpop.f32.mrf.mxu1  ;;  %v4594_v5 = vpop.permute.xlu1 %4593 }
 0x9ca   :  { %4646 = vst.msk [vmem:[%s7257_s26] sm:$0xff] %vm4645_vm4, %v4629_v10  ;;  %v4615_v11 = vsel %vm4611_vm2, %v4496_v6, %v4570_v8  ;;  %v4488_v51 = vadd.f32 %v7117_v48, %v4487_v62 }
 0x9cb   :  { %v4632_v50 = vsel %vm4628_vm3, %v4615_v11, 0.0 }
 0x9cc   :  { %4649 = vst.msk [vmem:[%s7257_s26 + $0x18] sm:$0xff] %vm4645_vm4, %v4632_v50  ;;  %v4613_v16 = vsel %vm4611_vm2, %v4488_v51, %v4566_v54 }
 0x9cd   :  { %v4630_v57 = vsel %vm4628_vm3, %v4613_v16, 0.0 }
 0x9ce   :  { %4647 = vst.msk [vmem:[%s7257_s26 + $0x8] sm:$0xff] %vm4645_vm4, %v4630_v57 }
 0x9d3   :  { %v5227_v12 = vpop.f32.mrf.mxu1 }
 0x9d4   :  { %v4509_v21 = vadd.f32 %v5227_v12, %v7117_v48 }
 0x9d5   :  { %v4500_v22 = vpop.f32.mrf.mxu1 }
 0x9d6   :  { %v4618_v41 = vsel %vm4611_vm2, %v4509_v21, %v4576_v35  ;;  %v4501_v23 = vadd.f32 %v7117_v48, %v4500_v22 }
 0x9d7   :  { %v4635_v9 = vsel %vm4628_vm3, %v4618_v41, 0.0  ;;  %v5228_v24 = vpop.f32.mrf.mxu1 }
 0x9d8   :  { %4652 = vst.msk [vmem:[%s7257_s26 + $0x30] sm:$0xff] %vm4645_vm4, %v4635_v9  ;;  %v4616_v27 = vsel %vm4611_vm2, %v4501_v23, %v4572_v18  ;;  %v4512_v26 = vadd.f32 %v5228_v24, %v7117_v48 }
 0x9d9   :  { %v4633_v28 = vsel %vm4628_vm3, %v4616_v27, 0.0  ;;  %v4503_v52 = vpop.f32.mrf.mxu1 }
 0x9da   :  { %4650 = vst.msk [vmem:[%s7257_s26 + $0x20] sm:$0xff] %vm4645_vm4, %v4633_v28  ;;  %v4619_v30 = vsel %vm4611_vm2, %v4512_v26, %v4578_v29  ;;  %v4504_v63 = vadd.f32 %v7117_v48, %v4503_v52 }
 0x9db   :  { %v4636_v53 = vsel %vm4628_vm3, %v4619_v30, 0.0 }
 0x9dc   :  { %4653 = vst.msk [vmem:[%s7257_s26 + $0x38] sm:$0xff] %vm4645_vm4, %v4636_v53  ;;  %v4617_v60 = vsel %vm4611_vm2, %v4504_v63, %v4574_v20 }
 0x9dd   :  { %v4634_v2 = vsel %vm4628_vm3, %v4617_v60, 0.0 }
 0x9de   :  { %4651 = vst.msk [vmem:[%s7257_s26 + $0x28] sm:$0xff] %vm4645_vm4, %v4634_v2 }
 0x9e3   :  { %v5231_v37 = vpop.f32.mrf.mxu1 }
 0x9e4   :  { %v4525_v40 = vadd.f32 %v5231_v37, %v7117_v48 }
 0x9e5   :  { %v4516_v47 = vpop.f32.mrf.mxu1 }
 0x9e6   :  { %v4622_v13 = vsel %vm4611_vm2, %v4525_v40, %v4584_v3  ;;  %v4517_v25 = vadd.f32 %v7117_v48, %v4516_v47 }
 0x9e7   :  { %v4639_v44 = vsel %vm4628_vm3, %v4622_v13, 0.0  ;;  %v5232_v58 = vpop.f32.mrf.mxu1 }
 0x9e8   :  { %4656 = vst.msk [vmem:[%s7257_s26 + $0x50] sm:$0xff] %vm4645_vm4, %v4639_v44  ;;  %v4620_v42 = vsel %vm4611_vm2, %v4517_v25, %v4580_v32  ;;  %v4528_v45 = vadd.f32 %v5232_v58, %v7117_v48 }
 0x9e9   :  { %v4637_v14 = vsel %vm4628_vm3, %v4620_v42, 0.0  ;;  %v4519_v15 = vpop.f32.mrf.mxu1 }
 0x9ea   :  { %4654 = vst.msk [vmem:[%s7257_s26 + $0x40] sm:$0xff] %vm4645_vm4, %v4637_v14  ;;  %v4623_v43 = vsel %vm4611_vm2, %v4528_v45, %v4586_v39  ;;  %v4520_v0 = vadd.f32 %v7117_v48, %v4519_v15 }
 0x9eb   :  { %v4640_v49 = vsel %vm4628_vm3, %v4623_v43, 0.0 }
 0x9ec   :  { %4657 = vst.msk [vmem:[%s7257_s26 + $0x58] sm:$0xff] %vm4645_vm4, %v4640_v49  ;;  %v4621_v7 = vsel %vm4611_vm2, %v4520_v0, %v4582_v36 }
 0x9ed   :  { %v4638_v17 = vsel %vm4628_vm3, %v4621_v7, 0.0 }
 0x9ee   :  { %4655 = vst.msk [vmem:[%s7257_s26 + $0x48] sm:$0xff] %vm4645_vm4, %v4638_v17 }
 0x9f3   :  { %v5235_v59 = vpop.f32.mrf.mxu1 }
 0x9f4   :  { %v4541_v55 = vadd.f32 %v5235_v59, %v7117_v48 }
 0x9f5   :  { %v4532_v33 = vpop.f32.mrf.mxu1 }
 0x9f6   :  { %v4626_v56 = vsel %vm4611_vm2, %v4541_v55, %v4592_v34  ;;  %v4533_v46 = vadd.f32 %v7117_v48, %v4532_v33 }
 0x9f7   :  { %v4643_v4 = vsel %vm4628_vm3, %v4626_v56, 0.0  ;;  %v5236_v61 = vpop.f32.mrf.mxu1 }
 0x9f8   :  { %4660 = vst.msk [vmem:[%s7257_s26 + $0x70] sm:$0xff] %vm4645_vm4, %v4643_v4  ;;  %v4624_v19 = vsel %vm4611_vm2, %v4533_v46, %v4588_v31  ;;  %v4544_v1 = vadd.f32 %v5236_v61, %v7117_v48 }
 0x9f9   :  { %v4641_v6 = vsel %vm4628_vm3, %v4624_v19, 0.0  ;;  %v4535_v8 = vpop.f32.mrf.mxu1 }
 0x9fa   :  { %4658 = vst.msk [vmem:[%s7257_s26 + $0x60] sm:$0xff] %vm4645_vm4, %v4641_v6  ;;  %v4627_v10 = vsel %vm4611_vm2, %v4544_v1, %v4594_v5  ;;  %v4536_v62 = vadd.f32 %v7117_v48, %v4535_v8 }
 0x9fb   :  { %v4644_v11 = vsel %vm4628_vm3, %v4627_v10, 0.0 }
 0x9fc   :  { %4661 = vst.msk [vmem:[%s7257_s26 + $0x78] sm:$0xff] %vm4645_vm4, %v4644_v11  ;;  %v4625_v51 = vsel %vm4611_vm2, %v4536_v62, %v4590_v38 }
 0x9fd   :  { %v4642_v54 = vsel %vm4628_vm3, %v4625_v51, 0.0 }
 0x9fe   :  { %4659 = vst.msk [vmem:[%s7257_s26 + $0x68] sm:$0xff] %vm4645_vm4, %v4642_v54 }
 0x9ff   :  { %4666 = vsyncpa [#allocation3], 1 }
 0xa00   :  { %4667 = vsyncpa [#allocation5], 1 }
 0xa01   :  { %4668 = vsyncpa [#allocation8], 1 }
 0xa02   :  { %4669 = vsyncpa [#allocation11], 1 }
 0xa03   :  { %4670 = vsyncpa [#allocation14], 1 }
 0xa04   :  { %4671 = vsyncpa [#allocation17], 1 }
 0xa05   :  { %4672 = vsyncpa [#allocation20], 1 }
 0xa06   :  { %4673 = vsyncpa [#allocation23], 1 }
 0xa07   :  { %4674 = vsyncpa [#allocation26], 1 }

</bundles_post_ra>
